<compile_context>
chip_gen: v5e
topology: v5e:2x2
jax: 0.10.0
libtpu: 0.0.40
codegen_flags: <defaults>
</compile_context>

<pallas_src>
import jax
import jax.numpy as jnp
from jax.experimental import pallas as pl
from jax.experimental.pallas import tpu as pltpu

# ----------------------------- model hyper-params -----------------------------
INPUT_SIZE = 16
HIDDEN_SIZE = 32
NUM_LAYERS = 2          # -> gru2 has NUM_LAYERS - 1 = 1 unidirectional layer
OUTPUT_SIZE = 4
DENSE_UNITS = 32
OUTPUT_SEQ_LEN = 4      # stands in for config.OUTPUT_SEQ_LEN
DROPOUT = 0.2           # eval mode -> dropout is identity
BATCH = 2
SEQ_LEN = 8

# TODO(synk): training-mode Gaussian noise injection and Dropout/Dropout2d are
# identity in eval mode and are intentionally omitted.


# ------------------------------ in-kernel helpers ------------------------------
def _layernorm(x, gamma, beta, eps=1e-5):
    mean = jnp.mean(x, axis=-1, keepdims=True)
    var = jnp.mean(jnp.square(x - mean), axis=-1, keepdims=True)
    return (x - mean) * jax.lax.rsqrt(var + eps) * gamma + beta


def _leaky_relu(v, slope=0.01):
    return jnp.where(v > 0, v, slope * v)


def _gru_cell(gi, gh, h, H):
    """PyTorch GRU cell given precomputed input/hidden gate projections.

    gi = x @ W_ih^T + b_ih, gh = h @ W_hh^T + b_hh, gate order [r|z|n].
    """
    r = jax.nn.sigmoid(gi[:, :H] + gh[:, :H])
    z = jax.nn.sigmoid(gi[:, H:2 * H] + gh[:, H:2 * H])
    n = jnp.tanh(gi[:, 2 * H:] + r * gh[:, 2 * H:])
    return (1.0 - z) * n + z * h


# ------------------------------- fused kernel ----------------------------------
def _build_fused_kernel(T, B, D, H, n_gru2):
    """Builds the fused forward kernel.  All sizes are static (trace-time)."""

    def kernel(*refs):
        idx = 0

        def nxt():
            nonlocal idx
            r = refs[idx]
            idx += 1
            return r

        # ---- inputs ----
        x_ref = nxt()                                     # (T*B, D) time-major
        in_g = nxt()[...]; in_b = nxt()[...]              # (1, D)
        wih_f = nxt()[...]; whh_f = nxt()[...]            # GRU1 forward
        bih_f = nxt()[...]; bhh_f = nxt()[...]
        wih_b = nxt()[...]; whh_b = nxt()[...]            # GRU1 backward
        bih_b = nxt()[...]; bhh_b = nxt()[...]
        g1_g = nxt()[...]; g1_b = nxt()[...]              # (1, 2H)
        gru2 = []
        for _ in range(n_gru2):
            gru2.append((nxt()[...], nxt()[...], nxt()[...], nxt()[...]))
        g2_g = nxt()[...]; g2_b = nxt()[...]              # (1, H)
        w1 = nxt()[...]; b1 = nxt()[...]
        ln1_g = nxt()[...]; ln1_b = nxt()[...]
        w2 = nxt()[...]; b2 = nxt()[...]
        ln2_g = nxt()[...]; ln2_b = nxt()[...]
        w3 = nxt()[...]; b3 = nxt()[...]
        # ---- output / scratch ----
        o_ref = nxt()                                     # (B, out_feats)
        g1f_ref = nxt()                                   # (T*B, H) fwd outputs
        g1b_ref = nxt()                                   # (T*B, H) bwd outputs

        f32 = jnp.float32

        # -------- input LayerNorm (all timesteps at once) --------
        x = x_ref[...].astype(f32)                        # (T*B, D)
        xn = _layernorm(x, in_g, in_b)

        # -------- hoisted input projections for both GRU1 directions --------
        gi_f = jnp.dot(xn, wih_f, preferred_element_type=f32) + bih_f   # (T*B, 3H)
        gi_b = jnp.dot(xn, wih_b, preferred_element_type=f32) + bih_b   # (T*B, 3H)

        # -------- bidirectional GRU1: fully unrolled serial loop --------
        h_f = jnp.zeros((B, H), f32)
        h_b = jnp.zeros((B, H), f32)
        for t in range(T):
            # forward direction processes time t
            gh_f = jnp.dot(h_f, whh_f, preferred_element_type=f32) + bhh_f
            h_f = _gru_cell(gi_f[t * B:(t + 1) * B, :], gh_f, h_f, H)
            g1f_ref[t * B:(t + 1) * B, :] = h_f
            # backward direction processes time T-1-t (no flips needed)
            tb = T - 1 - t
            gh_b = jnp.dot(h_b, whh_b, preferred_element_type=f32) + bhh_b
            h_b = _gru_cell(gi_b[tb * B:(tb + 1) * B, :], gh_b, h_b, H)
            g1b_ref[tb * B:(tb + 1) * B, :] = h_b

        # bidirectional concat ([fwd | bwd]) stays in VMEM
        g1 = jnp.concatenate([g1f_ref[...], g1b_ref[...]], axis=-1)      # (T*B, 2H)
        seq = _layernorm(g1, g1_g, g1_b)

        # -------- GRU2 stack (unidirectional) --------
        h2 = jnp.zeros((B, H), f32)
        for li, (wih, whh, bih, bhh) in enumerate(gru2):
            gi_all = jnp.dot(seq, wih, preferred_element_type=f32) + bih  # hoisted
            h2 = jnp.zeros((B, H), f32)
            last_layer = (li == n_gru2 - 1)
            hs = []
            for t in range(T):
                gh = jnp.dot(h2, whh, preferred_element_type=f32) + bhh
                h2 = _gru_cell(gi_all[t * B:(t + 1) * B, :], gh, h2, H)
                if not last_layer:
                    hs.append(h2)
            if not last_layer:
                seq = jnp.concatenate(hs, axis=0)                          # (T*B, H)

        # -------- final LayerNorm applied ONLY to the last step --------
        h_last = _layernorm(h2, g2_g, g2_b)                                # (B, H)

        # -------- MLP head: Linear -> LN -> LeakyReLU -> Linear -> LN -> LeakyReLU -> Linear
        hm = jnp.dot(h_last, w1, preferred_element_type=f32) + b1
        hm = _leaky_relu(_layernorm(hm, ln1_g, ln1_b))
        hm = jnp.dot(hm, w2, preferred_element_type=f32) + b2
        hm = _leaky_relu(_layernorm(hm, ln2_g, ln2_b))
        out = jnp.dot(hm, w3, preferred_element_type=f32) + b3
        o_ref[...] = out.astype(o_ref.dtype)

    return kernel


# ------------------------------ parameter setup -------------------------------
def _mat(key, shape, scale=0.1):
    return jax.random.normal(key, shape, dtype=jnp.float32) * scale


def _gru_params(key, in_dim, hidden):
    k1, k2 = jax.random.split(key)
    return {
        "wih": _mat(k1, (in_dim, 3 * hidden)),           # W_ih^T, gates [r|z|n]
        "whh": _mat(k2, (hidden, 3 * hidden)),           # W_hh^T
        "bih": jnp.zeros((1, 3 * hidden), jnp.float32),  # biases init to 0
        "bhh": jnp.zeros((1, 3 * hidden), jnp.float32),
    }


def init_params(key):
    keys = jax.random.split(key, 8)
    gru2_layers = []
    k_g2 = jax.random.split(keys[3], max(NUM_LAYERS - 1, 1))
    for li in range(NUM_LAYERS - 1):
        in_dim = 2 * HIDDEN_SIZE if li == 0 else HIDDEN_SIZE
        gru2_layers.append(_gru_params(k_g2[li], in_dim, HIDDEN_SIZE))
    kh = jax.random.split(keys[4], 3)
    return {
        "in_ln_g": jnp.ones((INPUT_SIZE,), jnp.float32),
        "in_ln_b": jnp.zeros((INPUT_SIZE,), jnp.float32),
        "gru1_f": _gru_params(keys[0], INPUT_SIZE, HIDDEN_SIZE),
        "gru1_b": _gru_params(keys[1], INPUT_SIZE, HIDDEN_SIZE),
        "gru1_ln_g": jnp.ones((2 * HIDDEN_SIZE,), jnp.float32),
        "gru1_ln_b": jnp.zeros((2 * HIDDEN_SIZE,), jnp.float32),
        "gru2_layers": gru2_layers,
        "gru2_ln_g": jnp.ones((HIDDEN_SIZE,), jnp.float32),
        "gru2_ln_b": jnp.zeros((HIDDEN_SIZE,), jnp.float32),
        "head": {
            "w1": _mat(kh[0], (HIDDEN_SIZE, DENSE_UNITS)),
            "b1": jnp.zeros((1, DENSE_UNITS), jnp.float32),
            "ln1_g": jnp.ones((1, DENSE_UNITS), jnp.float32),
            "ln1_b": jnp.zeros((1, DENSE_UNITS), jnp.float32),
            "w2": _mat(kh[1], (DENSE_UNITS, DENSE_UNITS // 2)),
            "b2": jnp.zeros((1, DENSE_UNITS // 2), jnp.float32),
            "ln2_g": jnp.ones((1, DENSE_UNITS // 2), jnp.float32),
            "ln2_b": jnp.zeros((1, DENSE_UNITS // 2), jnp.float32),
            "w3": _mat(kh[2], (DENSE_UNITS // 2, OUTPUT_SEQ_LEN * OUTPUT_SIZE)),
            "b3": jnp.zeros((1, OUTPUT_SEQ_LEN * OUTPUT_SIZE), jnp.float32),
        },
    }


# --------------------------------- forward ------------------------------------
@jax.jit
def pure_gru_forward(x, params):
    """x: (B, T, INPUT_SIZE) -> (B, OUTPUT_SEQ_LEN, OUTPUT_SIZE). Single fused kernel."""
    B, T, D = x.shape
    H = params["gru1_f"]["whh"].shape[0]
    n_gru2 = len(params["gru2_layers"])
    # TODO(synk): num_layers == 1 path (no gru2 / no gru2_norm) not wired here.
    assert n_gru2 >= 1, "fused kernel expects NUM_LAYERS >= 2"

    # time-major, flattened rows (t*B + b) so per-step row blocks are contiguous
    x_tm = jnp.transpose(x, (1, 0, 2)).reshape(T * B, D).astype(jnp.float32)

    g1f = params["gru1_f"]; g1b = params["gru1_b"]; hd = params["head"]
    args = [
        x_tm,
        params["in_ln_g"].reshape(1, -1), params["in_ln_b"].reshape(1, -1),
        g1f["wih"], g1f["whh"], g1f["bih"], g1f["bhh"],
        g1b["wih"], g1b["whh"], g1b["bih"], g1b["bhh"],
        params["gru1_ln_g"].reshape(1, -1), params["gru1_ln_b"].reshape(1, -1),
    ]
    for lp in params["gru2_layers"]:
        args += [lp["wih"], lp["whh"], lp["bih"], lp["bhh"]]
    args += [params["gru2_ln_g"].reshape(1, -1), params["gru2_ln_b"].reshape(1, -1)]
    args += [hd["w1"], hd["b1"], hd["ln1_g"], hd["ln1_b"],
             hd["w2"], hd["b2"], hd["ln2_g"], hd["ln2_b"],
             hd["w3"], hd["b3"]]

    out_feats = hd["w3"].shape[1]
    kernel = _build_fused_kernel(T, B, D, H, n_gru2)

    y = pl.pallas_call(
        kernel,
        out_shape=jax.ShapeDtypeStruct((B, out_feats), jnp.float32),
        scratch_shapes=[
            pltpu.VMEM((T * B, H), jnp.float32),   # GRU1 forward outputs
            pltpu.VMEM((T * B, H), jnp.float32),   # GRU1 backward outputs
        ],
    )(*args)
    return y.reshape(B, OUTPUT_SEQ_LEN, OUTPUT_SIZE)


if __name__ == "__main__":
    key = jax.random.PRNGKey(0)
    k_param, k_x = jax.random.split(key)
    params = init_params(k_param)
    x = jax.random.normal(k_x, (BATCH, SEQ_LEN, INPUT_SIZE), dtype=jnp.float32)

    out = pure_gru_forward(x, params)
    out = jax.block_until_ready(out)
    assert out.shape == (BATCH, OUTPUT_SEQ_LEN, OUTPUT_SIZE)
    assert bool(jnp.all(jnp.isfinite(out)))
    print("KERNEL_OK")
</pallas_src>

<mosaic_0001>
module attributes {stable_mosaic.version = 11 : i64} {
  func.func @kernel(%arg0: memref<16x16xf32, #tpu.memory_space<vmem>>, %arg1: memref<1x16xf32, #tpu.memory_space<vmem>>, %arg2: memref<1x16xf32, #tpu.memory_space<vmem>>, %arg3: memref<16x96xf32, #tpu.memory_space<vmem>>, %arg4: memref<32x96xf32, #tpu.memory_space<vmem>>, %arg5: memref<1x96xf32, #tpu.memory_space<vmem>>, %arg6: memref<1x96xf32, #tpu.memory_space<vmem>>, %arg7: memref<16x96xf32, #tpu.memory_space<vmem>>, %arg8: memref<32x96xf32, #tpu.memory_space<vmem>>, %arg9: memref<1x96xf32, #tpu.memory_space<vmem>>, %arg10: memref<1x96xf32, #tpu.memory_space<vmem>>, %arg11: memref<1x64xf32, #tpu.memory_space<vmem>>, %arg12: memref<1x64xf32, #tpu.memory_space<vmem>>, %arg13: memref<64x96xf32, #tpu.memory_space<vmem>>, %arg14: memref<32x96xf32, #tpu.memory_space<vmem>>, %arg15: memref<1x96xf32, #tpu.memory_space<vmem>>, %arg16: memref<1x96xf32, #tpu.memory_space<vmem>>, %arg17: memref<1x32xf32, #tpu.memory_space<vmem>>, %arg18: memref<1x32xf32, #tpu.memory_space<vmem>>, %arg19: memref<32x32xf32, #tpu.memory_space<vmem>>, %arg20: memref<1x32xf32, #tpu.memory_space<vmem>>, %arg21: memref<1x32xf32, #tpu.memory_space<vmem>>, %arg22: memref<1x32xf32, #tpu.memory_space<vmem>>, %arg23: memref<32x16xf32, #tpu.memory_space<vmem>>, %arg24: memref<1x16xf32, #tpu.memory_space<vmem>>, %arg25: memref<1x16xf32, #tpu.memory_space<vmem>>, %arg26: memref<1x16xf32, #tpu.memory_space<vmem>>, %arg27: memref<16x16xf32, #tpu.memory_space<vmem>>, %arg28: memref<1x16xf32, #tpu.memory_space<vmem>>, %arg29: memref<2x16xf32, #tpu.memory_space<vmem>>, %arg30: memref<16x32xf32, #tpu.memory_space<vmem>>, %arg31: memref<16x32xf32, #tpu.memory_space<vmem>>) attributes {dimension_semantics = [], scalar_prefetch = 0 : i64, scratch_operands = 2 : i64, tpu.core_type = #tpu.core_type<tc>} {
    %c0 = arith.constant 0 : index
    %c0_0 = arith.constant 0 : index
    %0 = vector.load %arg1[%c0, %c0_0] : memref<1x16xf32, #tpu.memory_space<vmem>>, vector<1x16xf32>
    %c0_1 = arith.constant 0 : index
    %c0_2 = arith.constant 0 : index
    %1 = vector.load %arg2[%c0_1, %c0_2] : memref<1x16xf32, #tpu.memory_space<vmem>>, vector<1x16xf32>
    %c0_3 = arith.constant 0 : index
    %c0_4 = arith.constant 0 : index
    %2 = vector.load %arg3[%c0_3, %c0_4] : memref<16x96xf32, #tpu.memory_space<vmem>>, vector<16x96xf32>
    %c0_5 = arith.constant 0 : index
    %c0_6 = arith.constant 0 : index
    %3 = vector.load %arg4[%c0_5, %c0_6] : memref<32x96xf32, #tpu.memory_space<vmem>>, vector<32x96xf32>
    %c0_7 = arith.constant 0 : index
    %c0_8 = arith.constant 0 : index
    %4 = vector.load %arg5[%c0_7, %c0_8] : memref<1x96xf32, #tpu.memory_space<vmem>>, vector<1x96xf32>
    %c0_9 = arith.constant 0 : index
    %c0_10 = arith.constant 0 : index
    %5 = vector.load %arg6[%c0_9, %c0_10] : memref<1x96xf32, #tpu.memory_space<vmem>>, vector<1x96xf32>
    %c0_11 = arith.constant 0 : index
    %c0_12 = arith.constant 0 : index
    %6 = vector.load %arg7[%c0_11, %c0_12] : memref<16x96xf32, #tpu.memory_space<vmem>>, vector<16x96xf32>
    %c0_13 = arith.constant 0 : index
    %c0_14 = arith.constant 0 : index
    %7 = vector.load %arg8[%c0_13, %c0_14] : memref<32x96xf32, #tpu.memory_space<vmem>>, vector<32x96xf32>
    %c0_15 = arith.constant 0 : index
    %c0_16 = arith.constant 0 : index
    %8 = vector.load %arg9[%c0_15, %c0_16] : memref<1x96xf32, #tpu.memory_space<vmem>>, vector<1x96xf32>
    %c0_17 = arith.constant 0 : index
    %c0_18 = arith.constant 0 : index
    %9 = vector.load %arg10[%c0_17, %c0_18] : memref<1x96xf32, #tpu.memory_space<vmem>>, vector<1x96xf32>
    %c0_19 = arith.constant 0 : index
    %c0_20 = arith.constant 0 : index
    %10 = vector.load %arg11[%c0_19, %c0_20] : memref<1x64xf32, #tpu.memory_space<vmem>>, vector<1x64xf32>
    %c0_21 = arith.constant 0 : index
    %c0_22 = arith.constant 0 : index
    %11 = vector.load %arg12[%c0_21, %c0_22] : memref<1x64xf32, #tpu.memory_space<vmem>>, vector<1x64xf32>
    %c0_23 = arith.constant 0 : index
    %c0_24 = arith.constant 0 : index
    %12 = vector.load %arg13[%c0_23, %c0_24] : memref<64x96xf32, #tpu.memory_space<vmem>>, vector<64x96xf32>
    %c0_25 = arith.constant 0 : index
    %c0_26 = arith.constant 0 : index
    %13 = vector.load %arg14[%c0_25, %c0_26] : memref<32x96xf32, #tpu.memory_space<vmem>>, vector<32x96xf32>
    %c0_27 = arith.constant 0 : index
    %c0_28 = arith.constant 0 : index
    %14 = vector.load %arg15[%c0_27, %c0_28] : memref<1x96xf32, #tpu.memory_space<vmem>>, vector<1x96xf32>
    %c0_29 = arith.constant 0 : index
    %c0_30 = arith.constant 0 : index
    %15 = vector.load %arg16[%c0_29, %c0_30] : memref<1x96xf32, #tpu.memory_space<vmem>>, vector<1x96xf32>
    %c0_31 = arith.constant 0 : index
    %c0_32 = arith.constant 0 : index
    %16 = vector.load %arg17[%c0_31, %c0_32] : memref<1x32xf32, #tpu.memory_space<vmem>>, vector<1x32xf32>
    %c0_33 = arith.constant 0 : index
    %c0_34 = arith.constant 0 : index
    %17 = vector.load %arg18[%c0_33, %c0_34] : memref<1x32xf32, #tpu.memory_space<vmem>>, vector<1x32xf32>
    %c0_35 = arith.constant 0 : index
    %c0_36 = arith.constant 0 : index
    %18 = vector.load %arg19[%c0_35, %c0_36] : memref<32x32xf32, #tpu.memory_space<vmem>>, vector<32x32xf32>
    %c0_37 = arith.constant 0 : index
    %c0_38 = arith.constant 0 : index
    %19 = vector.load %arg20[%c0_37, %c0_38] : memref<1x32xf32, #tpu.memory_space<vmem>>, vector<1x32xf32>
    %c0_39 = arith.constant 0 : index
    %c0_40 = arith.constant 0 : index
    %20 = vector.load %arg21[%c0_39, %c0_40] : memref<1x32xf32, #tpu.memory_space<vmem>>, vector<1x32xf32>
    %c0_41 = arith.constant 0 : index
    %c0_42 = arith.constant 0 : index
    %21 = vector.load %arg22[%c0_41, %c0_42] : memref<1x32xf32, #tpu.memory_space<vmem>>, vector<1x32xf32>
    %c0_43 = arith.constant 0 : index
    %c0_44 = arith.constant 0 : index
    %22 = vector.load %arg23[%c0_43, %c0_44] : memref<32x16xf32, #tpu.memory_space<vmem>>, vector<32x16xf32>
    %c0_45 = arith.constant 0 : index
    %c0_46 = arith.constant 0 : index
    %23 = vector.load %arg24[%c0_45, %c0_46] : memref<1x16xf32, #tpu.memory_space<vmem>>, vector<1x16xf32>
    %c0_47 = arith.constant 0 : index
    %c0_48 = arith.constant 0 : index
    %24 = vector.load %arg25[%c0_47, %c0_48] : memref<1x16xf32, #tpu.memory_space<vmem>>, vector<1x16xf32>
    %c0_49 = arith.constant 0 : index
    %c0_50 = arith.constant 0 : index
    %25 = vector.load %arg26[%c0_49, %c0_50] : memref<1x16xf32, #tpu.memory_space<vmem>>, vector<1x16xf32>
    %c0_51 = arith.constant 0 : index
    %c0_52 = arith.constant 0 : index
    %26 = vector.load %arg27[%c0_51, %c0_52] : memref<16x16xf32, #tpu.memory_space<vmem>>, vector<16x16xf32>
    %c0_53 = arith.constant 0 : index
    %c0_54 = arith.constant 0 : index
    %27 = vector.load %arg28[%c0_53, %c0_54] : memref<1x16xf32, #tpu.memory_space<vmem>>, vector<1x16xf32>
    %c0_55 = arith.constant 0 : index
    %c0_56 = arith.constant 0 : index
    %28 = vector.load %arg0[%c0_55, %c0_56] : memref<16x16xf32, #tpu.memory_space<vmem>>, vector<16x16xf32>
    %cst = arith.constant dense<0.000000e+00> : vector<16xf32>
    %29 = vector.multi_reduction <add>, %28, %cst [1] : vector<16x16xf32> to vector<16xf32>
    %30 = vector.shape_cast %29 : vector<16xf32> to vector<16x1xf32>
    %cst_57 = arith.constant 1.600000e+01 : f32
    %31 = vector.broadcast %cst_57 : f32 to vector<16x1xf32>
    %32 = arith.divf %30, %31 : vector<16x1xf32>
    %33 = vector.broadcast %32 : vector<16x1xf32> to vector<16x16xf32>
    %34 = arith.subf %28, %33 : vector<16x16xf32>
    %35 = arith.mulf %34, %34 : vector<16x16xf32>
    %cst_58 = arith.constant dense<0.000000e+00> : vector<16xf32>
    %36 = vector.multi_reduction <add>, %35, %cst_58 [1] : vector<16x16xf32> to vector<16xf32>
    %37 = vector.shape_cast %36 : vector<16xf32> to vector<16x1xf32>
    %cst_59 = arith.constant 1.600000e+01 : f32
    %38 = vector.broadcast %cst_59 : f32 to vector<16x1xf32>
    %39 = arith.divf %37, %38 : vector<16x1xf32>
    %40 = vector.broadcast %32 : vector<16x1xf32> to vector<16x16xf32>
    %41 = arith.subf %28, %40 : vector<16x16xf32>
    %cst_60 = arith.constant 9.99999974E-6 : f32
    %42 = vector.broadcast %cst_60 : f32 to vector<16x1xf32>
    %43 = arith.addf %39, %42 : vector<16x1xf32>
    %44 = math.rsqrt %43 : vector<16x1xf32>
    %45 = vector.broadcast %44 : vector<16x1xf32> to vector<16x16xf32>
    %46 = arith.mulf %41, %45 : vector<16x16xf32>
    %47 = vector.broadcast %0 : vector<1x16xf32> to vector<16x16xf32>
    %48 = arith.mulf %46, %47 : vector<16x16xf32>
    %49 = vector.broadcast %1 : vector<1x16xf32> to vector<16x16xf32>
    %50 = arith.addf %48, %49 : vector<16x16xf32>
    %cst_61 = arith.constant dense<0.000000e+00> : vector<16x96xf32>
    %51 = tpu.matmul %50, %2, %cst_61 {dimension_numbers = #tpu.dot_dimension_numbers<[1], [0], [0], [1], [0, 0, 1, 1], [], []>} : vector<16x16xf32>, vector<16x96xf32>, vector<16x96xf32> -> vector<16x96xf32>
    %52 = vector.broadcast %4 : vector<1x96xf32> to vector<16x96xf32>
    %53 = arith.addf %51, %52 : vector<16x96xf32>
    %cst_62 = arith.constant dense<0.000000e+00> : vector<16x96xf32>
    %54 = tpu.matmul %50, %6, %cst_62 {dimension_numbers = #tpu.dot_dimension_numbers<[1], [0], [0], [1], [0, 0, 1, 1], [], []>} : vector<16x16xf32>, vector<16x96xf32>, vector<16x96xf32> -> vector<16x96xf32>
    %55 = vector.broadcast %8 : vector<1x96xf32> to vector<16x96xf32>
    %56 = arith.addf %54, %55 : vector<16x96xf32>
    %cst_63 = arith.constant 0.000000e+00 : f32
    %57 = vector.broadcast %cst_63 : f32 to vector<2x32xf32>
    %cst_64 = arith.constant 0.000000e+00 : f32
    %58 = vector.broadcast %cst_64 : f32 to vector<2x32xf32>
    %cst_65 = arith.constant dense<0.000000e+00> : vector<2x96xf32>
    %59 = tpu.matmul %57, %3, %cst_65 {dimension_numbers = #tpu.dot_dimension_numbers<[1], [0], [0], [1], [0, 0, 1, 1], [], []>} : vector<2x32xf32>, vector<32x96xf32>, vector<2x96xf32> -> vector<2x96xf32>
    %60 = vector.broadcast %5 : vector<1x96xf32> to vector<2x96xf32>
    %61 = arith.addf %59, %60 : vector<2x96xf32>
    %62 = vector.extract_strided_slice %53 {offsets = [0, 0], sizes = [2, 96], strides = [1, 1]} : vector<16x96xf32> to vector<2x96xf32>
    %63 = vector.extract_strided_slice %62 {offsets = [0, 0], sizes = [2, 32], strides = [1, 1]} : vector<2x96xf32> to vector<2x32xf32>
    %64 = vector.extract_strided_slice %61 {offsets = [0, 0], sizes = [2, 32], strides = [1, 1]} : vector<2x96xf32> to vector<2x32xf32>
    %65 = arith.addf %63, %64 : vector<2x32xf32>
    %66 = arith.negf %65 : vector<2x32xf32>
    %67 = math.exp %66 : vector<2x32xf32>
    %cst_66 = arith.constant 1.000000e+00 : f32
    %68 = vector.broadcast %cst_66 : f32 to vector<2x32xf32>
    %69 = arith.addf %68, %67 : vector<2x32xf32>
    %70 = arith.divf %68, %69 : vector<2x32xf32>
    %71 = vector.extract_strided_slice %62 {offsets = [0, 32], sizes = [2, 32], strides = [1, 1]} : vector<2x96xf32> to vector<2x32xf32>
    %72 = vector.extract_strided_slice %61 {offsets = [0, 32], sizes = [2, 32], strides = [1, 1]} : vector<2x96xf32> to vector<2x32xf32>
    %73 = arith.addf %71, %72 : vector<2x32xf32>
    %74 = arith.negf %73 : vector<2x32xf32>
    %75 = math.exp %74 : vector<2x32xf32>
    %cst_67 = arith.constant 1.000000e+00 : f32
    %76 = vector.broadcast %cst_67 : f32 to vector<2x32xf32>
    %77 = arith.addf %76, %75 : vector<2x32xf32>
    %78 = arith.divf %76, %77 : vector<2x32xf32>
    %79 = vector.extract_strided_slice %62 {offsets = [0, 64], sizes = [2, 32], strides = [1, 1]} : vector<2x96xf32> to vector<2x32xf32>
    %80 = vector.extract_strided_slice %61 {offsets = [0, 64], sizes = [2, 32], strides = [1, 1]} : vector<2x96xf32> to vector<2x32xf32>
    %81 = arith.mulf %70, %80 : vector<2x32xf32>
    %82 = arith.addf %79, %81 : vector<2x32xf32>
    %83 = math.tanh %82 : vector<2x32xf32>
    %cst_68 = arith.constant 1.000000e+00 : f32
    %84 = vector.broadcast %cst_68 : f32 to vector<2x32xf32>
    %85 = arith.subf %84, %78 : vector<2x32xf32>
    %86 = arith.mulf %85, %83 : vector<2x32xf32>
    %87 = arith.mulf %78, %57 : vector<2x32xf32>
    %88 = arith.addf %86, %87 : vector<2x32xf32>
    %c0_69 = arith.constant 0 : index
    %c0_70 = arith.constant 0 : index
    %89 = vector.load %arg30[%c0_69, %c0_70] : memref<16x32xf32, #tpu.memory_space<vmem>>, vector<2x32xf32>
    tpu.vector_store %arg30[%c0_69, %c0_70], %88 {strides = array<i32>} : memref<16x32xf32, #tpu.memory_space<vmem>>, vector<2x32xf32>,
    %cst_71 = arith.constant dense<0.000000e+00> : vector<2x96xf32>
    %90 = tpu.matmul %58, %7, %cst_71 {dimension_numbers = #tpu.dot_dimension_numbers<[1], [0], [0], [1], [0, 0, 1, 1], [], []>} : vector<2x32xf32>, vector<32x96xf32>, vector<2x96xf32> -> vector<2x96xf32>
    %91 = vector.broadcast %9 : vector<1x96xf32> to vector<2x96xf32>
    %92 = arith.addf %90, %91 : vector<2x96xf32>
    %93 = vector.extract_strided_slice %56 {offsets = [14, 0], sizes = [2, 96], strides = [1, 1]} : vector<16x96xf32> to vector<2x96xf32>
    %94 = vector.extract_strided_slice %93 {offsets = [0, 0], sizes = [2, 32], strides = [1, 1]} : vector<2x96xf32> to vector<2x32xf32>
    %95 = vector.extract_strided_slice %92 {offsets = [0, 0], sizes = [2, 32], strides = [1, 1]} : vector<2x96xf32> to vector<2x32xf32>
    %96 = arith.addf %94, %95 : vector<2x32xf32>
    %97 = arith.negf %96 : vector<2x32xf32>
    %98 = math.exp %97 : vector<2x32xf32>
    %cst_72 = arith.constant 1.000000e+00 : f32
    %99 = vector.broadcast %cst_72 : f32 to vector<2x32xf32>
    %100 = arith.addf %99, %98 : vector<2x32xf32>
    %101 = arith.divf %99, %100 : vector<2x32xf32>
    %102 = vector.extract_strided_slice %93 {offsets = [0, 32], sizes = [2, 32], strides = [1, 1]} : vector<2x96xf32> to vector<2x32xf32>
    %103 = vector.extract_strided_slice %92 {offsets = [0, 32], sizes = [2, 32], strides = [1, 1]} : vector<2x96xf32> to vector<2x32xf32>
    %104 = arith.addf %102, %103 : vector<2x32xf32>
    %105 = arith.negf %104 : vector<2x32xf32>
    %106 = math.exp %105 : vector<2x32xf32>
    %cst_73 = arith.constant 1.000000e+00 : f32
    %107 = vector.broadcast %cst_73 : f32 to vector<2x32xf32>
    %108 = arith.addf %107, %106 : vector<2x32xf32>
    %109 = arith.divf %107, %108 : vector<2x32xf32>
    %110 = vector.extract_strided_slice %93 {offsets = [0, 64], sizes = [2, 32], strides = [1, 1]} : vector<2x96xf32> to vector<2x32xf32>
    %111 = vector.extract_strided_slice %92 {offsets = [0, 64], sizes = [2, 32], strides = [1, 1]} : vector<2x96xf32> to vector<2x32xf32>
    %112 = arith.mulf %101, %111 : vector<2x32xf32>
    %113 = arith.addf %110, %112 : vector<2x32xf32>
    %114 = math.tanh %113 : vector<2x32xf32>
    %cst_74 = arith.constant 1.000000e+00 : f32
    %115 = vector.broadcast %cst_74 : f32 to vector<2x32xf32>
    %116 = arith.subf %115, %109 : vector<2x32xf32>
    %117 = arith.mulf %116, %114 : vector<2x32xf32>
    %118 = arith.mulf %109, %58 : vector<2x32xf32>
    %119 = arith.addf %117, %118 : vector<2x32xf32>
    %c14 = arith.constant 14 : index
    %c0_75 = arith.constant 0 : index
    %120 = vector.load %arg31[%c14, %c0_75] : memref<16x32xf32, #tpu.memory_space<vmem>>, vector<2x32xf32>
    tpu.vector_store %arg31[%c14, %c0_75], %119 {strides = array<i32>} : memref<16x32xf32, #tpu.memory_space<vmem>>, vector<2x32xf32>,
    %cst_76 = arith.constant dense<0.000000e+00> : vector<2x96xf32>
    %121 = tpu.matmul %88, %3, %cst_76 {dimension_numbers = #tpu.dot_dimension_numbers<[1], [0], [0], [1], [0, 0, 1, 1], [], []>} : vector<2x32xf32>, vector<32x96xf32>, vector<2x96xf32> -> vector<2x96xf32>
    %122 = vector.broadcast %5 : vector<1x96xf32> to vector<2x96xf32>
    %123 = arith.addf %121, %122 : vector<2x96xf32>
    %124 = vector.extract_strided_slice %53 {offsets = [2, 0], sizes = [2, 96], strides = [1, 1]} : vector<16x96xf32> to vector<2x96xf32>
    %125 = vector.extract_strided_slice %124 {offsets = [0, 0], sizes = [2, 32], strides = [1, 1]} : vector<2x96xf32> to vector<2x32xf32>
    %126 = vector.extract_strided_slice %123 {offsets = [0, 0], sizes = [2, 32], strides = [1, 1]} : vector<2x96xf32> to vector<2x32xf32>
    %127 = arith.addf %125, %126 : vector<2x32xf32>
    %128 = arith.negf %127 : vector<2x32xf32>
    %129 = math.exp %128 : vector<2x32xf32>
    %cst_77 = arith.constant 1.000000e+00 : f32
    %130 = vector.broadcast %cst_77 : f32 to vector<2x32xf32>
    %131 = arith.addf %130, %129 : vector<2x32xf32>
    %132 = arith.divf %130, %131 : vector<2x32xf32>
    %133 = vector.extract_strided_slice %124 {offsets = [0, 32], sizes = [2, 32], strides = [1, 1]} : vector<2x96xf32> to vector<2x32xf32>
    %134 = vector.extract_strided_slice %123 {offsets = [0, 32], sizes = [2, 32], strides = [1, 1]} : vector<2x96xf32> to vector<2x32xf32>
    %135 = arith.addf %133, %134 : vector<2x32xf32>
    %136 = arith.negf %135 : vector<2x32xf32>
    %137 = math.exp %136 : vector<2x32xf32>
    %cst_78 = arith.constant 1.000000e+00 : f32
    %138 = vector.broadcast %cst_78 : f32 to vector<2x32xf32>
    %139 = arith.addf %138, %137 : vector<2x32xf32>
    %140 = arith.divf %138, %139 : vector<2x32xf32>
    %141 = vector.extract_strided_slice %124 {offsets = [0, 64], sizes = [2, 32], strides = [1, 1]} : vector<2x96xf32> to vector<2x32xf32>
    %142 = vector.extract_strided_slice %123 {offsets = [0, 64], sizes = [2, 32], strides = [1, 1]} : vector<2x96xf32> to vector<2x32xf32>
    %143 = arith.mulf %132, %142 : vector<2x32xf32>
    %144 = arith.addf %141, %143 : vector<2x32xf32>
    %145 = math.tanh %144 : vector<2x32xf32>
    %cst_79 = arith.constant 1.000000e+00 : f32
    %146 = vector.broadcast %cst_79 : f32 to vector<2x32xf32>
    %147 = arith.subf %146, %140 : vector<2x32xf32>
    %148 = arith.mulf %147, %145 : vector<2x32xf32>
    %149 = arith.mulf %140, %88 : vector<2x32xf32>
    %150 = arith.addf %148, %149 : vector<2x32xf32>
    %c2 = arith.constant 2 : index
    %c0_80 = arith.constant 0 : index
    %151 = vector.load %arg30[%c2, %c0_80] : memref<16x32xf32, #tpu.memory_space<vmem>>, vector<2x32xf32>
    tpu.vector_store %arg30[%c2, %c0_80], %150 {strides = array<i32>} : memref<16x32xf32, #tpu.memory_space<vmem>>, vector<2x32xf32>,
    %cst_81 = arith.constant dense<0.000000e+00> : vector<2x96xf32>
    %152 = tpu.matmul %119, %7, %cst_81 {dimension_numbers = #tpu.dot_dimension_numbers<[1], [0], [0], [1], [0, 0, 1, 1], [], []>} : vector<2x32xf32>, vector<32x96xf32>, vector<2x96xf32> -> vector<2x96xf32>
    %153 = vector.broadcast %9 : vector<1x96xf32> to vector<2x96xf32>
    %154 = arith.addf %152, %153 : vector<2x96xf32>
    %155 = vector.extract_strided_slice %56 {offsets = [12, 0], sizes = [2, 96], strides = [1, 1]} : vector<16x96xf32> to vector<2x96xf32>
    %156 = vector.extract_strided_slice %155 {offsets = [0, 0], sizes = [2, 32], strides = [1, 1]} : vector<2x96xf32> to vector<2x32xf32>
    %157 = vector.extract_strided_slice %154 {offsets = [0, 0], sizes = [2, 32], strides = [1, 1]} : vector<2x96xf32> to vector<2x32xf32>
    %158 = arith.addf %156, %157 : vector<2x32xf32>
    %159 = arith.negf %158 : vector<2x32xf32>
    %160 = math.exp %159 : vector<2x32xf32>
    %cst_82 = arith.constant 1.000000e+00 : f32
    %161 = vector.broadcast %cst_82 : f32 to vector<2x32xf32>
    %162 = arith.addf %161, %160 : vector<2x32xf32>
    %163 = arith.divf %161, %162 : vector<2x32xf32>
    %164 = vector.extract_strided_slice %155 {offsets = [0, 32], sizes = [2, 32], strides = [1, 1]} : vector<2x96xf32> to vector<2x32xf32>
    %165 = vector.extract_strided_slice %154 {offsets = [0, 32], sizes = [2, 32], strides = [1, 1]} : vector<2x96xf32> to vector<2x32xf32>
    %166 = arith.addf %164, %165 : vector<2x32xf32>
    %167 = arith.negf %166 : vector<2x32xf32>
    %168 = math.exp %167 : vector<2x32xf32>
    %cst_83 = arith.constant 1.000000e+00 : f32
    %169 = vector.broadcast %cst_83 : f32 to vector<2x32xf32>
    %170 = arith.addf %169, %168 : vector<2x32xf32>
    %171 = arith.divf %169, %170 : vector<2x32xf32>
    %172 = vector.extract_strided_slice %155 {offsets = [0, 64], sizes = [2, 32], strides = [1, 1]} : vector<2x96xf32> to vector<2x32xf32>
    %173 = vector.extract_strided_slice %154 {offsets = [0, 64], sizes = [2, 32], strides = [1, 1]} : vector<2x96xf32> to vector<2x32xf32>
    %174 = arith.mulf %163, %173 : vector<2x32xf32>
    %175 = arith.addf %172, %174 : vector<2x32xf32>
    %176 = math.tanh %175 : vector<2x32xf32>
    %cst_84 = arith.constant 1.000000e+00 : f32
    %177 = vector.broadcast %cst_84 : f32 to vector<2x32xf32>
    %178 = arith.subf %177, %171 : vector<2x32xf32>
    %179 = arith.mulf %178, %176 : vector<2x32xf32>
    %180 = arith.mulf %171, %119 : vector<2x32xf32>
    %181 = arith.addf %179, %180 : vector<2x32xf32>
    %c12 = arith.constant 12 : index
    %c0_85 = arith.constant 0 : index
    %182 = vector.load %arg31[%c12, %c0_85] : memref<16x32xf32, #tpu.memory_space<vmem>>, vector<2x32xf32>
    tpu.vector_store %arg31[%c12, %c0_85], %181 {strides = array<i32>} : memref<16x32xf32, #tpu.memory_space<vmem>>, vector<2x32xf32>,
    %cst_86 = arith.constant dense<0.000000e+00> : vector<2x96xf32>
    %183 = tpu.matmul %150, %3, %cst_86 {dimension_numbers = #tpu.dot_dimension_numbers<[1], [0], [0], [1], [0, 0, 1, 1], [], []>} : vector<2x32xf32>, vector<32x96xf32>, vector<2x96xf32> -> vector<2x96xf32>
    %184 = vector.broadcast %5 : vector<1x96xf32> to vector<2x96xf32>
    %185 = arith.addf %183, %184 : vector<2x96xf32>
    %186 = vector.extract_strided_slice %53 {offsets = [4, 0], sizes = [2, 96], strides = [1, 1]} : vector<16x96xf32> to vector<2x96xf32>
    %187 = vector.extract_strided_slice %186 {offsets = [0, 0], sizes = [2, 32], strides = [1, 1]} : vector<2x96xf32> to vector<2x32xf32>
    %188 = vector.extract_strided_slice %185 {offsets = [0, 0], sizes = [2, 32], strides = [1, 1]} : vector<2x96xf32> to vector<2x32xf32>
    %189 = arith.addf %187, %188 : vector<2x32xf32>
    %190 = arith.negf %189 : vector<2x32xf32>
    %191 = math.exp %190 : vector<2x32xf32>
    %cst_87 = arith.constant 1.000000e+00 : f32
    %192 = vector.broadcast %cst_87 : f32 to vector<2x32xf32>
    %193 = arith.addf %192, %191 : vector<2x32xf32>
    %194 = arith.divf %192, %193 : vector<2x32xf32>
    %195 = vector.extract_strided_slice %186 {offsets = [0, 32], sizes = [2, 32], strides = [1, 1]} : vector<2x96xf32> to vector<2x32xf32>
    %196 = vector.extract_strided_slice %185 {offsets = [0, 32], sizes = [2, 32], strides = [1, 1]} : vector<2x96xf32> to vector<2x32xf32>
    %197 = arith.addf %195, %196 : vector<2x32xf32>
    %198 = arith.negf %197 : vector<2x32xf32>
    %199 = math.exp %198 : vector<2x32xf32>
    %cst_88 = arith.constant 1.000000e+00 : f32
    %200 = vector.broadcast %cst_88 : f32 to vector<2x32xf32>
    %201 = arith.addf %200, %199 : vector<2x32xf32>
    %202 = arith.divf %200, %201 : vector<2x32xf32>
    %203 = vector.extract_strided_slice %186 {offsets = [0, 64], sizes = [2, 32], strides = [1, 1]} : vector<2x96xf32> to vector<2x32xf32>
    %204 = vector.extract_strided_slice %185 {offsets = [0, 64], sizes = [2, 32], strides = [1, 1]} : vector<2x96xf32> to vector<2x32xf32>
    %205 = arith.mulf %194, %204 : vector<2x32xf32>
    %206 = arith.addf %203, %205 : vector<2x32xf32>
    %207 = math.tanh %206 : vector<2x32xf32>
    %cst_89 = arith.constant 1.000000e+00 : f32
    %208 = vector.broadcast %cst_89 : f32 to vector<2x32xf32>
    %209 = arith.subf %208, %202 : vector<2x32xf32>
    %210 = arith.mulf %209, %207 : vector<2x32xf32>
    %211 = arith.mulf %202, %150 : vector<2x32xf32>
    %212 = arith.addf %210, %211 : vector<2x32xf32>
    %c4 = arith.constant 4 : index
    %c0_90 = arith.constant 0 : index
    %213 = vector.load %arg30[%c4, %c0_90] : memref<16x32xf32, #tpu.memory_space<vmem>>, vector<2x32xf32>
    tpu.vector_store %arg30[%c4, %c0_90], %212 {strides = array<i32>} : memref<16x32xf32, #tpu.memory_space<vmem>>, vector<2x32xf32>,
    %cst_91 = arith.constant dense<0.000000e+00> : vector<2x96xf32>
    %214 = tpu.matmul %181, %7, %cst_91 {dimension_numbers = #tpu.dot_dimension_numbers<[1], [0], [0], [1], [0, 0, 1, 1], [], []>} : vector<2x32xf32>, vector<32x96xf32>, vector<2x96xf32> -> vector<2x96xf32>
    %215 = vector.broadcast %9 : vector<1x96xf32> to vector<2x96xf32>
    %216 = arith.addf %214, %215 : vector<2x96xf32>
    %217 = vector.extract_strided_slice %56 {offsets = [10, 0], sizes = [2, 96], strides = [1, 1]} : vector<16x96xf32> to vector<2x96xf32>
    %218 = vector.extract_strided_slice %217 {offsets = [0, 0], sizes = [2, 32], strides = [1, 1]} : vector<2x96xf32> to vector<2x32xf32>
    %219 = vector.extract_strided_slice %216 {offsets = [0, 0], sizes = [2, 32], strides = [1, 1]} : vector<2x96xf32> to vector<2x32xf32>
    %220 = arith.addf %218, %219 : vector<2x32xf32>
    %221 = arith.negf %220 : vector<2x32xf32>
    %222 = math.exp %221 : vector<2x32xf32>
    %cst_92 = arith.constant 1.000000e+00 : f32
    %223 = vector.broadcast %cst_92 : f32 to vector<2x32xf32>
    %224 = arith.addf %223, %222 : vector<2x32xf32>
    %225 = arith.divf %223, %224 : vector<2x32xf32>
    %226 = vector.extract_strided_slice %217 {offsets = [0, 32], sizes = [2, 32], strides = [1, 1]} : vector<2x96xf32> to vector<2x32xf32>
    %227 = vector.extract_strided_slice %216 {offsets = [0, 32], sizes = [2, 32], strides = [1, 1]} : vector<2x96xf32> to vector<2x32xf32>
    %228 = arith.addf %226, %227 : vector<2x32xf32>
    %229 = arith.negf %228 : vector<2x32xf32>
    %230 = math.exp %229 : vector<2x32xf32>
    %cst_93 = arith.constant 1.000000e+00 : f32
    %231 = vector.broadcast %cst_93 : f32 to vector<2x32xf32>
    %232 = arith.addf %231, %230 : vector<2x32xf32>
    %233 = arith.divf %231, %232 : vector<2x32xf32>
    %234 = vector.extract_strided_slice %217 {offsets = [0, 64], sizes = [2, 32], strides = [1, 1]} : vector<2x96xf32> to vector<2x32xf32>
    %235 = vector.extract_strided_slice %216 {offsets = [0, 64], sizes = [2, 32], strides = [1, 1]} : vector<2x96xf32> to vector<2x32xf32>
    %236 = arith.mulf %225, %235 : vector<2x32xf32>
    %237 = arith.addf %234, %236 : vector<2x32xf32>
    %238 = math.tanh %237 : vector<2x32xf32>
    %cst_94 = arith.constant 1.000000e+00 : f32
    %239 = vector.broadcast %cst_94 : f32 to vector<2x32xf32>
    %240 = arith.subf %239, %233 : vector<2x32xf32>
    %241 = arith.mulf %240, %238 : vector<2x32xf32>
    %242 = arith.mulf %233, %181 : vector<2x32xf32>
    %243 = arith.addf %241, %242 : vector<2x32xf32>
    %c10 = arith.constant 10 : index
    %c0_95 = arith.constant 0 : index
    %244 = vector.load %arg31[%c10, %c0_95] : memref<16x32xf32, #tpu.memory_space<vmem>>, vector<2x32xf32>
    tpu.vector_store %arg31[%c10, %c0_95], %243 {strides = array<i32>} : memref<16x32xf32, #tpu.memory_space<vmem>>, vector<2x32xf32>,
    %cst_96 = arith.constant dense<0.000000e+00> : vector<2x96xf32>
    %245 = tpu.matmul %212, %3, %cst_96 {dimension_numbers = #tpu.dot_dimension_numbers<[1], [0], [0], [1], [0, 0, 1, 1], [], []>} : vector<2x32xf32>, vector<32x96xf32>, vector<2x96xf32> -> vector<2x96xf32>
    %246 = vector.broadcast %5 : vector<1x96xf32> to vector<2x96xf32>
    %247 = arith.addf %245, %246 : vector<2x96xf32>
    %248 = vector.extract_strided_slice %53 {offsets = [6, 0], sizes = [2, 96], strides = [1, 1]} : vector<16x96xf32> to vector<2x96xf32>
    %249 = vector.extract_strided_slice %248 {offsets = [0, 0], sizes = [2, 32], strides = [1, 1]} : vector<2x96xf32> to vector<2x32xf32>
    %250 = vector.extract_strided_slice %247 {offsets = [0, 0], sizes = [2, 32], strides = [1, 1]} : vector<2x96xf32> to vector<2x32xf32>
    %251 = arith.addf %249, %250 : vector<2x32xf32>
    %252 = arith.negf %251 : vector<2x32xf32>
    %253 = math.exp %252 : vector<2x32xf32>
    %cst_97 = arith.constant 1.000000e+00 : f32
    %254 = vector.broadcast %cst_97 : f32 to vector<2x32xf32>
    %255 = arith.addf %254, %253 : vector<2x32xf32>
    %256 = arith.divf %254, %255 : vector<2x32xf32>
    %257 = vector.extract_strided_slice %248 {offsets = [0, 32], sizes = [2, 32], strides = [1, 1]} : vector<2x96xf32> to vector<2x32xf32>
    %258 = vector.extract_strided_slice %247 {offsets = [0, 32], sizes = [2, 32], strides = [1, 1]} : vector<2x96xf32> to vector<2x32xf32>
    %259 = arith.addf %257, %258 : vector<2x32xf32>
    %260 = arith.negf %259 : vector<2x32xf32>
    %261 = math.exp %260 : vector<2x32xf32>
    %cst_98 = arith.constant 1.000000e+00 : f32
    %262 = vector.broadcast %cst_98 : f32 to vector<2x32xf32>
    %263 = arith.addf %262, %261 : vector<2x32xf32>
    %264 = arith.divf %262, %263 : vector<2x32xf32>
    %265 = vector.extract_strided_slice %248 {offsets = [0, 64], sizes = [2, 32], strides = [1, 1]} : vector<2x96xf32> to vector<2x32xf32>
    %266 = vector.extract_strided_slice %247 {offsets = [0, 64], sizes = [2, 32], strides = [1, 1]} : vector<2x96xf32> to vector<2x32xf32>
    %267 = arith.mulf %256, %266 : vector<2x32xf32>
    %268 = arith.addf %265, %267 : vector<2x32xf32>
    %269 = math.tanh %268 : vector<2x32xf32>
    %cst_99 = arith.constant 1.000000e+00 : f32
    %270 = vector.broadcast %cst_99 : f32 to vector<2x32xf32>
    %271 = arith.subf %270, %264 : vector<2x32xf32>
    %272 = arith.mulf %271, %269 : vector<2x32xf32>
    %273 = arith.mulf %264, %212 : vector<2x32xf32>
    %274 = arith.addf %272, %273 : vector<2x32xf32>
    %c6 = arith.constant 6 : index
    %c0_100 = arith.constant 0 : index
    %275 = vector.load %arg30[%c6, %c0_100] : memref<16x32xf32, #tpu.memory_space<vmem>>, vector<2x32xf32>
    tpu.vector_store %arg30[%c6, %c0_100], %274 {strides = array<i32>} : memref<16x32xf32, #tpu.memory_space<vmem>>, vector<2x32xf32>,
    %cst_101 = arith.constant dense<0.000000e+00> : vector<2x96xf32>
    %276 = tpu.matmul %243, %7, %cst_101 {dimension_numbers = #tpu.dot_dimension_numbers<[1], [0], [0], [1], [0, 0, 1, 1], [], []>} : vector<2x32xf32>, vector<32x96xf32>, vector<2x96xf32> -> vector<2x96xf32>
    %277 = vector.broadcast %9 : vector<1x96xf32> to vector<2x96xf32>
    %278 = arith.addf %276, %277 : vector<2x96xf32>
    %279 = vector.extract_strided_slice %56 {offsets = [8, 0], sizes = [2, 96], strides = [1, 1]} : vector<16x96xf32> to vector<2x96xf32>
    %280 = vector.extract_strided_slice %279 {offsets = [0, 0], sizes = [2, 32], strides = [1, 1]} : vector<2x96xf32> to vector<2x32xf32>
    %281 = vector.extract_strided_slice %278 {offsets = [0, 0], sizes = [2, 32], strides = [1, 1]} : vector<2x96xf32> to vector<2x32xf32>
    %282 = arith.addf %280, %281 : vector<2x32xf32>
    %283 = arith.negf %282 : vector<2x32xf32>
    %284 = math.exp %283 : vector<2x32xf32>
    %cst_102 = arith.constant 1.000000e+00 : f32
    %285 = vector.broadcast %cst_102 : f32 to vector<2x32xf32>
    %286 = arith.addf %285, %284 : vector<2x32xf32>
    %287 = arith.divf %285, %286 : vector<2x32xf32>
    %288 = vector.extract_strided_slice %279 {offsets = [0, 32], sizes = [2, 32], strides = [1, 1]} : vector<2x96xf32> to vector<2x32xf32>
    %289 = vector.extract_strided_slice %278 {offsets = [0, 32], sizes = [2, 32], strides = [1, 1]} : vector<2x96xf32> to vector<2x32xf32>
    %290 = arith.addf %288, %289 : vector<2x32xf32>
    %291 = arith.negf %290 : vector<2x32xf32>
    %292 = math.exp %291 : vector<2x32xf32>
    %cst_103 = arith.constant 1.000000e+00 : f32
    %293 = vector.broadcast %cst_103 : f32 to vector<2x32xf32>
    %294 = arith.addf %293, %292 : vector<2x32xf32>
    %295 = arith.divf %293, %294 : vector<2x32xf32>
    %296 = vector.extract_strided_slice %279 {offsets = [0, 64], sizes = [2, 32], strides = [1, 1]} : vector<2x96xf32> to vector<2x32xf32>
    %297 = vector.extract_strided_slice %278 {offsets = [0, 64], sizes = [2, 32], strides = [1, 1]} : vector<2x96xf32> to vector<2x32xf32>
    %298 = arith.mulf %287, %297 : vector<2x32xf32>
    %299 = arith.addf %296, %298 : vector<2x32xf32>
    %300 = math.tanh %299 : vector<2x32xf32>
    %cst_104 = arith.constant 1.000000e+00 : f32
    %301 = vector.broadcast %cst_104 : f32 to vector<2x32xf32>
    %302 = arith.subf %301, %295 : vector<2x32xf32>
    %303 = arith.mulf %302, %300 : vector<2x32xf32>
    %304 = arith.mulf %295, %243 : vector<2x32xf32>
    %305 = arith.addf %303, %304 : vector<2x32xf32>
    %c8 = arith.constant 8 : index
    %c0_105 = arith.constant 0 : index
    %306 = vector.load %arg31[%c8, %c0_105] : memref<16x32xf32, #tpu.memory_space<vmem>>, vector<2x32xf32>
    tpu.vector_store %arg31[%c8, %c0_105], %305 {strides = array<i32>} : memref<16x32xf32, #tpu.memory_space<vmem>>, vector<2x32xf32>,
    %cst_106 = arith.constant dense<0.000000e+00> : vector<2x96xf32>
    %307 = tpu.matmul %274, %3, %cst_106 {dimension_numbers = #tpu.dot_dimension_numbers<[1], [0], [0], [1], [0, 0, 1, 1], [], []>} : vector<2x32xf32>, vector<32x96xf32>, vector<2x96xf32> -> vector<2x96xf32>
    %308 = vector.broadcast %5 : vector<1x96xf32> to vector<2x96xf32>
    %309 = arith.addf %307, %308 : vector<2x96xf32>
    %310 = vector.extract_strided_slice %53 {offsets = [8, 0], sizes = [2, 96], strides = [1, 1]} : vector<16x96xf32> to vector<2x96xf32>
    %311 = vector.extract_strided_slice %310 {offsets = [0, 0], sizes = [2, 32], strides = [1, 1]} : vector<2x96xf32> to vector<2x32xf32>
    %312 = vector.extract_strided_slice %309 {offsets = [0, 0], sizes = [2, 32], strides = [1, 1]} : vector<2x96xf32> to vector<2x32xf32>
    %313 = arith.addf %311, %312 : vector<2x32xf32>
    %314 = arith.negf %313 : vector<2x32xf32>
    %315 = math.exp %314 : vector<2x32xf32>
    %cst_107 = arith.constant 1.000000e+00 : f32
    %316 = vector.broadcast %cst_107 : f32 to vector<2x32xf32>
    %317 = arith.addf %316, %315 : vector<2x32xf32>
    %318 = arith.divf %316, %317 : vector<2x32xf32>
    %319 = vector.extract_strided_slice %310 {offsets = [0, 32], sizes = [2, 32], strides = [1, 1]} : vector<2x96xf32> to vector<2x32xf32>
    %320 = vector.extract_strided_slice %309 {offsets = [0, 32], sizes = [2, 32], strides = [1, 1]} : vector<2x96xf32> to vector<2x32xf32>
    %321 = arith.addf %319, %320 : vector<2x32xf32>
    %322 = arith.negf %321 : vector<2x32xf32>
    %323 = math.exp %322 : vector<2x32xf32>
    %cst_108 = arith.constant 1.000000e+00 : f32
    %324 = vector.broadcast %cst_108 : f32 to vector<2x32xf32>
    %325 = arith.addf %324, %323 : vector<2x32xf32>
    %326 = arith.divf %324, %325 : vector<2x32xf32>
    %327 = vector.extract_strided_slice %310 {offsets = [0, 64], sizes = [2, 32], strides = [1, 1]} : vector<2x96xf32> to vector<2x32xf32>
    %328 = vector.extract_strided_slice %309 {offsets = [0, 64], sizes = [2, 32], strides = [1, 1]} : vector<2x96xf32> to vector<2x32xf32>
    %329 = arith.mulf %318, %328 : vector<2x32xf32>
    %330 = arith.addf %327, %329 : vector<2x32xf32>
    %331 = math.tanh %330 : vector<2x32xf32>
    %cst_109 = arith.constant 1.000000e+00 : f32
    %332 = vector.broadcast %cst_109 : f32 to vector<2x32xf32>
    %333 = arith.subf %332, %326 : vector<2x32xf32>
    %334 = arith.mulf %333, %331 : vector<2x32xf32>
    %335 = arith.mulf %326, %274 : vector<2x32xf32>
    %336 = arith.addf %334, %335 : vector<2x32xf32>
    %c8_110 = arith.constant 8 : index
    %c0_111 = arith.constant 0 : index
    %337 = vector.load %arg30[%c8_110, %c0_111] : memref<16x32xf32, #tpu.memory_space<vmem>>, vector<2x32xf32>
    tpu.vector_store %arg30[%c8_110, %c0_111], %336 {strides = array<i32>} : memref<16x32xf32, #tpu.memory_space<vmem>>, vector<2x32xf32>,
    %cst_112 = arith.constant dense<0.000000e+00> : vector<2x96xf32>
    %338 = tpu.matmul %305, %7, %cst_112 {dimension_numbers = #tpu.dot_dimension_numbers<[1], [0], [0], [1], [0, 0, 1, 1], [], []>} : vector<2x32xf32>, vector<32x96xf32>, vector<2x96xf32> -> vector<2x96xf32>
    %339 = vector.broadcast %9 : vector<1x96xf32> to vector<2x96xf32>
    %340 = arith.addf %338, %339 : vector<2x96xf32>
    %341 = vector.extract_strided_slice %56 {offsets = [6, 0], sizes = [2, 96], strides = [1, 1]} : vector<16x96xf32> to vector<2x96xf32>
    %342 = vector.extract_strided_slice %341 {offsets = [0, 0], sizes = [2, 32], strides = [1, 1]} : vector<2x96xf32> to vector<2x32xf32>
    %343 = vector.extract_strided_slice %340 {offsets = [0, 0], sizes = [2, 32], strides = [1, 1]} : vector<2x96xf32> to vector<2x32xf32>
    %344 = arith.addf %342, %343 : vector<2x32xf32>
    %345 = arith.negf %344 : vector<2x32xf32>
    %346 = math.exp %345 : vector<2x32xf32>
    %cst_113 = arith.constant 1.000000e+00 : f32
    %347 = vector.broadcast %cst_113 : f32 to vector<2x32xf32>
    %348 = arith.addf %347, %346 : vector<2x32xf32>
    %349 = arith.divf %347, %348 : vector<2x32xf32>
    %350 = vector.extract_strided_slice %341 {offsets = [0, 32], sizes = [2, 32], strides = [1, 1]} : vector<2x96xf32> to vector<2x32xf32>
    %351 = vector.extract_strided_slice %340 {offsets = [0, 32], sizes = [2, 32], strides = [1, 1]} : vector<2x96xf32> to vector<2x32xf32>
    %352 = arith.addf %350, %351 : vector<2x32xf32>
    %353 = arith.negf %352 : vector<2x32xf32>
    %354 = math.exp %353 : vector<2x32xf32>
    %cst_114 = arith.constant 1.000000e+00 : f32
    %355 = vector.broadcast %cst_114 : f32 to vector<2x32xf32>
    %356 = arith.addf %355, %354 : vector<2x32xf32>
    %357 = arith.divf %355, %356 : vector<2x32xf32>
    %358 = vector.extract_strided_slice %341 {offsets = [0, 64], sizes = [2, 32], strides = [1, 1]} : vector<2x96xf32> to vector<2x32xf32>
    %359 = vector.extract_strided_slice %340 {offsets = [0, 64], sizes = [2, 32], strides = [1, 1]} : vector<2x96xf32> to vector<2x32xf32>
    %360 = arith.mulf %349, %359 : vector<2x32xf32>
    %361 = arith.addf %358, %360 : vector<2x32xf32>
    %362 = math.tanh %361 : vector<2x32xf32>
    %cst_115 = arith.constant 1.000000e+00 : f32
    %363 = vector.broadcast %cst_115 : f32 to vector<2x32xf32>
    %364 = arith.subf %363, %357 : vector<2x32xf32>
    %365 = arith.mulf %364, %362 : vector<2x32xf32>
    %366 = arith.mulf %357, %305 : vector<2x32xf32>
    %367 = arith.addf %365, %366 : vector<2x32xf32>
    %c6_116 = arith.constant 6 : index
    %c0_117 = arith.constant 0 : index
    %368 = vector.load %arg31[%c6_116, %c0_117] : memref<16x32xf32, #tpu.memory_space<vmem>>, vector<2x32xf32>
    tpu.vector_store %arg31[%c6_116, %c0_117], %367 {strides = array<i32>} : memref<16x32xf32, #tpu.memory_space<vmem>>, vector<2x32xf32>,
    %cst_118 = arith.constant dense<0.000000e+00> : vector<2x96xf32>
    %369 = tpu.matmul %336, %3, %cst_118 {dimension_numbers = #tpu.dot_dimension_numbers<[1], [0], [0], [1], [0, 0, 1, 1], [], []>} : vector<2x32xf32>, vector<32x96xf32>, vector<2x96xf32> -> vector<2x96xf32>
    %370 = vector.broadcast %5 : vector<1x96xf32> to vector<2x96xf32>
    %371 = arith.addf %369, %370 : vector<2x96xf32>
    %372 = vector.extract_strided_slice %53 {offsets = [10, 0], sizes = [2, 96], strides = [1, 1]} : vector<16x96xf32> to vector<2x96xf32>
    %373 = vector.extract_strided_slice %372 {offsets = [0, 0], sizes = [2, 32], strides = [1, 1]} : vector<2x96xf32> to vector<2x32xf32>
    %374 = vector.extract_strided_slice %371 {offsets = [0, 0], sizes = [2, 32], strides = [1, 1]} : vector<2x96xf32> to vector<2x32xf32>
    %375 = arith.addf %373, %374 : vector<2x32xf32>
    %376 = arith.negf %375 : vector<2x32xf32>
    %377 = math.exp %376 : vector<2x32xf32>
    %cst_119 = arith.constant 1.000000e+00 : f32
    %378 = vector.broadcast %cst_119 : f32 to vector<2x32xf32>
    %379 = arith.addf %378, %377 : vector<2x32xf32>
    %380 = arith.divf %378, %379 : vector<2x32xf32>
    %381 = vector.extract_strided_slice %372 {offsets = [0, 32], sizes = [2, 32], strides = [1, 1]} : vector<2x96xf32> to vector<2x32xf32>
    %382 = vector.extract_strided_slice %371 {offsets = [0, 32], sizes = [2, 32], strides = [1, 1]} : vector<2x96xf32> to vector<2x32xf32>
    %383 = arith.addf %381, %382 : vector<2x32xf32>
    %384 = arith.negf %383 : vector<2x32xf32>
    %385 = math.exp %384 : vector<2x32xf32>
    %cst_120 = arith.constant 1.000000e+00 : f32
    %386 = vector.broadcast %cst_120 : f32 to vector<2x32xf32>
    %387 = arith.addf %386, %385 : vector<2x32xf32>
    %388 = arith.divf %386, %387 : vector<2x32xf32>
    %389 = vector.extract_strided_slice %372 {offsets = [0, 64], sizes = [2, 32], strides = [1, 1]} : vector<2x96xf32> to vector<2x32xf32>
    %390 = vector.extract_strided_slice %371 {offsets = [0, 64], sizes = [2, 32], strides = [1, 1]} : vector<2x96xf32> to vector<2x32xf32>
    %391 = arith.mulf %380, %390 : vector<2x32xf32>
    %392 = arith.addf %389, %391 : vector<2x32xf32>
    %393 = math.tanh %392 : vector<2x32xf32>
    %cst_121 = arith.constant 1.000000e+00 : f32
    %394 = vector.broadcast %cst_121 : f32 to vector<2x32xf32>
    %395 = arith.subf %394, %388 : vector<2x32xf32>
    %396 = arith.mulf %395, %393 : vector<2x32xf32>
    %397 = arith.mulf %388, %336 : vector<2x32xf32>
    %398 = arith.addf %396, %397 : vector<2x32xf32>
    %c10_122 = arith.constant 10 : index
    %c0_123 = arith.constant 0 : index
    %399 = vector.load %arg30[%c10_122, %c0_123] : memref<16x32xf32, #tpu.memory_space<vmem>>, vector<2x32xf32>
    tpu.vector_store %arg30[%c10_122, %c0_123], %398 {strides = array<i32>} : memref<16x32xf32, #tpu.memory_space<vmem>>, vector<2x32xf32>,
    %cst_124 = arith.constant dense<0.000000e+00> : vector<2x96xf32>
    %400 = tpu.matmul %367, %7, %cst_124 {dimension_numbers = #tpu.dot_dimension_numbers<[1], [0], [0], [1], [0, 0, 1, 1], [], []>} : vector<2x32xf32>, vector<32x96xf32>, vector<2x96xf32> -> vector<2x96xf32>
    %401 = vector.broadcast %9 : vector<1x96xf32> to vector<2x96xf32>
    %402 = arith.addf %400, %401 : vector<2x96xf32>
    %403 = vector.extract_strided_slice %56 {offsets = [4, 0], sizes = [2, 96], strides = [1, 1]} : vector<16x96xf32> to vector<2x96xf32>
    %404 = vector.extract_strided_slice %403 {offsets = [0, 0], sizes = [2, 32], strides = [1, 1]} : vector<2x96xf32> to vector<2x32xf32>
    %405 = vector.extract_strided_slice %402 {offsets = [0, 0], sizes = [2, 32], strides = [1, 1]} : vector<2x96xf32> to vector<2x32xf32>
    %406 = arith.addf %404, %405 : vector<2x32xf32>
    %407 = arith.negf %406 : vector<2x32xf32>
    %408 = math.exp %407 : vector<2x32xf32>
    %cst_125 = arith.constant 1.000000e+00 : f32
    %409 = vector.broadcast %cst_125 : f32 to vector<2x32xf32>
    %410 = arith.addf %409, %408 : vector<2x32xf32>
    %411 = arith.divf %409, %410 : vector<2x32xf32>
    %412 = vector.extract_strided_slice %403 {offsets = [0, 32], sizes = [2, 32], strides = [1, 1]} : vector<2x96xf32> to vector<2x32xf32>
    %413 = vector.extract_strided_slice %402 {offsets = [0, 32], sizes = [2, 32], strides = [1, 1]} : vector<2x96xf32> to vector<2x32xf32>
    %414 = arith.addf %412, %413 : vector<2x32xf32>
    %415 = arith.negf %414 : vector<2x32xf32>
    %416 = math.exp %415 : vector<2x32xf32>
    %cst_126 = arith.constant 1.000000e+00 : f32
    %417 = vector.broadcast %cst_126 : f32 to vector<2x32xf32>
    %418 = arith.addf %417, %416 : vector<2x32xf32>
    %419 = arith.divf %417, %418 : vector<2x32xf32>
    %420 = vector.extract_strided_slice %403 {offsets = [0, 64], sizes = [2, 32], strides = [1, 1]} : vector<2x96xf32> to vector<2x32xf32>
    %421 = vector.extract_strided_slice %402 {offsets = [0, 64], sizes = [2, 32], strides = [1, 1]} : vector<2x96xf32> to vector<2x32xf32>
    %422 = arith.mulf %411, %421 : vector<2x32xf32>
    %423 = arith.addf %420, %422 : vector<2x32xf32>
    %424 = math.tanh %423 : vector<2x32xf32>
    %cst_127 = arith.constant 1.000000e+00 : f32
    %425 = vector.broadcast %cst_127 : f32 to vector<2x32xf32>
    %426 = arith.subf %425, %419 : vector<2x32xf32>
    %427 = arith.mulf %426, %424 : vector<2x32xf32>
    %428 = arith.mulf %419, %367 : vector<2x32xf32>
    %429 = arith.addf %427, %428 : vector<2x32xf32>
    %c4_128 = arith.constant 4 : index
    %c0_129 = arith.constant 0 : index
    %430 = vector.load %arg31[%c4_128, %c0_129] : memref<16x32xf32, #tpu.memory_space<vmem>>, vector<2x32xf32>
    tpu.vector_store %arg31[%c4_128, %c0_129], %429 {strides = array<i32>} : memref<16x32xf32, #tpu.memory_space<vmem>>, vector<2x32xf32>,
    %cst_130 = arith.constant dense<0.000000e+00> : vector<2x96xf32>
    %431 = tpu.matmul %398, %3, %cst_130 {dimension_numbers = #tpu.dot_dimension_numbers<[1], [0], [0], [1], [0, 0, 1, 1], [], []>} : vector<2x32xf32>, vector<32x96xf32>, vector<2x96xf32> -> vector<2x96xf32>
    %432 = vector.broadcast %5 : vector<1x96xf32> to vector<2x96xf32>
    %433 = arith.addf %431, %432 : vector<2x96xf32>
    %434 = vector.extract_strided_slice %53 {offsets = [12, 0], sizes = [2, 96], strides = [1, 1]} : vector<16x96xf32> to vector<2x96xf32>
    %435 = vector.extract_strided_slice %434 {offsets = [0, 0], sizes = [2, 32], strides = [1, 1]} : vector<2x96xf32> to vector<2x32xf32>
    %436 = vector.extract_strided_slice %433 {offsets = [0, 0], sizes = [2, 32], strides = [1, 1]} : vector<2x96xf32> to vector<2x32xf32>
    %437 = arith.addf %435, %436 : vector<2x32xf32>
    %438 = arith.negf %437 : vector<2x32xf32>
    %439 = math.exp %438 : vector<2x32xf32>
    %cst_131 = arith.constant 1.000000e+00 : f32
    %440 = vector.broadcast %cst_131 : f32 to vector<2x32xf32>
    %441 = arith.addf %440, %439 : vector<2x32xf32>
    %442 = arith.divf %440, %441 : vector<2x32xf32>
    %443 = vector.extract_strided_slice %434 {offsets = [0, 32], sizes = [2, 32], strides = [1, 1]} : vector<2x96xf32> to vector<2x32xf32>
    %444 = vector.extract_strided_slice %433 {offsets = [0, 32], sizes = [2, 32], strides = [1, 1]} : vector<2x96xf32> to vector<2x32xf32>
    %445 = arith.addf %443, %444 : vector<2x32xf32>
    %446 = arith.negf %445 : vector<2x32xf32>
    %447 = math.exp %446 : vector<2x32xf32>
    %cst_132 = arith.constant 1.000000e+00 : f32
    %448 = vector.broadcast %cst_132 : f32 to vector<2x32xf32>
    %449 = arith.addf %448, %447 : vector<2x32xf32>
    %450 = arith.divf %448, %449 : vector<2x32xf32>
    %451 = vector.extract_strided_slice %434 {offsets = [0, 64], sizes = [2, 32], strides = [1, 1]} : vector<2x96xf32> to vector<2x32xf32>
    %452 = vector.extract_strided_slice %433 {offsets = [0, 64], sizes = [2, 32], strides = [1, 1]} : vector<2x96xf32> to vector<2x32xf32>
    %453 = arith.mulf %442, %452 : vector<2x32xf32>
    %454 = arith.addf %451, %453 : vector<2x32xf32>
    %455 = math.tanh %454 : vector<2x32xf32>
    %cst_133 = arith.constant 1.000000e+00 : f32
    %456 = vector.broadcast %cst_133 : f32 to vector<2x32xf32>
    %457 = arith.subf %456, %450 : vector<2x32xf32>
    %458 = arith.mulf %457, %455 : vector<2x32xf32>
    %459 = arith.mulf %450, %398 : vector<2x32xf32>
    %460 = arith.addf %458, %459 : vector<2x32xf32>
    %c12_134 = arith.constant 12 : index
    %c0_135 = arith.constant 0 : index
    %461 = vector.load %arg30[%c12_134, %c0_135] : memref<16x32xf32, #tpu.memory_space<vmem>>, vector<2x32xf32>
    tpu.vector_store %arg30[%c12_134, %c0_135], %460 {strides = array<i32>} : memref<16x32xf32, #tpu.memory_space<vmem>>, vector<2x32xf32>,
    %cst_136 = arith.constant dense<0.000000e+00> : vector<2x96xf32>
    %462 = tpu.matmul %429, %7, %cst_136 {dimension_numbers = #tpu.dot_dimension_numbers<[1], [0], [0], [1], [0, 0, 1, 1], [], []>} : vector<2x32xf32>, vector<32x96xf32>, vector<2x96xf32> -> vector<2x96xf32>
    %463 = vector.broadcast %9 : vector<1x96xf32> to vector<2x96xf32>
    %464 = arith.addf %462, %463 : vector<2x96xf32>
    %465 = vector.extract_strided_slice %56 {offsets = [2, 0], sizes = [2, 96], strides = [1, 1]} : vector<16x96xf32> to vector<2x96xf32>
    %466 = vector.extract_strided_slice %465 {offsets = [0, 0], sizes = [2, 32], strides = [1, 1]} : vector<2x96xf32> to vector<2x32xf32>
    %467 = vector.extract_strided_slice %464 {offsets = [0, 0], sizes = [2, 32], strides = [1, 1]} : vector<2x96xf32> to vector<2x32xf32>
    %468 = arith.addf %466, %467 : vector<2x32xf32>
    %469 = arith.negf %468 : vector<2x32xf32>
    %470 = math.exp %469 : vector<2x32xf32>
    %cst_137 = arith.constant 1.000000e+00 : f32
    %471 = vector.broadcast %cst_137 : f32 to vector<2x32xf32>
    %472 = arith.addf %471, %470 : vector<2x32xf32>
    %473 = arith.divf %471, %472 : vector<2x32xf32>
    %474 = vector.extract_strided_slice %465 {offsets = [0, 32], sizes = [2, 32], strides = [1, 1]} : vector<2x96xf32> to vector<2x32xf32>
    %475 = vector.extract_strided_slice %464 {offsets = [0, 32], sizes = [2, 32], strides = [1, 1]} : vector<2x96xf32> to vector<2x32xf32>
    %476 = arith.addf %474, %475 : vector<2x32xf32>
    %477 = arith.negf %476 : vector<2x32xf32>
    %478 = math.exp %477 : vector<2x32xf32>
    %cst_138 = arith.constant 1.000000e+00 : f32
    %479 = vector.broadcast %cst_138 : f32 to vector<2x32xf32>
    %480 = arith.addf %479, %478 : vector<2x32xf32>
    %481 = arith.divf %479, %480 : vector<2x32xf32>
    %482 = vector.extract_strided_slice %465 {offsets = [0, 64], sizes = [2, 32], strides = [1, 1]} : vector<2x96xf32> to vector<2x32xf32>
    %483 = vector.extract_strided_slice %464 {offsets = [0, 64], sizes = [2, 32], strides = [1, 1]} : vector<2x96xf32> to vector<2x32xf32>
    %484 = arith.mulf %473, %483 : vector<2x32xf32>
    %485 = arith.addf %482, %484 : vector<2x32xf32>
    %486 = math.tanh %485 : vector<2x32xf32>
    %cst_139 = arith.constant 1.000000e+00 : f32
    %487 = vector.broadcast %cst_139 : f32 to vector<2x32xf32>
    %488 = arith.subf %487, %481 : vector<2x32xf32>
    %489 = arith.mulf %488, %486 : vector<2x32xf32>
    %490 = arith.mulf %481, %429 : vector<2x32xf32>
    %491 = arith.addf %489, %490 : vector<2x32xf32>
    %c2_140 = arith.constant 2 : index
    %c0_141 = arith.constant 0 : index
    %492 = vector.load %arg31[%c2_140, %c0_141] : memref<16x32xf32, #tpu.memory_space<vmem>>, vector<2x32xf32>
    tpu.vector_store %arg31[%c2_140, %c0_141], %491 {strides = array<i32>} : memref<16x32xf32, #tpu.memory_space<vmem>>, vector<2x32xf32>,
    %cst_142 = arith.constant dense<0.000000e+00> : vector<2x96xf32>
    %493 = tpu.matmul %460, %3, %cst_142 {dimension_numbers = #tpu.dot_dimension_numbers<[1], [0], [0], [1], [0, 0, 1, 1], [], []>} : vector<2x32xf32>, vector<32x96xf32>, vector<2x96xf32> -> vector<2x96xf32>
    %494 = vector.broadcast %5 : vector<1x96xf32> to vector<2x96xf32>
    %495 = arith.addf %493, %494 : vector<2x96xf32>
    %496 = vector.extract_strided_slice %53 {offsets = [14, 0], sizes = [2, 96], strides = [1, 1]} : vector<16x96xf32> to vector<2x96xf32>
    %497 = vector.extract_strided_slice %496 {offsets = [0, 0], sizes = [2, 32], strides = [1, 1]} : vector<2x96xf32> to vector<2x32xf32>
    %498 = vector.extract_strided_slice %495 {offsets = [0, 0], sizes = [2, 32], strides = [1, 1]} : vector<2x96xf32> to vector<2x32xf32>
    %499 = arith.addf %497, %498 : vector<2x32xf32>
    %500 = arith.negf %499 : vector<2x32xf32>
    %501 = math.exp %500 : vector<2x32xf32>
    %cst_143 = arith.constant 1.000000e+00 : f32
    %502 = vector.broadcast %cst_143 : f32 to vector<2x32xf32>
    %503 = arith.addf %502, %501 : vector<2x32xf32>
    %504 = arith.divf %502, %503 : vector<2x32xf32>
    %505 = vector.extract_strided_slice %496 {offsets = [0, 32], sizes = [2, 32], strides = [1, 1]} : vector<2x96xf32> to vector<2x32xf32>
    %506 = vector.extract_strided_slice %495 {offsets = [0, 32], sizes = [2, 32], strides = [1, 1]} : vector<2x96xf32> to vector<2x32xf32>
    %507 = arith.addf %505, %506 : vector<2x32xf32>
    %508 = arith.negf %507 : vector<2x32xf32>
    %509 = math.exp %508 : vector<2x32xf32>
    %cst_144 = arith.constant 1.000000e+00 : f32
    %510 = vector.broadcast %cst_144 : f32 to vector<2x32xf32>
    %511 = arith.addf %510, %509 : vector<2x32xf32>
    %512 = arith.divf %510, %511 : vector<2x32xf32>
    %513 = vector.extract_strided_slice %496 {offsets = [0, 64], sizes = [2, 32], strides = [1, 1]} : vector<2x96xf32> to vector<2x32xf32>
    %514 = vector.extract_strided_slice %495 {offsets = [0, 64], sizes = [2, 32], strides = [1, 1]} : vector<2x96xf32> to vector<2x32xf32>
    %515 = arith.mulf %504, %514 : vector<2x32xf32>
    %516 = arith.addf %513, %515 : vector<2x32xf32>
    %517 = math.tanh %516 : vector<2x32xf32>
    %cst_145 = arith.constant 1.000000e+00 : f32
    %518 = vector.broadcast %cst_145 : f32 to vector<2x32xf32>
    %519 = arith.subf %518, %512 : vector<2x32xf32>
    %520 = arith.mulf %519, %517 : vector<2x32xf32>
    %521 = arith.mulf %512, %460 : vector<2x32xf32>
    %522 = arith.addf %520, %521 : vector<2x32xf32>
    %c14_146 = arith.constant 14 : index
    %c0_147 = arith.constant 0 : index
    %523 = vector.load %arg30[%c14_146, %c0_147] : memref<16x32xf32, #tpu.memory_space<vmem>>, vector<2x32xf32>
    tpu.vector_store %arg30[%c14_146, %c0_147], %522 {strides = array<i32>} : memref<16x32xf32, #tpu.memory_space<vmem>>, vector<2x32xf32>,
    %cst_148 = arith.constant dense<0.000000e+00> : vector<2x96xf32>
    %524 = tpu.matmul %491, %7, %cst_148 {dimension_numbers = #tpu.dot_dimension_numbers<[1], [0], [0], [1], [0, 0, 1, 1], [], []>} : vector<2x32xf32>, vector<32x96xf32>, vector<2x96xf32> -> vector<2x96xf32>
    %525 = vector.broadcast %9 : vector<1x96xf32> to vector<2x96xf32>
    %526 = arith.addf %524, %525 : vector<2x96xf32>
    %527 = vector.extract_strided_slice %56 {offsets = [0, 0], sizes = [2, 96], strides = [1, 1]} : vector<16x96xf32> to vector<2x96xf32>
    %528 = vector.extract_strided_slice %527 {offsets = [0, 0], sizes = [2, 32], strides = [1, 1]} : vector<2x96xf32> to vector<2x32xf32>
    %529 = vector.extract_strided_slice %526 {offsets = [0, 0], sizes = [2, 32], strides = [1, 1]} : vector<2x96xf32> to vector<2x32xf32>
    %530 = arith.addf %528, %529 : vector<2x32xf32>
    %531 = arith.negf %530 : vector<2x32xf32>
    %532 = math.exp %531 : vector<2x32xf32>
    %cst_149 = arith.constant 1.000000e+00 : f32
    %533 = vector.broadcast %cst_149 : f32 to vector<2x32xf32>
    %534 = arith.addf %533, %532 : vector<2x32xf32>
    %535 = arith.divf %533, %534 : vector<2x32xf32>
    %536 = vector.extract_strided_slice %527 {offsets = [0, 32], sizes = [2, 32], strides = [1, 1]} : vector<2x96xf32> to vector<2x32xf32>
    %537 = vector.extract_strided_slice %526 {offsets = [0, 32], sizes = [2, 32], strides = [1, 1]} : vector<2x96xf32> to vector<2x32xf32>
    %538 = arith.addf %536, %537 : vector<2x32xf32>
    %539 = arith.negf %538 : vector<2x32xf32>
    %540 = math.exp %539 : vector<2x32xf32>
    %cst_150 = arith.constant 1.000000e+00 : f32
    %541 = vector.broadcast %cst_150 : f32 to vector<2x32xf32>
    %542 = arith.addf %541, %540 : vector<2x32xf32>
    %543 = arith.divf %541, %542 : vector<2x32xf32>
    %544 = vector.extract_strided_slice %527 {offsets = [0, 64], sizes = [2, 32], strides = [1, 1]} : vector<2x96xf32> to vector<2x32xf32>
    %545 = vector.extract_strided_slice %526 {offsets = [0, 64], sizes = [2, 32], strides = [1, 1]} : vector<2x96xf32> to vector<2x32xf32>
    %546 = arith.mulf %535, %545 : vector<2x32xf32>
    %547 = arith.addf %544, %546 : vector<2x32xf32>
    %548 = math.tanh %547 : vector<2x32xf32>
    %cst_151 = arith.constant 1.000000e+00 : f32
    %549 = vector.broadcast %cst_151 : f32 to vector<2x32xf32>
    %550 = arith.subf %549, %543 : vector<2x32xf32>
    %551 = arith.mulf %550, %548 : vector<2x32xf32>
    %552 = arith.mulf %543, %491 : vector<2x32xf32>
    %553 = arith.addf %551, %552 : vector<2x32xf32>
    %c0_152 = arith.constant 0 : index
    %c0_153 = arith.constant 0 : index
    %554 = vector.load %arg31[%c0_152, %c0_153] : memref<16x32xf32, #tpu.memory_space<vmem>>, vector<2x32xf32>
    tpu.vector_store %arg31[%c0_152, %c0_153], %553 {strides = array<i32>} : memref<16x32xf32, #tpu.memory_space<vmem>>, vector<2x32xf32>,
    %c0_154 = arith.constant 0 : index
    %c0_155 = arith.constant 0 : index
    %555 = vector.load %arg30[%c0_154, %c0_155] : memref<16x32xf32, #tpu.memory_space<vmem>>, vector<16x32xf32>
    %c0_156 = arith.constant 0 : index
    %c0_157 = arith.constant 0 : index
    %556 = vector.load %arg31[%c0_156, %c0_157] : memref<16x32xf32, #tpu.memory_space<vmem>>, vector<16x32xf32>
    %557 = tpu.concatenate %555, %556 in 1 : vector<16x32xf32>, vector<16x32xf32> -> vector<16x64xf32>
    %cst_158 = arith.constant dense<0.000000e+00> : vector<16xf32>
    %558 = vector.multi_reduction <add>, %557, %cst_158 [1] : vector<16x64xf32> to vector<16xf32>
    %559 = vector.shape_cast %558 : vector<16xf32> to vector<16x1xf32>
    %cst_159 = arith.constant 6.400000e+01 : f32
    %560 = vector.broadcast %cst_159 : f32 to vector<16x1xf32>
    %561 = arith.divf %559, %560 : vector<16x1xf32>
    %562 = vector.broadcast %561 : vector<16x1xf32> to vector<16x64xf32>
    %563 = arith.subf %557, %562 : vector<16x64xf32>
    %564 = arith.mulf %563, %563 : vector<16x64xf32>
    %cst_160 = arith.constant dense<0.000000e+00> : vector<16xf32>
    %565 = vector.multi_reduction <add>, %564, %cst_160 [1] : vector<16x64xf32> to vector<16xf32>
    %566 = vector.shape_cast %565 : vector<16xf32> to vector<16x1xf32>
    %cst_161 = arith.constant 6.400000e+01 : f32
    %567 = vector.broadcast %cst_161 : f32 to vector<16x1xf32>
    %568 = arith.divf %566, %567 : vector<16x1xf32>
    %569 = vector.broadcast %561 : vector<16x1xf32> to vector<16x64xf32>
    %570 = arith.subf %557, %569 : vector<16x64xf32>
    %cst_162 = arith.constant 9.99999974E-6 : f32
    %571 = vector.broadcast %cst_162 : f32 to vector<16x1xf32>
    %572 = arith.addf %568, %571 : vector<16x1xf32>
    %573 = math.rsqrt %572 : vector<16x1xf32>
    %574 = vector.broadcast %573 : vector<16x1xf32> to vector<16x64xf32>
    %575 = arith.mulf %570, %574 : vector<16x64xf32>
    %576 = vector.broadcast %10 : vector<1x64xf32> to vector<16x64xf32>
    %577 = arith.mulf %575, %576 : vector<16x64xf32>
    %578 = vector.broadcast %11 : vector<1x64xf32> to vector<16x64xf32>
    %579 = arith.addf %577, %578 : vector<16x64xf32>
    %cst_163 = arith.constant dense<0.000000e+00> : vector<16x96xf32>
    %580 = tpu.matmul %579, %12, %cst_163 {dimension_numbers = #tpu.dot_dimension_numbers<[1], [0], [0], [1], [0, 0, 1, 1], [], []>} : vector<16x64xf32>, vector<64x96xf32>, vector<16x96xf32> -> vector<16x96xf32>
    %581 = vector.broadcast %14 : vector<1x96xf32> to vector<16x96xf32>
    %582 = arith.addf %580, %581 : vector<16x96xf32>
    %cst_164 = arith.constant 0.000000e+00 : f32
    %583 = vector.broadcast %cst_164 : f32 to vector<2x32xf32>
    %cst_165 = arith.constant dense<0.000000e+00> : vector<2x96xf32>
    %584 = tpu.matmul %583, %13, %cst_165 {dimension_numbers = #tpu.dot_dimension_numbers<[1], [0], [0], [1], [0, 0, 1, 1], [], []>} : vector<2x32xf32>, vector<32x96xf32>, vector<2x96xf32> -> vector<2x96xf32>
    %585 = vector.broadcast %15 : vector<1x96xf32> to vector<2x96xf32>
    %586 = arith.addf %584, %585 : vector<2x96xf32>
    %587 = vector.extract_strided_slice %582 {offsets = [0, 0], sizes = [2, 96], strides = [1, 1]} : vector<16x96xf32> to vector<2x96xf32>
    %588 = vector.extract_strided_slice %587 {offsets = [0, 0], sizes = [2, 32], strides = [1, 1]} : vector<2x96xf32> to vector<2x32xf32>
    %589 = vector.extract_strided_slice %586 {offsets = [0, 0], sizes = [2, 32], strides = [1, 1]} : vector<2x96xf32> to vector<2x32xf32>
    %590 = arith.addf %588, %589 : vector<2x32xf32>
    %591 = arith.negf %590 : vector<2x32xf32>
    %592 = math.exp %591 : vector<2x32xf32>
    %cst_166 = arith.constant 1.000000e+00 : f32
    %593 = vector.broadcast %cst_166 : f32 to vector<2x32xf32>
    %594 = arith.addf %593, %592 : vector<2x32xf32>
    %595 = arith.divf %593, %594 : vector<2x32xf32>
    %596 = vector.extract_strided_slice %587 {offsets = [0, 32], sizes = [2, 32], strides = [1, 1]} : vector<2x96xf32> to vector<2x32xf32>
    %597 = vector.extract_strided_slice %586 {offsets = [0, 32], sizes = [2, 32], strides = [1, 1]} : vector<2x96xf32> to vector<2x32xf32>
    %598 = arith.addf %596, %597 : vector<2x32xf32>
    %599 = arith.negf %598 : vector<2x32xf32>
    %600 = math.exp %599 : vector<2x32xf32>
    %cst_167 = arith.constant 1.000000e+00 : f32
    %601 = vector.broadcast %cst_167 : f32 to vector<2x32xf32>
    %602 = arith.addf %601, %600 : vector<2x32xf32>
    %603 = arith.divf %601, %602 : vector<2x32xf32>
    %604 = vector.extract_strided_slice %587 {offsets = [0, 64], sizes = [2, 32], strides = [1, 1]} : vector<2x96xf32> to vector<2x32xf32>
    %605 = vector.extract_strided_slice %586 {offsets = [0, 64], sizes = [2, 32], strides = [1, 1]} : vector<2x96xf32> to vector<2x32xf32>
    %606 = arith.mulf %595, %605 : vector<2x32xf32>
    %607 = arith.addf %604, %606 : vector<2x32xf32>
    %608 = math.tanh %607 : vector<2x32xf32>
    %cst_168 = arith.constant 1.000000e+00 : f32
    %609 = vector.broadcast %cst_168 : f32 to vector<2x32xf32>
    %610 = arith.subf %609, %603 : vector<2x32xf32>
    %611 = arith.mulf %610, %608 : vector<2x32xf32>
    %612 = arith.mulf %603, %583 : vector<2x32xf32>
    %613 = arith.addf %611, %612 : vector<2x32xf32>
    %cst_169 = arith.constant dense<0.000000e+00> : vector<2x96xf32>
    %614 = tpu.matmul %613, %13, %cst_169 {dimension_numbers = #tpu.dot_dimension_numbers<[1], [0], [0], [1], [0, 0, 1, 1], [], []>} : vector<2x32xf32>, vector<32x96xf32>, vector<2x96xf32> -> vector<2x96xf32>
    %615 = vector.broadcast %15 : vector<1x96xf32> to vector<2x96xf32>
    %616 = arith.addf %614, %615 : vector<2x96xf32>
    %617 = vector.extract_strided_slice %582 {offsets = [2, 0], sizes = [2, 96], strides = [1, 1]} : vector<16x96xf32> to vector<2x96xf32>
    %618 = vector.extract_strided_slice %617 {offsets = [0, 0], sizes = [2, 32], strides = [1, 1]} : vector<2x96xf32> to vector<2x32xf32>
    %619 = vector.extract_strided_slice %616 {offsets = [0, 0], sizes = [2, 32], strides = [1, 1]} : vector<2x96xf32> to vector<2x32xf32>
    %620 = arith.addf %618, %619 : vector<2x32xf32>
    %621 = arith.negf %620 : vector<2x32xf32>
    %622 = math.exp %621 : vector<2x32xf32>
    %cst_170 = arith.constant 1.000000e+00 : f32
    %623 = vector.broadcast %cst_170 : f32 to vector<2x32xf32>
    %624 = arith.addf %623, %622 : vector<2x32xf32>
    %625 = arith.divf %623, %624 : vector<2x32xf32>
    %626 = vector.extract_strided_slice %617 {offsets = [0, 32], sizes = [2, 32], strides = [1, 1]} : vector<2x96xf32> to vector<2x32xf32>
    %627 = vector.extract_strided_slice %616 {offsets = [0, 32], sizes = [2, 32], strides = [1, 1]} : vector<2x96xf32> to vector<2x32xf32>
    %628 = arith.addf %626, %627 : vector<2x32xf32>
    %629 = arith.negf %628 : vector<2x32xf32>
    %630 = math.exp %629 : vector<2x32xf32>
    %cst_171 = arith.constant 1.000000e+00 : f32
    %631 = vector.broadcast %cst_171 : f32 to vector<2x32xf32>
    %632 = arith.addf %631, %630 : vector<2x32xf32>
    %633 = arith.divf %631, %632 : vector<2x32xf32>
    %634 = vector.extract_strided_slice %617 {offsets = [0, 64], sizes = [2, 32], strides = [1, 1]} : vector<2x96xf32> to vector<2x32xf32>
    %635 = vector.extract_strided_slice %616 {offsets = [0, 64], sizes = [2, 32], strides = [1, 1]} : vector<2x96xf32> to vector<2x32xf32>
    %636 = arith.mulf %625, %635 : vector<2x32xf32>
    %637 = arith.addf %634, %636 : vector<2x32xf32>
    %638 = math.tanh %637 : vector<2x32xf32>
    %cst_172 = arith.constant 1.000000e+00 : f32
    %639 = vector.broadcast %cst_172 : f32 to vector<2x32xf32>
    %640 = arith.subf %639, %633 : vector<2x32xf32>
    %641 = arith.mulf %640, %638 : vector<2x32xf32>
    %642 = arith.mulf %633, %613 : vector<2x32xf32>
    %643 = arith.addf %641, %642 : vector<2x32xf32>
    %cst_173 = arith.constant dense<0.000000e+00> : vector<2x96xf32>
    %644 = tpu.matmul %643, %13, %cst_173 {dimension_numbers = #tpu.dot_dimension_numbers<[1], [0], [0], [1], [0, 0, 1, 1], [], []>} : vector<2x32xf32>, vector<32x96xf32>, vector<2x96xf32> -> vector<2x96xf32>
    %645 = vector.broadcast %15 : vector<1x96xf32> to vector<2x96xf32>
    %646 = arith.addf %644, %645 : vector<2x96xf32>
    %647 = vector.extract_strided_slice %582 {offsets = [4, 0], sizes = [2, 96], strides = [1, 1]} : vector<16x96xf32> to vector<2x96xf32>
    %648 = vector.extract_strided_slice %647 {offsets = [0, 0], sizes = [2, 32], strides = [1, 1]} : vector<2x96xf32> to vector<2x32xf32>
    %649 = vector.extract_strided_slice %646 {offsets = [0, 0], sizes = [2, 32], strides = [1, 1]} : vector<2x96xf32> to vector<2x32xf32>
    %650 = arith.addf %648, %649 : vector<2x32xf32>
    %651 = arith.negf %650 : vector<2x32xf32>
    %652 = math.exp %651 : vector<2x32xf32>
    %cst_174 = arith.constant 1.000000e+00 : f32
    %653 = vector.broadcast %cst_174 : f32 to vector<2x32xf32>
    %654 = arith.addf %653, %652 : vector<2x32xf32>
    %655 = arith.divf %653, %654 : vector<2x32xf32>
    %656 = vector.extract_strided_slice %647 {offsets = [0, 32], sizes = [2, 32], strides = [1, 1]} : vector<2x96xf32> to vector<2x32xf32>
    %657 = vector.extract_strided_slice %646 {offsets = [0, 32], sizes = [2, 32], strides = [1, 1]} : vector<2x96xf32> to vector<2x32xf32>
    %658 = arith.addf %656, %657 : vector<2x32xf32>
    %659 = arith.negf %658 : vector<2x32xf32>
    %660 = math.exp %659 : vector<2x32xf32>
    %cst_175 = arith.constant 1.000000e+00 : f32
    %661 = vector.broadcast %cst_175 : f32 to vector<2x32xf32>
    %662 = arith.addf %661, %660 : vector<2x32xf32>
    %663 = arith.divf %661, %662 : vector<2x32xf32>
    %664 = vector.extract_strided_slice %647 {offsets = [0, 64], sizes = [2, 32], strides = [1, 1]} : vector<2x96xf32> to vector<2x32xf32>
    %665 = vector.extract_strided_slice %646 {offsets = [0, 64], sizes = [2, 32], strides = [1, 1]} : vector<2x96xf32> to vector<2x32xf32>
    %666 = arith.mulf %655, %665 : vector<2x32xf32>
    %667 = arith.addf %664, %666 : vector<2x32xf32>
    %668 = math.tanh %667 : vector<2x32xf32>
    %cst_176 = arith.constant 1.000000e+00 : f32
    %669 = vector.broadcast %cst_176 : f32 to vector<2x32xf32>
    %670 = arith.subf %669, %663 : vector<2x32xf32>
    %671 = arith.mulf %670, %668 : vector<2x32xf32>
    %672 = arith.mulf %663, %643 : vector<2x32xf32>
    %673 = arith.addf %671, %672 : vector<2x32xf32>
    %cst_177 = arith.constant dense<0.000000e+00> : vector<2x96xf32>
    %674 = tpu.matmul %673, %13, %cst_177 {dimension_numbers = #tpu.dot_dimension_numbers<[1], [0], [0], [1], [0, 0, 1, 1], [], []>} : vector<2x32xf32>, vector<32x96xf32>, vector<2x96xf32> -> vector<2x96xf32>
    %675 = vector.broadcast %15 : vector<1x96xf32> to vector<2x96xf32>
    %676 = arith.addf %674, %675 : vector<2x96xf32>
    %677 = vector.extract_strided_slice %582 {offsets = [6, 0], sizes = [2, 96], strides = [1, 1]} : vector<16x96xf32> to vector<2x96xf32>
    %678 = vector.extract_strided_slice %677 {offsets = [0, 0], sizes = [2, 32], strides = [1, 1]} : vector<2x96xf32> to vector<2x32xf32>
    %679 = vector.extract_strided_slice %676 {offsets = [0, 0], sizes = [2, 32], strides = [1, 1]} : vector<2x96xf32> to vector<2x32xf32>
    %680 = arith.addf %678, %679 : vector<2x32xf32>
    %681 = arith.negf %680 : vector<2x32xf32>
    %682 = math.exp %681 : vector<2x32xf32>
    %cst_178 = arith.constant 1.000000e+00 : f32
    %683 = vector.broadcast %cst_178 : f32 to vector<2x32xf32>
    %684 = arith.addf %683, %682 : vector<2x32xf32>
    %685 = arith.divf %683, %684 : vector<2x32xf32>
    %686 = vector.extract_strided_slice %677 {offsets = [0, 32], sizes = [2, 32], strides = [1, 1]} : vector<2x96xf32> to vector<2x32xf32>
    %687 = vector.extract_strided_slice %676 {offsets = [0, 32], sizes = [2, 32], strides = [1, 1]} : vector<2x96xf32> to vector<2x32xf32>
    %688 = arith.addf %686, %687 : vector<2x32xf32>
    %689 = arith.negf %688 : vector<2x32xf32>
    %690 = math.exp %689 : vector<2x32xf32>
    %cst_179 = arith.constant 1.000000e+00 : f32
    %691 = vector.broadcast %cst_179 : f32 to vector<2x32xf32>
    %692 = arith.addf %691, %690 : vector<2x32xf32>
    %693 = arith.divf %691, %692 : vector<2x32xf32>
    %694 = vector.extract_strided_slice %677 {offsets = [0, 64], sizes = [2, 32], strides = [1, 1]} : vector<2x96xf32> to vector<2x32xf32>
    %695 = vector.extract_strided_slice %676 {offsets = [0, 64], sizes = [2, 32], strides = [1, 1]} : vector<2x96xf32> to vector<2x32xf32>
    %696 = arith.mulf %685, %695 : vector<2x32xf32>
    %697 = arith.addf %694, %696 : vector<2x32xf32>
    %698 = math.tanh %697 : vector<2x32xf32>
    %cst_180 = arith.constant 1.000000e+00 : f32
    %699 = vector.broadcast %cst_180 : f32 to vector<2x32xf32>
    %700 = arith.subf %699, %693 : vector<2x32xf32>
    %701 = arith.mulf %700, %698 : vector<2x32xf32>
    %702 = arith.mulf %693, %673 : vector<2x32xf32>
    %703 = arith.addf %701, %702 : vector<2x32xf32>
    %cst_181 = arith.constant dense<0.000000e+00> : vector<2x96xf32>
    %704 = tpu.matmul %703, %13, %cst_181 {dimension_numbers = #tpu.dot_dimension_numbers<[1], [0], [0], [1], [0, 0, 1, 1], [], []>} : vector<2x32xf32>, vector<32x96xf32>, vector<2x96xf32> -> vector<2x96xf32>
    %705 = vector.broadcast %15 : vector<1x96xf32> to vector<2x96xf32>
    %706 = arith.addf %704, %705 : vector<2x96xf32>
    %707 = vector.extract_strided_slice %582 {offsets = [8, 0], sizes = [2, 96], strides = [1, 1]} : vector<16x96xf32> to vector<2x96xf32>
    %708 = vector.extract_strided_slice %707 {offsets = [0, 0], sizes = [2, 32], strides = [1, 1]} : vector<2x96xf32> to vector<2x32xf32>
    %709 = vector.extract_strided_slice %706 {offsets = [0, 0], sizes = [2, 32], strides = [1, 1]} : vector<2x96xf32> to vector<2x32xf32>
    %710 = arith.addf %708, %709 : vector<2x32xf32>
    %711 = arith.negf %710 : vector<2x32xf32>
    %712 = math.exp %711 : vector<2x32xf32>
    %cst_182 = arith.constant 1.000000e+00 : f32
    %713 = vector.broadcast %cst_182 : f32 to vector<2x32xf32>
    %714 = arith.addf %713, %712 : vector<2x32xf32>
    %715 = arith.divf %713, %714 : vector<2x32xf32>
    %716 = vector.extract_strided_slice %707 {offsets = [0, 32], sizes = [2, 32], strides = [1, 1]} : vector<2x96xf32> to vector<2x32xf32>
    %717 = vector.extract_strided_slice %706 {offsets = [0, 32], sizes = [2, 32], strides = [1, 1]} : vector<2x96xf32> to vector<2x32xf32>
    %718 = arith.addf %716, %717 : vector<2x32xf32>
    %719 = arith.negf %718 : vector<2x32xf32>
    %720 = math.exp %719 : vector<2x32xf32>
    %cst_183 = arith.constant 1.000000e+00 : f32
    %721 = vector.broadcast %cst_183 : f32 to vector<2x32xf32>
    %722 = arith.addf %721, %720 : vector<2x32xf32>
    %723 = arith.divf %721, %722 : vector<2x32xf32>
    %724 = vector.extract_strided_slice %707 {offsets = [0, 64], sizes = [2, 32], strides = [1, 1]} : vector<2x96xf32> to vector<2x32xf32>
    %725 = vector.extract_strided_slice %706 {offsets = [0, 64], sizes = [2, 32], strides = [1, 1]} : vector<2x96xf32> to vector<2x32xf32>
    %726 = arith.mulf %715, %725 : vector<2x32xf32>
    %727 = arith.addf %724, %726 : vector<2x32xf32>
    %728 = math.tanh %727 : vector<2x32xf32>
    %cst_184 = arith.constant 1.000000e+00 : f32
    %729 = vector.broadcast %cst_184 : f32 to vector<2x32xf32>
    %730 = arith.subf %729, %723 : vector<2x32xf32>
    %731 = arith.mulf %730, %728 : vector<2x32xf32>
    %732 = arith.mulf %723, %703 : vector<2x32xf32>
    %733 = arith.addf %731, %732 : vector<2x32xf32>
    %cst_185 = arith.constant dense<0.000000e+00> : vector<2x96xf32>
    %734 = tpu.matmul %733, %13, %cst_185 {dimension_numbers = #tpu.dot_dimension_numbers<[1], [0], [0], [1], [0, 0, 1, 1], [], []>} : vector<2x32xf32>, vector<32x96xf32>, vector<2x96xf32> -> vector<2x96xf32>
    %735 = vector.broadcast %15 : vector<1x96xf32> to vector<2x96xf32>
    %736 = arith.addf %734, %735 : vector<2x96xf32>
    %737 = vector.extract_strided_slice %582 {offsets = [10, 0], sizes = [2, 96], strides = [1, 1]} : vector<16x96xf32> to vector<2x96xf32>
    %738 = vector.extract_strided_slice %737 {offsets = [0, 0], sizes = [2, 32], strides = [1, 1]} : vector<2x96xf32> to vector<2x32xf32>
    %739 = vector.extract_strided_slice %736 {offsets = [0, 0], sizes = [2, 32], strides = [1, 1]} : vector<2x96xf32> to vector<2x32xf32>
    %740 = arith.addf %738, %739 : vector<2x32xf32>
    %741 = arith.negf %740 : vector<2x32xf32>
    %742 = math.exp %741 : vector<2x32xf32>
    %cst_186 = arith.constant 1.000000e+00 : f32
    %743 = vector.broadcast %cst_186 : f32 to vector<2x32xf32>
    %744 = arith.addf %743, %742 : vector<2x32xf32>
    %745 = arith.divf %743, %744 : vector<2x32xf32>
    %746 = vector.extract_strided_slice %737 {offsets = [0, 32], sizes = [2, 32], strides = [1, 1]} : vector<2x96xf32> to vector<2x32xf32>
    %747 = vector.extract_strided_slice %736 {offsets = [0, 32], sizes = [2, 32], strides = [1, 1]} : vector<2x96xf32> to vector<2x32xf32>
    %748 = arith.addf %746, %747 : vector<2x32xf32>
    %749 = arith.negf %748 : vector<2x32xf32>
    %750 = math.exp %749 : vector<2x32xf32>
    %cst_187 = arith.constant 1.000000e+00 : f32
    %751 = vector.broadcast %cst_187 : f32 to vector<2x32xf32>
    %752 = arith.addf %751, %750 : vector<2x32xf32>
    %753 = arith.divf %751, %752 : vector<2x32xf32>
    %754 = vector.extract_strided_slice %737 {offsets = [0, 64], sizes = [2, 32], strides = [1, 1]} : vector<2x96xf32> to vector<2x32xf32>
    %755 = vector.extract_strided_slice %736 {offsets = [0, 64], sizes = [2, 32], strides = [1, 1]} : vector<2x96xf32> to vector<2x32xf32>
    %756 = arith.mulf %745, %755 : vector<2x32xf32>
    %757 = arith.addf %754, %756 : vector<2x32xf32>
    %758 = math.tanh %757 : vector<2x32xf32>
    %cst_188 = arith.constant 1.000000e+00 : f32
    %759 = vector.broadcast %cst_188 : f32 to vector<2x32xf32>
    %760 = arith.subf %759, %753 : vector<2x32xf32>
    %761 = arith.mulf %760, %758 : vector<2x32xf32>
    %762 = arith.mulf %753, %733 : vector<2x32xf32>
    %763 = arith.addf %761, %762 : vector<2x32xf32>
    %cst_189 = arith.constant dense<0.000000e+00> : vector<2x96xf32>
    %764 = tpu.matmul %763, %13, %cst_189 {dimension_numbers = #tpu.dot_dimension_numbers<[1], [0], [0], [1], [0, 0, 1, 1], [], []>} : vector<2x32xf32>, vector<32x96xf32>, vector<2x96xf32> -> vector<2x96xf32>
    %765 = vector.broadcast %15 : vector<1x96xf32> to vector<2x96xf32>
    %766 = arith.addf %764, %765 : vector<2x96xf32>
    %767 = vector.extract_strided_slice %582 {offsets = [12, 0], sizes = [2, 96], strides = [1, 1]} : vector<16x96xf32> to vector<2x96xf32>
    %768 = vector.extract_strided_slice %767 {offsets = [0, 0], sizes = [2, 32], strides = [1, 1]} : vector<2x96xf32> to vector<2x32xf32>
    %769 = vector.extract_strided_slice %766 {offsets = [0, 0], sizes = [2, 32], strides = [1, 1]} : vector<2x96xf32> to vector<2x32xf32>
    %770 = arith.addf %768, %769 : vector<2x32xf32>
    %771 = arith.negf %770 : vector<2x32xf32>
    %772 = math.exp %771 : vector<2x32xf32>
    %cst_190 = arith.constant 1.000000e+00 : f32
    %773 = vector.broadcast %cst_190 : f32 to vector<2x32xf32>
    %774 = arith.addf %773, %772 : vector<2x32xf32>
    %775 = arith.divf %773, %774 : vector<2x32xf32>
    %776 = vector.extract_strided_slice %767 {offsets = [0, 32], sizes = [2, 32], strides = [1, 1]} : vector<2x96xf32> to vector<2x32xf32>
    %777 = vector.extract_strided_slice %766 {offsets = [0, 32], sizes = [2, 32], strides = [1, 1]} : vector<2x96xf32> to vector<2x32xf32>
    %778 = arith.addf %776, %777 : vector<2x32xf32>
    %779 = arith.negf %778 : vector<2x32xf32>
    %780 = math.exp %779 : vector<2x32xf32>
    %cst_191 = arith.constant 1.000000e+00 : f32
    %781 = vector.broadcast %cst_191 : f32 to vector<2x32xf32>
    %782 = arith.addf %781, %780 : vector<2x32xf32>
    %783 = arith.divf %781, %782 : vector<2x32xf32>
    %784 = vector.extract_strided_slice %767 {offsets = [0, 64], sizes = [2, 32], strides = [1, 1]} : vector<2x96xf32> to vector<2x32xf32>
    %785 = vector.extract_strided_slice %766 {offsets = [0, 64], sizes = [2, 32], strides = [1, 1]} : vector<2x96xf32> to vector<2x32xf32>
    %786 = arith.mulf %775, %785 : vector<2x32xf32>
    %787 = arith.addf %784, %786 : vector<2x32xf32>
    %788 = math.tanh %787 : vector<2x32xf32>
    %cst_192 = arith.constant 1.000000e+00 : f32
    %789 = vector.broadcast %cst_192 : f32 to vector<2x32xf32>
    %790 = arith.subf %789, %783 : vector<2x32xf32>
    %791 = arith.mulf %790, %788 : vector<2x32xf32>
    %792 = arith.mulf %783, %763 : vector<2x32xf32>
    %793 = arith.addf %791, %792 : vector<2x32xf32>
    %cst_193 = arith.constant dense<0.000000e+00> : vector<2x96xf32>
    %794 = tpu.matmul %793, %13, %cst_193 {dimension_numbers = #tpu.dot_dimension_numbers<[1], [0], [0], [1], [0, 0, 1, 1], [], []>} : vector<2x32xf32>, vector<32x96xf32>, vector<2x96xf32> -> vector<2x96xf32>
    %795 = vector.broadcast %15 : vector<1x96xf32> to vector<2x96xf32>
    %796 = arith.addf %794, %795 : vector<2x96xf32>
    %797 = vector.extract_strided_slice %582 {offsets = [14, 0], sizes = [2, 96], strides = [1, 1]} : vector<16x96xf32> to vector<2x96xf32>
    %798 = vector.extract_strided_slice %797 {offsets = [0, 0], sizes = [2, 32], strides = [1, 1]} : vector<2x96xf32> to vector<2x32xf32>
    %799 = vector.extract_strided_slice %796 {offsets = [0, 0], sizes = [2, 32], strides = [1, 1]} : vector<2x96xf32> to vector<2x32xf32>
    %800 = arith.addf %798, %799 : vector<2x32xf32>
    %801 = arith.negf %800 : vector<2x32xf32>
    %802 = math.exp %801 : vector<2x32xf32>
    %cst_194 = arith.constant 1.000000e+00 : f32
    %803 = vector.broadcast %cst_194 : f32 to vector<2x32xf32>
    %804 = arith.addf %803, %802 : vector<2x32xf32>
    %805 = arith.divf %803, %804 : vector<2x32xf32>
    %806 = vector.extract_strided_slice %797 {offsets = [0, 32], sizes = [2, 32], strides = [1, 1]} : vector<2x96xf32> to vector<2x32xf32>
    %807 = vector.extract_strided_slice %796 {offsets = [0, 32], sizes = [2, 32], strides = [1, 1]} : vector<2x96xf32> to vector<2x32xf32>
    %808 = arith.addf %806, %807 : vector<2x32xf32>
    %809 = arith.negf %808 : vector<2x32xf32>
    %810 = math.exp %809 : vector<2x32xf32>
    %cst_195 = arith.constant 1.000000e+00 : f32
    %811 = vector.broadcast %cst_195 : f32 to vector<2x32xf32>
    %812 = arith.addf %811, %810 : vector<2x32xf32>
    %813 = arith.divf %811, %812 : vector<2x32xf32>
    %814 = vector.extract_strided_slice %797 {offsets = [0, 64], sizes = [2, 32], strides = [1, 1]} : vector<2x96xf32> to vector<2x32xf32>
    %815 = vector.extract_strided_slice %796 {offsets = [0, 64], sizes = [2, 32], strides = [1, 1]} : vector<2x96xf32> to vector<2x32xf32>
    %816 = arith.mulf %805, %815 : vector<2x32xf32>
    %817 = arith.addf %814, %816 : vector<2x32xf32>
    %818 = math.tanh %817 : vector<2x32xf32>
    %cst_196 = arith.constant 1.000000e+00 : f32
    %819 = vector.broadcast %cst_196 : f32 to vector<2x32xf32>
    %820 = arith.subf %819, %813 : vector<2x32xf32>
    %821 = arith.mulf %820, %818 : vector<2x32xf32>
    %822 = arith.mulf %813, %793 : vector<2x32xf32>
    %823 = arith.addf %821, %822 : vector<2x32xf32>
    %cst_197 = arith.constant dense<0.000000e+00> : vector<2xf32>
    %824 = vector.multi_reduction <add>, %823, %cst_197 [1] : vector<2x32xf32> to vector<2xf32>
    %825 = vector.shape_cast %824 : vector<2xf32> to vector<2x1xf32>
    %cst_198 = arith.constant 3.200000e+01 : f32
    %826 = vector.broadcast %cst_198 : f32 to vector<2x1xf32>
    %827 = arith.divf %825, %826 : vector<2x1xf32>
    %828 = vector.broadcast %827 : vector<2x1xf32> to vector<2x32xf32>
    %829 = arith.subf %823, %828 : vector<2x32xf32>
    %830 = arith.mulf %829, %829 : vector<2x32xf32>
    %cst_199 = arith.constant dense<0.000000e+00> : vector<2xf32>
    %831 = vector.multi_reduction <add>, %830, %cst_199 [1] : vector<2x32xf32> to vector<2xf32>
    %832 = vector.shape_cast %831 : vector<2xf32> to vector<2x1xf32>
    %cst_200 = arith.constant 3.200000e+01 : f32
    %833 = vector.broadcast %cst_200 : f32 to vector<2x1xf32>
    %834 = arith.divf %832, %833 : vector<2x1xf32>
    %835 = vector.broadcast %827 : vector<2x1xf32> to vector<2x32xf32>
    %836 = arith.subf %823, %835 : vector<2x32xf32>
    %cst_201 = arith.constant 9.99999974E-6 : f32
    %837 = vector.broadcast %cst_201 : f32 to vector<2x1xf32>
    %838 = arith.addf %834, %837 : vector<2x1xf32>
    %839 = math.rsqrt %838 : vector<2x1xf32>
    %840 = vector.broadcast %839 : vector<2x1xf32> to vector<2x32xf32>
    %841 = arith.mulf %836, %840 : vector<2x32xf32>
    %842 = vector.broadcast %16 : vector<1x32xf32> to vector<2x32xf32>
    %843 = arith.mulf %841, %842 : vector<2x32xf32>
    %844 = vector.broadcast %17 : vector<1x32xf32> to vector<2x32xf32>
    %845 = arith.addf %843, %844 : vector<2x32xf32>
    %cst_202 = arith.constant dense<0.000000e+00> : vector<2x32xf32>
    %846 = tpu.matmul %845, %18, %cst_202 {dimension_numbers = #tpu.dot_dimension_numbers<[1], [0], [0], [1], [0, 0, 1, 1], [], []>} : vector<2x32xf32>, vector<32x32xf32>, vector<2x32xf32> -> vector<2x32xf32>
    %847 = vector.broadcast %19 : vector<1x32xf32> to vector<2x32xf32>
    %848 = arith.addf %846, %847 : vector<2x32xf32>
    %cst_203 = arith.constant dense<0.000000e+00> : vector<2xf32>
    %849 = vector.multi_reduction <add>, %848, %cst_203 [1] : vector<2x32xf32> to vector<2xf32>
    %850 = vector.shape_cast %849 : vector<2xf32> to vector<2x1xf32>
    %cst_204 = arith.constant 3.200000e+01 : f32
    %851 = vector.broadcast %cst_204 : f32 to vector<2x1xf32>
    %852 = arith.divf %850, %851 : vector<2x1xf32>
    %853 = vector.broadcast %852 : vector<2x1xf32> to vector<2x32xf32>
    %854 = arith.subf %848, %853 : vector<2x32xf32>
    %855 = arith.mulf %854, %854 : vector<2x32xf32>
    %cst_205 = arith.constant dense<0.000000e+00> : vector<2xf32>
    %856 = vector.multi_reduction <add>, %855, %cst_205 [1] : vector<2x32xf32> to vector<2xf32>
    %857 = vector.shape_cast %856 : vector<2xf32> to vector<2x1xf32>
    %cst_206 = arith.constant 3.200000e+01 : f32
    %858 = vector.broadcast %cst_206 : f32 to vector<2x1xf32>
    %859 = arith.divf %857, %858 : vector<2x1xf32>
    %860 = vector.broadcast %852 : vector<2x1xf32> to vector<2x32xf32>
    %861 = arith.subf %848, %860 : vector<2x32xf32>
    %cst_207 = arith.constant 9.99999974E-6 : f32
    %862 = vector.broadcast %cst_207 : f32 to vector<2x1xf32>
    %863 = arith.addf %859, %862 : vector<2x1xf32>
    %864 = math.rsqrt %863 : vector<2x1xf32>
    %865 = vector.broadcast %864 : vector<2x1xf32> to vector<2x32xf32>
    %866 = arith.mulf %861, %865 : vector<2x32xf32>
    %867 = vector.broadcast %20 : vector<1x32xf32> to vector<2x32xf32>
    %868 = arith.mulf %866, %867 : vector<2x32xf32>
    %869 = vector.broadcast %21 : vector<1x32xf32> to vector<2x32xf32>
    %870 = arith.addf %868, %869 : vector<2x32xf32>
    %cst_208 = arith.constant 0.000000e+00 : f32
    %871 = vector.broadcast %cst_208 : f32 to vector<2x32xf32>
    %872 = arith.cmpf ogt, %870, %871 : vector<2x32xf32>
    %cst_209 = arith.constant 0.00999999977 : f32
    %873 = vector.broadcast %cst_209 : f32 to vector<2x32xf32>
    %874 = arith.mulf %873, %870 : vector<2x32xf32>
    %875 = arith.select %872, %870, %874 : vector<2x32xi1>, vector<2x32xf32>
    %cst_210 = arith.constant dense<0.000000e+00> : vector<2x16xf32>
    %876 = tpu.matmul %875, %22, %cst_210 {dimension_numbers = #tpu.dot_dimension_numbers<[1], [0], [0], [1], [0, 0, 1, 1], [], []>} : vector<2x32xf32>, vector<32x16xf32>, vector<2x16xf32> -> vector<2x16xf32>
    %877 = vector.broadcast %23 : vector<1x16xf32> to vector<2x16xf32>
    %878 = arith.addf %876, %877 : vector<2x16xf32>
    %cst_211 = arith.constant dense<0.000000e+00> : vector<2xf32>
    %879 = vector.multi_reduction <add>, %878, %cst_211 [1] : vector<2x16xf32> to vector<2xf32>
    %880 = vector.shape_cast %879 : vector<2xf32> to vector<2x1xf32>
    %cst_212 = arith.constant 1.600000e+01 : f32
    %881 = vector.broadcast %cst_212 : f32 to vector<2x1xf32>
    %882 = arith.divf %880, %881 : vector<2x1xf32>
    %883 = vector.broadcast %882 : vector<2x1xf32> to vector<2x16xf32>
    %884 = arith.subf %878, %883 : vector<2x16xf32>
    %885 = arith.mulf %884, %884 : vector<2x16xf32>
    %cst_213 = arith.constant dense<0.000000e+00> : vector<2xf32>
    %886 = vector.multi_reduction <add>, %885, %cst_213 [1] : vector<2x16xf32> to vector<2xf32>
    %887 = vector.shape_cast %886 : vector<2xf32> to vector<2x1xf32>
    %cst_214 = arith.constant 1.600000e+01 : f32
    %888 = vector.broadcast %cst_214 : f32 to vector<2x1xf32>
    %889 = arith.divf %887, %888 : vector<2x1xf32>
    %890 = vector.broadcast %882 : vector<2x1xf32> to vector<2x16xf32>
    %891 = arith.subf %878, %890 : vector<2x16xf32>
    %cst_215 = arith.constant 9.99999974E-6 : f32
    %892 = vector.broadcast %cst_215 : f32 to vector<2x1xf32>
    %893 = arith.addf %889, %892 : vector<2x1xf32>
    %894 = math.rsqrt %893 : vector<2x1xf32>
    %895 = vector.broadcast %894 : vector<2x1xf32> to vector<2x16xf32>
    %896 = arith.mulf %891, %895 : vector<2x16xf32>
    %897 = vector.broadcast %24 : vector<1x16xf32> to vector<2x16xf32>
    %898 = arith.mulf %896, %897 : vector<2x16xf32>
    %899 = vector.broadcast %25 : vector<1x16xf32> to vector<2x16xf32>
    %900 = arith.addf %898, %899 : vector<2x16xf32>
    %cst_216 = arith.constant 0.000000e+00 : f32
    %901 = vector.broadcast %cst_216 : f32 to vector<2x16xf32>
    %902 = arith.cmpf ogt, %900, %901 : vector<2x16xf32>
    %cst_217 = arith.constant 0.00999999977 : f32
    %903 = vector.broadcast %cst_217 : f32 to vector<2x16xf32>
    %904 = arith.mulf %903, %900 : vector<2x16xf32>
    %905 = arith.select %902, %900, %904 : vector<2x16xi1>, vector<2x16xf32>
    %cst_218 = arith.constant dense<0.000000e+00> : vector<2x16xf32>
    %906 = tpu.matmul %905, %26, %cst_218 {dimension_numbers = #tpu.dot_dimension_numbers<[1], [0], [0], [1], [0, 0, 1, 1], [], []>} : vector<2x16xf32>, vector<16x16xf32>, vector<2x16xf32> -> vector<2x16xf32>
    %907 = vector.broadcast %27 : vector<1x16xf32> to vector<2x16xf32>
    %908 = arith.addf %906, %907 : vector<2x16xf32>
    %c0_219 = arith.constant 0 : index
    %c0_220 = arith.constant 0 : index
    %909 = vector.load %arg29[%c0_219, %c0_220] : memref<2x16xf32, #tpu.memory_space<vmem>>, vector<2x16xf32>
    tpu.vector_store %arg29[%c0_219, %c0_220], %908 {strides = array<i32>} : memref<2x16xf32, #tpu.memory_space<vmem>>, vector<2x16xf32>,
    return
  }
}

</mosaic_0001>

<bundles_post_ra>
// kernel: pure_gru_forward.1
= control target key start
LH: loop header
LB: loop body
LE: loop exit
PB: predicated region body
PF: predicated region fallthrough
CT: control target
= control target key end

     0   :  { %s3215_s6 = smov 1   ;;  %s3216_s10 = smov 2   ;;  %s4051_s0 = inlined_call_operand.smem [shape: u32[30], index: -1, kind: input, shape index: {}] }
   0x1   :  { %s3276_s5 = sld [smem:[%s4051_s0]]   ;;  %s3217_s14 = smov 3  }
   0x2   :  { %s3281_s9 = sld [smem:[%s4051_s0 + %s3215_s6]]   ;;  %s3218_s18 = smov 4  }
   0x3   :  { %s3286_s13 = sld [smem:[%s4051_s0 + %s3216_s10]]   ;;  %s3219_s22 = smov 5  }
   0x4   :  { %s3291_s17 = sld [smem:[%s4051_s0 + %s3217_s14]]   ;;  %s3220_s26 = smov 6  }
   0x5   :  { %s3296_s21 = sld [smem:[%s4051_s0 + %s3218_s18]]   ;;  %s3221_s30 = smov 7  }
   0x6   :  { %s3301_s25 = sld [smem:[%s4051_s0 + %s3219_s22]]   ;;  %s3222_s4 = smov 8  }
   0x7   :  { %4055 = sst [smem:[#allocation35_spill]] %s3276_s5  ;;  %s3223_s10 = smov 9  }
   0x8   :  { %4056 = sst [smem:[#allocation36_spill]] %s3281_s9  ;;  %s3224_s15 = smov 10  }
   0x9   :  { %4057 = sst [smem:[#allocation37_spill]] %s3286_s13  ;;  %s3225_s20 = smov 11  }
   0xa   :  { %s3306_s29 = sld [smem:[%s4051_s0 + %s3220_s26]]   ;;  %s3226_s26 = smov 12  }
   0xb   :  { %s3311_s3 = sld [smem:[%s4051_s0 + %s3221_s30]]   ;;  %s3227_s1 = smov 13  }
   0xc   :  { %s3316_s8 = sld [smem:[%s4051_s0 + %s3222_s4]]   ;;  %s3228_s7 = smov 14  }
   0xd   :  { %s3321_s14 = sld [smem:[%s4051_s0 + %s3223_s10]]   ;;  %s3230_s22 = smov 16  }
   0xe   :  { %s3326_s19 = sld [smem:[%s4051_s0 + %s3224_s15]]   ;;  %s3229_s15 = smov 15  }
   0xf   :  { %s3331_s24 = sld [smem:[%s4051_s0 + %s3225_s20]]   ;;  %s3231_s28 = smov 17  }
  0x10   :  { %s3336_s30 = sld [smem:[%s4051_s0 + %s3226_s26]]  }
  0x11   :  { %s3341_s6 = sld [smem:[%s4051_s0 + %s3227_s1]]  }
  0x12   :  { %s3346_s12 = sld [smem:[%s4051_s0 + %s3228_s7]]   ;;  %s3232_s7 = smov 18  }
  0x13   :  { %s3351_s20 = sld [smem:[%s4051_s0 + %s3229_s15]]   ;;  %s3233_s15 = smov 19  }
  0x14   :  { %s3356_s27 = sld [smem:[%s4051_s0 + %s3230_s22]]   ;;  %s3234_s22 = smov 20  }
  0x15   :  { %s3361_s4 = sld [smem:[%s4051_s0 + %s3231_s28]]   ;;  %s3235_s28 = smov 21  }
  0x16   :  { %s3371_s13 = sld [smem:[%s4051_s0 + %s3233_s15]]   ;;  %s3237_s15 = smov 23  }
  0x17   :  { %4058 = sst [smem:[#allocation38_spill]] %s3341_s6 }
  0x18   :  { %s3366_s6 = sld [smem:[%s4051_s0 + %s3232_s7]]   ;;  %s3236_s7 = smov 22  }
  0x19   :  { %s3376_s9 = sld [smem:[%s4051_s0 + %s3234_s22]]   ;;  %s3238_s22 = smov 24  }
  0x1a   :  { %s3391_s5 = sld [smem:[%s4051_s0 + %s3237_s15]]   ;;  %s3241_s15 = smov 27  }
  0x1b   :  { %4059 = sst [smem:[#allocation39_spill]] %s3361_s4 }
  0x1c   :  { %s3381_s4 = sld [smem:[%s4051_s0 + %s3235_s28]]   ;;  %s3239_s28 = smov 25  }
  0x1e   :  { %4060 = sst [smem:[#allocation40_spill]] %s3366_s6 }
  0x1f   :  { %4061 = sst [smem:[#allocation41_spill]] %s3376_s9 }
  0x20   :  { %s3386_s6 = sld [smem:[%s4051_s0 + %s3236_s7]]   ;;  %s3240_s7 = smov 26  }
  0x21   :  { %4064 = sst [smem:[#allocation44_spill]] %s3391_s5 }
  0x22   :  { %4062 = sst [smem:[#allocation42_spill]] %s3381_s4 }
  0x23   :  { %s3396_s9 = sld [smem:[%s4051_s0 + %s3238_s22]]   ;;  %s3242_s22 = smov 28  }
  0x24   :  { %s3401_s4 = sld [smem:[%s4051_s0 + %s3239_s28]]   ;;  %s3243_s28 = smov 29  }
  0x25   :  { %s3411_s5 = sld [smem:[%s4051_s0 + %s3241_s15]]  }
  0x26   :  { %4063 = sst [smem:[#allocation43_spill]] %s3386_s6 }
  0x27   :  { %s3406_s6 = sld [smem:[%s4051_s0 + %s3240_s7]]  }
  0x29   :  { %4065 = sst [smem:[#allocation45_spill]] %s3396_s9 }
  0x2a   :  { %4066 = sst [smem:[#allocation46_spill]] %s3401_s4 }
  0x2b   :  { %s3416_s9 = sld [smem:[%s4051_s0 + %s3242_s22]]  }
  0x2c   :  { %s3421_s4 = sld [smem:[%s4051_s0 + %s3243_s28]]  }
  0x2d   :  { %64 = vsyncpa [#allocation5], 0 }
  0x2e   :  { %65 = vsyncpa [#allocation7], 0 }
  0x2f   :  { %66 = vsyncpa [#allocation10], 0 }
  0x30   :  { %67 = vsyncpa [#allocation13], 0 }
  0x31   :  { %68 = vsyncpa [#allocation16], 0 }
  0x32   :  { %69 = vsyncpa [#allocation19], 0 }
  0x33   :  { %70 = vsyncpa [#allocation22], 0 }
  0x34   :  { %71 = vsyncpa [#allocation25], 0  ;;  %s95_s7 = sshll.u32 %s3296_s21, 4  ;;  %s3244_s10 = smov [#allocation6]   ;;  %s96_s7 = int_to_ptr.hbm [resolvable:$true] %s95_s7 }
  0x35   :  { %s97_s11 = sshll.u32 %s3244_s10, 4  ;;  %s120_s15 = sshll.u32 %s3306_s29, 4  ;;  %s98_s11 = int_to_ptr.vmem [resolvable:$true] %s97_s11  ;;  %s121_s15 = int_to_ptr.hbm [resolvable:$true] %s120_s15 }
  0x36   :  { %s2839_s0 = sshra.s32 %s96_s7, 4  ;;  %s2843_s18 = scalar_lea.hbm %s3296_s21, 32  ;;  %s2840_s0 = int_to_ptr.hbm [resolvable:$true] %s2839_s0 }
  0x37   :  { %s2841_s16 = scalar_lea.hbm %s2840_s0, 32  ;;  %p2844_p1 = scmp.lt.s32.totalorder %s2840_s0, %s3296_s21 }
  0x38   :  { %p2842_p0 = scmp.ne.s32.totalorder %s2840_s0, %s2841_s16  ;;  %p2845_p2 = scmp.lt.s32.totalorder %s2843_s18, %s2841_s16 }
  0x3a   :  { %p2846_p3 = por %p2845_p2, %p2844_p1 }
  0x3c   :  { %p2847_p4 = pnand %p2846_p3, %p2842_p0 }
  0x3e   :  { %2850 = shalt.err (!%p2847_p4)
}
  0x3f   :  { %s3245_s22 = smov 128   ;;  %s3246_s23 = smov 8  }
  0x40   :  { %103 = dma.hbm_to_vmem [thread:$0]  %s96_s7, 512, %s98_s11, [#allocation7], %s3245_s22, %s3245_s22, %s3246_s23  }
  0x41   :  { %s3247_s26 = smov [#allocation9]   ;;  %s143_s1 = sshll.u32 %s3316_s8, 4  ;;  %s3431_s1 = int_to_ptr.hbm [resolvable:$true] %s143_s1 }
  0x42   :  { %s122_s28 = sshll.u32 %s3247_s26, 4  ;;  %s2863_s21 = sshra.s32 %s121_s15, 4  ;;  %s123_s28 = int_to_ptr.vmem [resolvable:$true] %s122_s28  ;;  %s2864_s21 = int_to_ptr.hbm [resolvable:$true] %s2863_s21 }
  0x43   :  { %s2865_s2 = scalar_lea.hbm %s2864_s21, 1  ;;  %s2867_s10 = scalar_lea.hbm %s3306_s29, 1 }
  0x44   :  { %p2866_p5 = scmp.ne.s32.totalorder %s2864_s21, %s2865_s2  ;;  %p2868_p6 = scmp.lt.s32.totalorder %s2864_s21, %s3306_s29 }
  0x45   :  { %p2869_p7 = scmp.lt.s32.totalorder %s2867_s10, %s2865_s2 }
  0x47   :  { %p2870_p8 = por %p2869_p7, %p2868_p6 }
  0x49   :  { %p2871_p9 = pnand %p2870_p8, %p2866_p5 }
  0x4b   :  { %2874 = shalt.err (!%p2871_p9)
}
  0x4c   :  { %125 = dma.hbm_to_vmem [thread:$0]  %s121_s15, 16, %s123_s28, [#allocation10]  }
  0x4d   :  { %s168_s7 = sshll.u32 %s3326_s19, 4  ;;  %s3248_s11 = smov [#allocation12]   ;;  %s169_s7 = int_to_ptr.hbm [resolvable:$true] %s168_s7 }
  0x4e   :  { %s145_s0 = sshll.u32 %s3248_s11, 4  ;;  %s2887_s16 = sshra.s32 %s3431_s1, 4  ;;  %s146_s0 = int_to_ptr.vmem [resolvable:$true] %s145_s0  ;;  %s2888_s16 = int_to_ptr.hbm [resolvable:$true] %s2887_s16 }
  0x4f   :  { %s2889_s18 = scalar_lea.hbm %s2888_s16, 32  ;;  %s2891_s26 = scalar_lea.hbm %s3316_s8, 32 }
  0x50   :  { %p2890_p10 = scmp.ne.s32.totalorder %s2888_s16, %s2889_s18  ;;  %p2892_p11 = scmp.lt.s32.totalorder %s2888_s16, %s3316_s8 }
  0x51   :  { %p2893_p12 = scmp.lt.s32.totalorder %s2891_s26, %s2889_s18 }
  0x53   :  { %p2894_p13 = por %p2893_p12, %p2892_p11 }
  0x55   :  { %p2895_p0 = pnand %p2894_p13, %p2890_p10 }
  0x57   :  { %2898 = shalt.err (!%p2895_p0)
}
  0x58   :  { %151 = dma.hbm_to_vmem [thread:$0]  %s3431_s1, 512, %s146_s0, [#allocation13], %s3245_s22, %s3245_s22, %s3246_s23  }
  0x59   :  { %s3249_s29 = smov [#allocation15]   ;;  %s190_s28 = sshll.u32 %s3336_s30, 4  ;;  %s191_s28 = int_to_ptr.hbm [resolvable:$true] %s190_s28 }
  0x5a   :  { %s170_s15 = sshll.u32 %s3249_s29, 4  ;;  %s2911_s21 = sshra.s32 %s169_s7, 4  ;;  %s171_s15 = int_to_ptr.vmem [resolvable:$true] %s170_s15  ;;  %s2912_s21 = int_to_ptr.hbm [resolvable:$true] %s2911_s21 }
  0x5b   :  { %s2913_s8 = scalar_lea.hbm %s2912_s21, 1  ;;  %s2915_s2 = scalar_lea.hbm %s3326_s19, 1 }
  0x5c   :  { %p2914_p1 = scmp.ne.s32.totalorder %s2912_s21, %s2913_s8  ;;  %p2916_p2 = scmp.lt.s32.totalorder %s2912_s21, %s3326_s19 }
  0x5d   :  { %p2917_p3 = scmp.lt.s32.totalorder %s2915_s2, %s2913_s8 }
  0x5f   :  { %p2918_p4 = por %p2917_p3, %p2916_p2 }
  0x61   :  { %p2919_p5 = pnand %p2918_p4, %p2914_p1 }
  0x63   :  { %2922 = shalt.err (!%p2919_p5)
}
  0x64   :  { %173 = dma.hbm_to_vmem [thread:$0]  %s169_s7, 16, %s171_s15, [#allocation16]  }
  0x65   :  { %s216_s1 = sshll.u32 %s3351_s20, 4  ;;  %s3250_s10 = smov [#allocation18]   ;;  %s217_s1 = int_to_ptr.hbm [resolvable:$true] %s216_s1 }
  0x66   :  { %s192_s11 = sshll.u32 %s3250_s10, 4  ;;  %s2935_s0 = sshra.s32 %s191_s28, 4  ;;  %s193_s11 = int_to_ptr.vmem [resolvable:$true] %s192_s11  ;;  %s2936_s0 = int_to_ptr.hbm [resolvable:$true] %s2935_s0 }
  0x67   :  { %s2937_s16 = scalar_lea.hbm %s2936_s0, 1  ;;  %s2939_s18 = scalar_lea.hbm %s3336_s30, 1 }
  0x68   :  { %p2938_p6 = scmp.ne.s32.totalorder %s2936_s0, %s2937_s16  ;;  %p2940_p7 = scmp.lt.s32.totalorder %s2936_s0, %s3336_s30 }
  0x69   :  { %p2941_p8 = scmp.lt.s32.totalorder %s2939_s18, %s2937_s16 }
  0x6b   :  { %p2942_p9 = por %p2941_p8, %p2940_p7 }
  0x6d   :  { %p2943_p10 = pnand %p2942_p9, %p2938_p6 }
  0x6f   :  { %2946 = shalt.err (!%p2943_p10)
}
  0x70   :  { %195 = dma.hbm_to_vmem [thread:$0]  %s191_s28, 16, %s193_s11, [#allocation19]  }
  0x71   :  { %s3251_s19 = smov [#allocation21]   ;;  %s241_s26 = sshll.u32 %s3371_s13, 4  ;;  %s3450_s26 = int_to_ptr.hbm [resolvable:$true] %s241_s26 }
  0x72   :  { %s218_s7 = sshll.u32 %s3251_s19, 4  ;;  %s2959_s29 = sshra.s32 %s217_s1, 4  ;;  %s219_s7 = int_to_ptr.vmem [resolvable:$true] %s218_s7  ;;  %s2960_s29 = int_to_ptr.hbm [resolvable:$true] %s2959_s29 }
  0x73   :  { %s2961_s15 = scalar_lea.hbm %s2960_s29, 1  ;;  %s2963_s21 = scalar_lea.hbm %s3351_s20, 1 }
  0x74   :  { %p2962_p11 = scmp.ne.s32.totalorder %s2960_s29, %s2961_s15  ;;  %p2964_p12 = scmp.lt.s32.totalorder %s2960_s29, %s3351_s20 }
  0x75   :  { %p2965_p13 = scmp.lt.s32.totalorder %s2963_s21, %s2961_s15 }
  0x77   :  { %p2966_p0 = por %p2965_p13, %p2964_p12 }
  0x79   :  { %p2967_p1 = pnand %p2966_p0, %p2962_p11 }
  0x7b   :  { %2970 = shalt.err (!%p2967_p1)
}
  0x7c   :  { %221 = dma.hbm_to_vmem [thread:$0]  %s217_s1, 16, %s219_s7, [#allocation22]  }
  0x7d   :  { %s82_s30 = sshll.u32 %s3291_s17, 4  ;;  %s3252_s28 = smov [#allocation24]   ;;  %s3455_s30 = int_to_ptr.hbm [resolvable:$true] %s82_s30 }
  0x7e   :  { %s243_s8 = sshll.u32 %s3252_s28, 4  ;;  %s2983_s2 = sshra.s32 %s3450_s26, 4  ;;  %s244_s8 = int_to_ptr.vmem [resolvable:$true] %s243_s8  ;;  %s2984_s2 = int_to_ptr.hbm [resolvable:$true] %s2983_s2 }
  0x7f   :  { %s2985_s10 = scalar_lea.hbm %s2984_s2, 32  ;;  %s2987_s20 = scalar_lea.hbm %s3371_s13, 32 }
  0x80   :  { %p2986_p2 = scmp.ne.s32.totalorder %s2984_s2, %s2985_s10  ;;  %p2988_p3 = scmp.lt.s32.totalorder %s2984_s2, %s3371_s13 }
  0x81   :  { %p2989_p4 = scmp.lt.s32.totalorder %s2987_s20, %s2985_s10 }
  0x83   :  { %p2990_p5 = por %p2989_p4, %p2988_p3 }
  0x85   :  { %p2991_p6 = pnand %p2990_p5, %p2986_p2 }
  0x87   :  { %2994 = shalt.err (!%p2991_p6)
}
  0x88   :  { %249 = dma.hbm_to_vmem [thread:$0]  %s3450_s26, 512, %s244_s8, [#allocation25], %s3245_s22, %s3245_s22, %s3246_s23  }
  0x89   :  { %s3253_s1 = smov [#allocation4]   ;;  %s109_s0 = sshll.u32 %s3301_s25, 4  ;;  %s110_s0 = int_to_ptr.hbm [resolvable:$true] %s109_s0 }
  0x8a   :  { %s84_s11 = sshll.u32 %s3253_s1, 4  ;;  %s3007_s16 = sshra.s32 %s3455_s30, 4  ;;  %s85_s11 = int_to_ptr.vmem [resolvable:$true] %s84_s11  ;;  %s3008_s16 = int_to_ptr.hbm [resolvable:$true] %s3007_s16 }
  0x8b   :  { %s3009_s13 = scalar_lea.hbm %s3008_s16, 16  ;;  %s3011_s18 = scalar_lea.hbm %s3291_s17, 16 }
  0x8c   :  { %p3010_p7 = scmp.ne.s32.totalorder %s3008_s16, %s3009_s13  ;;  %p3012_p8 = scmp.lt.s32.totalorder %s3008_s16, %s3291_s17 }
  0x8d   :  { %p3013_p9 = scmp.lt.s32.totalorder %s3011_s18, %s3009_s13 }
  0x8f   :  { %p3014_p10 = por %p3013_p9, %p3012_p8 }
  0x91   :  { %p3015_p11 = pnand %p3014_p10, %p3010_p7 }
  0x93   :  { %3018 = shalt.err (!%p3015_p11)
}
  0x94   :  { %90 = dma.hbm_to_vmem [thread:$0]  %s3455_s30, 256, %s85_s11, [#allocation5], %s3245_s22, %s3245_s22, %s3246_s23  }
  0x95   :  { %s130_s19 = sshll.u32 %s3311_s3, 4  ;;  %s3254_s7 = smov [#allocation8]   ;;  %s3473_s19 = int_to_ptr.hbm [resolvable:$true] %s130_s19 }
  0x96   :  { %s111_s26 = sshll.u32 %s3254_s7, 4  ;;  %s3031_s29 = sshra.s32 %s110_s0, 4  ;;  %s112_s26 = int_to_ptr.vmem [resolvable:$true] %s111_s26  ;;  %s3032_s29 = int_to_ptr.hbm [resolvable:$true] %s3031_s29 }
  0x97   :  { %s3033_s17 = scalar_lea.hbm %s3032_s29, 1  ;;  %s3035_s15 = scalar_lea.hbm %s3301_s25, 1 }
  0x98   :  { %p3034_p12 = scmp.ne.s32.totalorder %s3032_s29, %s3033_s17  ;;  %p3036_p13 = scmp.lt.s32.totalorder %s3032_s29, %s3301_s25 }
  0x99   :  { %p3037_p0 = scmp.lt.s32.totalorder %s3035_s15, %s3033_s17 }
  0x9b   :  { %p3038_p1 = por %p3037_p0, %p3036_p13 }
  0x9d   :  { %p3039_p2 = pnand %p3038_p1, %p3034_p12 }
  0x9f   :  { %3042 = shalt.err (!%p3039_p2)
}
  0xa0   :  { %114 = dma.hbm_to_vmem [thread:$0]  %s110_s0, 16, %s112_s26, [#allocation7]  }
  0xa1   :  { %s3255_s21 = smov [#allocation11]   ;;  %s157_s28 = sshll.u32 %s3321_s14, 4  ;;  %s158_s28 = int_to_ptr.hbm [resolvable:$true] %s157_s28 }
  0xa2   :  { %s132_s30 = sshll.u32 %s3255_s21, 4  ;;  %s3055_s8 = sshra.s32 %s3473_s19, 4  ;;  %s133_s30 = int_to_ptr.vmem [resolvable:$true] %s132_s30  ;;  %s3056_s8 = int_to_ptr.hbm [resolvable:$true] %s3055_s8 }
  0xa3   :  { %s3057_s2 = scalar_lea.hbm %s3056_s8, 16  ;;  %s3059_s10 = scalar_lea.hbm %s3311_s3, 16 }
  0xa4   :  { %p3058_p3 = scmp.ne.s32.totalorder %s3056_s8, %s3057_s2  ;;  %p3060_p4 = scmp.lt.s32.totalorder %s3056_s8, %s3311_s3 }
  0xa5   :  { %p3061_p5 = scmp.lt.s32.totalorder %s3059_s10, %s3057_s2 }
  0xa7   :  { %p3062_p6 = por %p3061_p5, %p3060_p4 }
  0xa9   :  { %p3063_p7 = pnand %p3062_p6, %p3058_p3 }
  0xab   :  { %3066 = shalt.err (!%p3063_p7)
}
  0xac   :  { %138 = dma.hbm_to_vmem [thread:$0]  %s3473_s19, 256, %s133_s30, [#allocation10], %s3245_s22, %s3245_s22, %s3246_s23  }
  0xad   :  { %s179_s25 = sshll.u32 %s3331_s24, 4  ;;  %s3256_s20 = smov [#allocation14]   ;;  %s180_s25 = int_to_ptr.hbm [resolvable:$true] %s179_s25 }
  0xae   :  { %s159_s1 = sshll.u32 %s3256_s20, 4  ;;  %s3079_s11 = sshra.s32 %s158_s28, 4  ;;  %s160_s1 = int_to_ptr.vmem [resolvable:$true] %s159_s1  ;;  %s3080_s11 = int_to_ptr.hbm [resolvable:$true] %s3079_s11 }
  0xaf   :  { %s3081_s3 = scalar_lea.hbm %s3080_s11, 1  ;;  %s3083_s0 = scalar_lea.hbm %s3321_s14, 1 }
  0xb0   :  { %p3082_p8 = scmp.ne.s32.totalorder %s3080_s11, %s3081_s3  ;;  %p3084_p9 = scmp.lt.s32.totalorder %s3080_s11, %s3321_s14 }
  0xb1   :  { %p3085_p10 = scmp.lt.s32.totalorder %s3083_s0, %s3081_s3 }
  0xb3   :  { %p3086_p11 = por %p3085_p10, %p3084_p9 }
  0xb5   :  { %p3087_p12 = pnand %p3086_p11, %p3082_p8 }
  0xb7   :  { %3090 = shalt.err (!%p3087_p12)
}
  0xb8   :  { %162 = dma.hbm_to_vmem [thread:$0]  %s158_s28, 16, %s160_s1, [#allocation13]  }
  0xb9   :  { %s3257_s16 = smov [#allocation17]   ;;  %s202_s18 = sshll.u32 %s3346_s12, 4  ;;  %s3489_s18 = int_to_ptr.hbm [resolvable:$true] %s202_s18 }
  0xba   :  { %s181_s13 = sshll.u32 %s3257_s16, 4  ;;  %s3103_s19 = sshra.s32 %s180_s25, 4  ;;  %s182_s13 = int_to_ptr.vmem [resolvable:$true] %s181_s13  ;;  %s3104_s19 = int_to_ptr.hbm [resolvable:$true] %s3103_s19 }
  0xbb   :  { %s3105_s7 = scalar_lea.hbm %s3104_s19, 1  ;;  %s3107_s26 = scalar_lea.hbm %s3331_s24, 1 }
  0xbc   :  { %p3106_p13 = scmp.ne.s32.totalorder %s3104_s19, %s3105_s7  ;;  %p3108_p0 = scmp.lt.s32.totalorder %s3104_s19, %s3331_s24 }
  0xbd   :  { %p3109_p1 = scmp.lt.s32.totalorder %s3107_s26, %s3105_s7 }
  0xbf   :  { %p3110_p2 = por %p3109_p1, %p3108_p0 }
  0xc1   :  { %p3111_p3 = pnand %p3110_p2, %p3106_p13 }
  0xc3   :  { %3114 = shalt.err (!%p3111_p3)
}
  0xc4   :  { %184 = dma.hbm_to_vmem [thread:$0]  %s180_s25, 16, %s182_s13, [#allocation16]  }
  0xc5   :  { %s227_s14 = sshll.u32 %s3356_s27, 4  ;;  %s3258_s29 = smov [#allocation20]   ;;  %s228_s14 = int_to_ptr.hbm [resolvable:$true] %s227_s14 }
  0xc6   :  { %s204_s17 = sshll.u32 %s3258_s29, 4  ;;  %s3127_s15 = sshra.s32 %s3489_s18, 4  ;;  %s205_s17 = int_to_ptr.vmem [resolvable:$true] %s204_s17  ;;  %s3128_s15 = int_to_ptr.hbm [resolvable:$true] %s3127_s15 }
  0xc7   :  { %s3129_s21 = scalar_lea.hbm %s3128_s15, 32  ;;  %s3131_s30 = scalar_lea.hbm %s3346_s12, 32 }
  0xc8   :  { %p3130_p4 = scmp.ne.s32.totalorder %s3128_s15, %s3129_s21  ;;  %p3132_p5 = scmp.lt.s32.totalorder %s3128_s15, %s3346_s12 }
  0xc9   :  { %p3133_p6 = scmp.lt.s32.totalorder %s3131_s30, %s3129_s21 }
  0xcb   :  { %p3134_p7 = por %p3133_p6, %p3132_p5 }
  0xcd   :  { %p3135_p8 = pnand %p3134_p7, %p3130_p4 }
  0xcf   :  { %3138 = shalt.err (!%p3135_p8)
}
  0xd0   :  { %210 = dma.hbm_to_vmem [thread:$0]  %s3489_s18, 512, %s205_s17, [#allocation19], %s3245_s22, %s3245_s22, %s3246_s23  }
  0xd1   :  { %s3259_s24 = smov [#allocation23]   ;;  %s271_s8 = sshll.u32 %s3416_s9, 4  ;;  %s272_s8 = int_to_ptr.hbm [resolvable:$true] %s271_s8 }
  0xd2   :  { %s229_s28 = sshll.u32 %s3259_s24, 4  ;;  %s3151_s2 = sshra.s32 %s228_s14, 4  ;;  %s230_s28 = int_to_ptr.vmem [resolvable:$true] %s229_s28  ;;  %s3152_s2 = int_to_ptr.hbm [resolvable:$true] %s3151_s2 }
  0xd3   :  { %s3153_s10 = scalar_lea.hbm %s3152_s2, 1  ;;  %s3155_s12 = scalar_lea.hbm %s3356_s27, 1 }
  0xd4   :  { %p3154_p9 = scmp.ne.s32.totalorder %s3152_s2, %s3153_s10  ;;  %p3156_p10 = scmp.lt.s32.totalorder %s3152_s2, %s3356_s27 }
  0xd5   :  { %p3157_p11 = scmp.lt.s32.totalorder %s3155_s12, %s3153_s10 }
  0xd7   :  { %p3158_p12 = por %p3157_p11, %p3156_p10 }
  0xd9   :  { %p3159_p13 = pnand %p3158_p12, %p3154_p9 }
  0xdb   :  { %3162 = shalt.err (!%p3159_p13)
}
  0xdc   :  { %232 = dma.hbm_to_vmem [thread:$0]  %s228_s14, 16, %s230_s28, [#allocation22]  }
  0xdd   :  { %s3260_s25 = smov [#allocation26]   ;;  %s3175_s23 = sshra.s32 %s272_s8, 4  ;;  %s3176_s23 = int_to_ptr.hbm [resolvable:$true] %s3175_s23 }
  0xde   :  { %s273_s22 = sshll.u32 %s3260_s25, 4  ;;  %s3177_s20 = scalar_lea.hbm %s3176_s23, 1  ;;  %s274_s22 = int_to_ptr.vmem [resolvable:$true] %s273_s22 }
  0xdf   :  { %p3178_p0 = scmp.ne.s32.totalorder %s3176_s23, %s3177_s20  ;;  %s3179_s1 = scalar_lea.hbm %s3416_s9, 1 }
  0xe0   :  { %p3180_p1 = scmp.lt.s32.totalorder %s3176_s23, %s3416_s9  ;;  %p3181_p2 = scmp.lt.s32.totalorder %s3179_s1, %s3177_s20 }
  0xe2   :  { %p3182_p3 = por %p3181_p2, %p3180_p1 }
  0xe4   :  { %p3183_p4 = pnand %p3182_p3, %p3178_p0 }
  0xe6   :  { %3186 = shalt.err (!%p3183_p4)
}
  0xe7   :  { %276 = dma.hbm_to_vmem [thread:$0]  %s272_s8, 16, %s274_s22, [#allocation25]  }
  0xe8   :  { %3199 = dma.done.wait [#allocation5], 256  }
  0xe9   :  { %3200 = vsyncadd [#allocation5], 4294967040 }
  0xea   :  { %3201 = dma.done.wait [#allocation7], 528  }
  0xeb   :  { %3202 = vsyncadd [#allocation7], 4294966768 }
  0xec   :  { %3203 = dma.done.wait [#allocation10], 272  }
  0xed   :  { %3204 = vsyncadd [#allocation10], 4294967024 }
  0xee   :  { %3205 = dma.done.wait [#allocation13], 528  }
  0xef   :  { %3206 = vsyncadd [#allocation13], 4294966768 }
  0xf0   :  { %3207 = dma.done.wait [#allocation16], 32  }
  0xf1   :  { %3208 = vsyncadd [#allocation16], 4294967264 }
  0xf2   :  { %3209 = dma.done.wait [#allocation19], 528  }
  0xf3   :  { %3210 = vsyncadd [#allocation19], 4294966768 }
  0xf4   :  { %3211 = dma.done.wait [#allocation22], 32  }
  0xf5   :  { %3212 = vsyncadd [#allocation22], 4294967264 }
  0xf6   :  { %3213 = dma.done.wait [#allocation25], 528  }
  0xf7   :  { %3214 = vsyncadd [#allocation25], 4294966768  ;;  %s4067_s9 = sld [smem:[#allocation35_spill]]  ;;  %vm392_vm0 = vcmask 130048   ;;  %v3261_v4 = vmov 16.0   ;;  %v3510_v7 = vld [vmem:[#allocation12 + $0x18] sm:$0xff] }
  0xf8   :  { %2673 = vrcp.f32 %v3261_v4  ;;  %v3512_v8 = vld [vmem:[#allocation12 + $0x10] sm:$0xff]  ;;  %599 = vmatpush.msra.mxu3 %v3510_v7  ;;  %v3515_v10 = vld [vmem:[#allocation12 + $0x8] sm:$0xff]  ;;  %v3518_v11 = vld [vmem:[#allocation12] sm:$0xff]  ;;  %v3262_v13 = vmov 0.0   ;;  %s4068_s27 = sld [smem:[#allocation36_spill]]  ;;  %s3263_s11 = smov 64  }
  0xf9   :  { %v3545_v26 = vld [vmem:[#allocation6 + $0x18] sm:$0xff]  ;;  %v3548_v27 = vld [vmem:[#allocation6 + $0x10] sm:$0xff]  ;;  %v3551_v28 = vld [vmem:[#allocation6 + $0x8] sm:$0xff]  ;;  %s4069_s3 = sld [smem:[#allocation37_spill]]  ;;  %s3264_s0 = smov 96   ;;  %vm515_vm12 = vcmask 261120  }
  0xfa   :  { %600 = vmatpush.msra.mxu3 %v3512_v8  ;;  %531 = vmatpush.msra.mxu2 %v3545_v26  ;;  %v3554_v29 = vld [vmem:[#allocation6] sm:$0xff]  ;;  %v340_v30 = vld [vmem:[#allocation4 + $0x8] sm:$0xff]  ;;  %v348_v31 = vld [vmem:[#allocation11 + $0x8] sm:$0xff]  ;;  %s3265_s16 = smov 32   ;;  %s4070_s13 = sld [smem:[#allocation38_spill]] }
  0xfb   :  { %477 = vmatpush.msra.mxu0 %v340_v30  ;;  %503 = vmatpush.msra.mxu1 %v348_v31  ;;  %v339_v32 = vld [vmem:[#allocation4] sm:$0xff]  ;;  %v347_v33 = vld [vmem:[#allocation11] sm:$0xff]  ;;  %s4071_s18 = sld [smem:[#allocation39_spill]] }
  0xfc   :  { %601 = vmatpush.msra.mxu3 %v3515_v10  ;;  %532 = vmatpush.msra.mxu2 %v3548_v27  ;;  %v3574_v37 = vld [vmem:[#allocation15] ss:$0 sm:$0xff]  ;;  %s4072_s19 = sld [smem:[#allocation40_spill]] }
  0xfd   :  { %v390_v0 = vld [vmem:[%s4067_s9] sm:$0xff]  ;;  %v391_v1 = vld [vmem:[%s4067_s9 + $0x8] sm:$0xff]  ;;  %478 = vmatpush.msra.mxu0 %v339_v32  ;;  %504 = vmatpush.msra.mxu1 %v347_v33  ;;  %s4073_s7 = sld [smem:[#allocation41_spill]] }
  0xfe   :  { %v393_v2 = vsel %vm392_vm0, %v390_v0, 0.0  ;;  %v396_v3 = vsel %vm392_vm0, %v391_v1, 0.0  ;;  %v2674_v5 = vpop.eup %2673  ;;  %602 = vmatpush.msra.mxu3 %v3518_v11  ;;  %533 = vmatpush.msra.mxu2 %v3551_v28  ;;  %v2654_v52 = vld [vmem:[%s4068_s27] ss:$0 sm:$0xff]  ;;  %s4074_s26 = sld [smem:[#allocation44_spill]] }
  0xff   :  { %394 = vadd.xlane.f32.xlu0 %v393_v2  ;;  %v400_v6 = vmul.f32 16.0, %v2674_v5  ;;  %603 = vmatmul.f32.vlgmr.msra.gmra.mxu3 %v3262_v13  ;;  %vm404_vm1 = vweird.f32 %v2674_v5  ;;  %v2655_v56 = vld [vmem:[%s4069_s3] ss:$0 sm:$0xff]  ;;  %v2658_v2 = vld [vmem:[#allocation14] ss:$0 sm:$0xff]  ;;  %s4075_s14 = sld [smem:[#allocation42_spill]] }
 0x100   :  { %742 = vmatpush.msrb.mxu3 %v3510_v7  ;;  %534 = vmatpush.msra.mxu2 %v3554_v29  ;;  %s4076_s29 = sld [smem:[#allocation43_spill]] }
 0x101   :  { %v401_v9 = vsub.f32 1.0, %v400_v6  ;;  %535 = vmatmul.f32.vlgmr.msra.gmra.mxu2 %v3262_v13  ;;  %889 = vmatpush.msrb.mxu1 %v3510_v7  ;;  %s4077_s17 = sld [smem:[#allocation45_spill]] }
 0x102   :  { %743 = vmatpush.msrb.mxu3 %v3512_v8  ;;  %668 = vmatpush.msrb.mxu2 %v3545_v26  ;;  %s4078_s15 = sld [smem:[#allocation46_spill]] }
 0x103   :  { %v402_v12 = vmul.f32 %v2674_v5, %v401_v9  ;;  %816 = vmatpush.msrb.mxu0 %v3545_v26  ;;  %890 = vmatpush.msrb.mxu1 %v3512_v8 }
 0x104   :  { %744 = vmatpush.msrb.mxu3 %v3515_v10  ;;  %669 = vmatpush.msrb.mxu2 %v3548_v27 }
 0x105   :  { %v403_v14 = vadd.f32 %v2674_v5, %v402_v12  ;;  %817 = vmatpush.msrb.mxu0 %v3548_v27  ;;  %891 = vmatpush.msrb.mxu1 %v3515_v10 }
 0x106   :  { %745 = vmatpush.msrb.mxu3 %v3518_v11  ;;  %670 = vmatpush.msrb.mxu2 %v3551_v28 }
 0x107   :  { %397 = vadd.xlane.f32.xlu0 %v396_v3  ;;  %v3526_v15 = vsel %vm404_vm1, %v2674_v5, %v403_v14  ;;  %818 = vmatpush.msrb.mxu0 %v3551_v28 }
 0x108   :  { %1035 = vmatpush.msra.mxu3 %v3510_v7  ;;  %671 = vmatpush.msrb.mxu2 %v3554_v29 }
 0x109   :  { %892 = vmatpush.msrb.mxu1 %v3518_v11  ;;  %819 = vmatpush.msrb.mxu0 %v3554_v29 }
 0x10a   :  { %1036 = vmatpush.msra.mxu3 %v3512_v8  ;;  %962 = vmatpush.msra.mxu2 %v3545_v26 }
 0x10c   :  { %1037 = vmatpush.msra.mxu3 %v3515_v10  ;;  %963 = vmatpush.msra.mxu2 %v3548_v27 }
 0x10e   :  { %1038 = vmatpush.msra.mxu3 %v3518_v11  ;;  %964 = vmatpush.msra.mxu2 %v3551_v28 }
 0x110   :  { %965 = vmatpush.msra.mxu2 %v3554_v29 }
 0x172   :  { %v395_v16 = vpop.xlane.xlu0 %394 }
 0x173   :  { %v406_v17 = vmul.f32 %v3526_v15, %v395_v16 }
 0x175   :  { %v3532_v18 = vsub.f32 %v390_v0, %v406_v17 }
 0x177   :  { %v410_v19 = vmul.f32 %v3532_v18, %v3532_v18 }
 0x179   :  { %v412_v20 = vsel %vm392_vm0, %v410_v19, 0.0 }
 0x17a   :  { %413 = vadd.xlane.f32.xlu1 %v412_v20  ;;  %v398_v21 = vpop.xlane.xlu0 %397 }
 0x17b   :  { %v407_v22 = vmul.f32 %v3526_v15, %v398_v21 }
 0x17d   :  { %v3540_v23 = vsub.f32 %v391_v1, %v407_v22 }
 0x17f   :  { %v411_v24 = vmul.f32 %v3540_v23, %v3540_v23 }
 0x181   :  { %v415_v25 = vsel %vm392_vm0, %v411_v24, 0.0 }
 0x182   :  { %416 = vadd.xlane.f32.xlu1 %v415_v25  ;;  %v604_v38 = vpop.f32.mrf.mxu3 }
 0x183   :  { %v605_v39 = vadd.f32 %v3574_v37, %v604_v38 }
 0x185   :  { %v608_v42 = vrot.slane %v605_v39, 2 }
 0x187   :  { %630 = vrot.lane.b32.xlu2 %v608_v42, %s3263_s11 }
 0x1e1   :  { %v631_v24 = vpop.permute.xlu2 %630 }
 0x1ed   :  { %v414_v34 = vpop.xlane.xlu1 %413 }
 0x1ee   :  { %v418_v35 = vmul.f32 %v414_v34, %v3526_v15 }
 0x1f0   :  { %v420_v36 = vadd.f32 1e-05, %v418_v35 }
 0x1f2   :  { %2675 = vrsqrt.f32 %v420_v36  ;;  %vm428_vm3 = vweird.f32 %v420_v36 }
 0x1f5   :  { %v417_v40 = vpop.xlane.xlu1 %416 }
 0x1f6   :  { %v419_v41 = vmul.f32 %v417_v40, %v3526_v15 }
 0x1f8   :  { %v2676_v43 = vpop.eup %2675  ;;  %v421_v44 = vadd.f32 1e-05, %v419_v41 }
 0x1f9   :  { %v423_v45 = vmul.f32 %v2676_v43, %v420_v36  ;;  %vm429_vm2 = vweird.f32 %v2676_v43 }
 0x1fa   :  { %2677 = vrsqrt.f32 %v421_v44  ;;  %vm430_vm4 = vmor %vm428_vm3, %vm429_vm2  ;;  %vm438_vm6 = vweird.f32 %v421_v44 }
 0x1fb   :  { %v424_v46 = vmul.f32 %v2676_v43, %v423_v45 }
 0x1fd   :  { %v425_v47 = vmul.f32 0.5, %v424_v46 }
 0x1ff   :  { %v426_v48 = vsub.f32 1.5, %v425_v47 }
 0x200   :  { %v2678_v49 = vpop.eup %2677 }
 0x201   :  { %v427_v50 = vmul.f32 %v2676_v43, %v426_v48  ;;  %v433_v51 = vmul.f32 %v2678_v49, %v421_v44  ;;  %vm439_vm5 = vweird.f32 %v2678_v49 }
 0x202   :  { %vm440_vm7 = vmor %vm438_vm6, %vm439_vm5 }
 0x203   :  { %v431_v53 = vsel %vm430_vm4, %v2676_v43, %v427_v50  ;;  %v434_v54 = vmul.f32 %v2678_v49, %v433_v51 }
 0x204   :  { %v442_v55 = vmul.f32 %v431_v53, %v3532_v18 }
 0x205   :  { %v435_v57 = vmul.f32 0.5, %v434_v54 }
 0x206   :  { %v447_v58 = vmul.f32 %v2654_v52, %v442_v55 }
 0x207   :  { %v436_v59 = vsub.f32 1.5, %v435_v57 }
 0x208   :  { %v452_v60 = vadd.f32 %v2655_v56, %v447_v58 }
 0x209   :  { %v437_v61 = vmul.f32 %v2678_v49, %v436_v59 }
 0x20a   :  { %2547 = vmatmul.msk.f32.vlgmr.msra.gmra.mxu0 %vm392_vm0, %v452_v60  ;;  %2549 = vmatmul.msk.f32.vlgmr.msra.gmra.mxu1 %vm392_vm0, %v452_v60 }
 0x20b   :  { %v441_v62 = vsel %vm440_vm7, %v2678_v49, %v437_v61  ;;  %1172 = vmatpush.msra.mxu1 %v3510_v7  ;;  %1105 = vmatpush.msra.mxu0 %v3545_v26 }
 0x20c   :  { %v443_v63 = vmul.f32 %v441_v62, %v3540_v23 }
 0x20d   :  { %1173 = vmatpush.msra.mxu1 %v3512_v8  ;;  %1106 = vmatpush.msra.mxu0 %v3548_v27 }
 0x20e   :  { %v448_v0 = vmul.f32 %v2654_v52, %v443_v63 }
 0x20f   :  { %1174 = vmatpush.msra.mxu1 %v3515_v10  ;;  %1107 = vmatpush.msra.mxu0 %v3551_v28 }
 0x210   :  { %v453_v1 = vadd.f32 %v2655_v56, %v448_v0 }
 0x211   :  { %1175 = vmatpush.msra.mxu1 %v3518_v11  ;;  %1108 = vmatpush.msra.mxu0 %v3554_v29 }
 0x212   :  { %2548 = vmatmul.msk.f32.gmra.mxu0 %vm392_vm0, %v453_v1  ;;  %2550 = vmatmul.msk.f32.gmra.mxu1 %vm392_vm0, %v453_v1 }
 0x287   :  { %v506_v3 = vpop.f32.mrf.mxu1 }
 0x288   :  { %v3596_v4 = vadd.f32 %v2658_v2, %v506_v3 }
 0x28f   :  { %v509_v5 = vpop.f32.mrf.mxu1 }
 0x290   :  { %v3598_v6 = vadd.f32 %v2658_v2, %v509_v5 }
 0x292   :  { %v610_v9 = vadd.f32 %v608_v42, %v3598_v6 }
 0x294   :  { %v2552_v12 = vmul.f32 -1.442695, %v610_v9 }
 0x296   :  { %2679 = vpow2.f32 %v2552_v12 }
 0x29c   :  { %v2680_v14 = vpop.eup %2679 }
 0x29d   :  { %v614_v16 = vadd.f32 1.0, %v2680_v14 }
 0x29f   :  { %2681 = vrcp.f32 %v614_v16  ;;  %v626_v20 = vand.u32 2147483648, %v614_v16  ;;  %v624_v22 = vand.u32 2147483647, %v614_v16  ;;  %vm620_vm9 = vweird.f32 %v614_v16 }
 0x2a1   :  { %v627_v25 = vor.u32 1.1754944e-38, %v626_v20  ;;  %vm625_vm11 = vcmp.eq.f32.partialorder %v624_v22, 8.507059e+37 }
 0x2a5   :  { %v2682_v17 = vpop.eup %2681 }
 0x2a6   :  { %v616_v18 = vmul.f32 %v2682_v17, %v614_v16  ;;  %vm621_vm8 = vweird.f32 %v2682_v17 }
 0x2a7   :  { %vm622_vm10 = vmor %vm620_vm9, %vm621_vm8 }
 0x2a8   :  { %v617_v19 = vsub.f32 1.0, %v616_v18 }
 0x2aa   :  { %v618_v21 = vmul.f32 %v2682_v17, %v617_v19 }
 0x2ac   :  { %v619_v23 = vadd.f32 %v2682_v17, %v618_v21 }
 0x2ae   :  { %v623_v30 = vsel %vm622_vm10, %v2682_v17, %v619_v23  ;;  %vm582_vm10 = vcmask 254976  }
 0x2af   :  { %v628_v31 = vsel %vm625_vm11, %v627_v25, %v623_v30 }
 0x2b0   :  { %v633_v32 = vmul.f32 %v631_v24, %v628_v31  ;;  %v640_v36 = vsub.f32 1.0, %v628_v31  ;;  %v646_v39 = vmul.f32 0.0, %v628_v31 }
 0x2b2   :  { %635 = vrot.lane.b32.xlu2 %v633_v32, %s3263_s11 }
 0x30c   :  { %v636_v33 = vpop.permute.xlu2 %635 }
 0x30d   :  { %v638_v34 = vadd.f32 %v636_v33, %v3598_v6 }
 0x30f   :  { %2683 = vtanh.f32 %v638_v34 }
 0x315   :  { %v2684_v35 = vpop.eup %2683 }
 0x316   :  { %642 = vrot.lane.b32.xlu0 %v2684_v35, %s3264_s0 }
 0x388   :  { %v643_v38 = vpop.permute.xlu0 %642 }
 0x389   :  { %v645_v40 = vmul.f32 %v643_v38, %v640_v36 }
 0x38b   :  { %v3604_v41 = vadd.f32 %v646_v39, %v645_v40 }
 0x38d   :  { %v725_v42 = vrot.slane %v3604_v41, 6  ;;  %v789_v3 = vrot.slane %v3604_v41, 2 }
 0x38f   :  { %726 = vrot.lane.b32.xlu1 %v725_v42, %s3264_s0 }
 0x401   :  { %v727_v43 = vpop.permute.xlu1 %726 }
 0x402   :  { %2555 = vmatmul.msk.f32.vlgmr.msrb.gmra.mxu3 %vm515_vm12, %v727_v43  ;;  %v3633_v43 = vld [vmem:[#allocation9] ss:$0 sm:$0xff] }
 0x403   :  { %1315 = vmatpush.msrb.mxu3 %v3510_v7 }
 0x405   :  { %1316 = vmatpush.msrb.mxu3 %v3512_v8 }
 0x407   :  { %1317 = vmatpush.msrb.mxu3 %v3515_v10 }
 0x409   :  { %1318 = vmatpush.msrb.mxu3 %v3518_v11 }
 0x485   :  { %v747_v44 = vpop.f32.mrf.mxu3 }
 0x486   :  { %v748_v45 = vadd.f32 %v3574_v37, %v747_v44  ;;  %v536_v44 = vpop.f32.mrf.mxu2 }
 0x488   :  { %v751_v46 = vrot.slane %v748_v45, 4  ;;  %v537_v45 = vadd.f32 %v3633_v43, %v536_v44 }
 0x48a   :  { %773 = vrot.lane.b32.xlu2 %v751_v46, %s3263_s11  ;;  %v753_v47 = vadd.f32 %v751_v46, %v3598_v6  ;;  %v3637_v46 = vld [vmem:[#allocation8] ss:$0 sm:$0xff] }
 0x48c   :  { %v2556_v48 = vmul.f32 -1.442695, %v753_v47  ;;  %v480_v47 = vpop.f32.mrf.mxu0 }
 0x48e   :  { %2685 = vpow2.f32 %v2556_v48  ;;  %v3640_v48 = vadd.f32 %v3637_v46, %v480_v47 }
 0x494   :  { %v2686_v49 = vpop.eup %2685 }
 0x495   :  { %v757_v50 = vadd.f32 1.0, %v2686_v49  ;;  %v539_v49 = vadd.f32 %v537_v45, %v3640_v48 }
 0x497   :  { %2687 = vrcp.f32 %v757_v50  ;;  %v769_v56 = vand.u32 2147483648, %v757_v50  ;;  %vm763_vm14 = vweird.f32 %v757_v50  ;;  %v767_v57 = vand.u32 2147483647, %v757_v50 }
 0x499   :  { %v770_v59 = vor.u32 1.1754944e-38, %v769_v56  ;;  %vm768_vm1 = vcmp.eq.f32.partialorder %v767_v57, 8.507059e+37 }
 0x49d   :  { %v2688_v51 = vpop.eup %2687 }
 0x49e   :  { %v759_v52 = vmul.f32 %v2688_v51, %v757_v50  ;;  %vm764_vm13 = vweird.f32 %v2688_v51  ;;  %v2551_v50 = vmul.f32 -1.442695, %v539_v49 }
 0x49f   :  { %vm765_vm15 = vmor %vm763_vm14, %vm764_vm13 }
 0x4a0   :  { %v760_v53 = vsub.f32 1.0, %v759_v52 }
 0x4a2   :  { %v761_v54 = vmul.f32 %v2688_v51, %v760_v53 }
 0x4a4   :  { %v762_v55 = vadd.f32 %v2688_v51, %v761_v54 }
 0x4a6   :  { %v766_v58 = vsel %vm765_vm15, %v2688_v51, %v762_v55 }
 0x4a7   :  { %v771_v61 = vsel %vm768_vm1, %v770_v59, %v766_v58 }
 0x4a8   :  { %v783_v2 = vsub.f32 1.0, %v771_v61  ;;  %v791_v9 = vmul.f32 %v789_v3, %v771_v61 }
 0x4e4   :  { %v774_v60 = vpop.permute.xlu2 %773 }
 0x4e5   :  { %v776_v62 = vmul.f32 %v774_v60, %v771_v61 }
 0x4e7   :  { %778 = vrot.lane.b32.xlu2 %v776_v62, %s3263_s11 }
 0x541   :  { %v779_v63 = vpop.permute.xlu2 %778 }
 0x542   :  { %v781_v0 = vadd.f32 %v779_v63, %v3598_v6 }
 0x544   :  { %2689 = vtanh.f32 %v781_v0 }
 0x54a   :  { %v2690_v1 = vpop.eup %2689 }
 0x54b   :  { %785 = vrot.lane.b32.xlu2 %v2690_v1, %s3264_s0 }
 0x5a5   :  { %v786_v5 = vpop.permute.xlu2 %785 }
 0x5a6   :  { %v788_v12 = vmul.f32 %v786_v5, %v783_v2 }
 0x5a8   :  { %v3620_v14 = vadd.f32 %v791_v9, %v788_v12 }
 0x5aa   :  { %v872_v16 = vrot.slane %v3620_v14, 4  ;;  %v936_v9 = vrot.slane %v3620_v14, 2 }
 0x5ac   :  { %873 = vrot.lane.b32.xlu0 %v872_v16, %s3264_s0 }
 0x61e   :  { %v874_v17 = vpop.permute.xlu0 %873 }
 0x61f   :  { %2559 = vmatmul.msk.f32.vlgmr.msrb.gmra.mxu1 %vm515_vm12, %v874_v17 }
 0x620   :  { %1461 = vmatpush.msrb.mxu1 %v3510_v7 }
 0x622   :  { %1462 = vmatpush.msrb.mxu1 %v3512_v8 }
 0x624   :  { %1463 = vmatpush.msrb.mxu1 %v3515_v10 }
 0x626   :  { %1464 = vmatpush.msrb.mxu1 %v3518_v11 }
 0x69c   :  { %v894_v18 = vpop.f32.mrf.mxu1 }
 0x69d   :  { %v895_v19 = vadd.f32 %v3574_v37, %v894_v18 }
 0x69f   :  { %v898_v20 = vrot.slane %v895_v19, 6 }
 0x6a1   :  { %920 = vrot.lane.b32.xlu2 %v898_v20, %s3263_s11  ;;  %v900_v21 = vadd.f32 %v898_v20, %v3598_v6 }
 0x6a3   :  { %v2560_v22 = vmul.f32 -1.442695, %v900_v21 }
 0x6a5   :  { %2691 = vpow2.f32 %v2560_v22 }
 0x6ab   :  { %v2692_v23 = vpop.eup %2691 }
 0x6ac   :  { %v904_v24 = vadd.f32 1.0, %v2692_v23 }
 0x6ae   :  { %2693 = vrcp.f32 %v904_v24  ;;  %v916_v34 = vand.u32 2147483648, %v904_v24  ;;  %vm910_vm3 = vweird.f32 %v904_v24  ;;  %v914_v35 = vand.u32 2147483647, %v904_v24 }
 0x6af   :  { %2695 = vpow2.f32 %v2551_v50 }
 0x6b0   :  { %v917_v38 = vor.u32 1.1754944e-38, %v916_v34  ;;  %vm915_vm5 = vcmp.eq.f32.partialorder %v914_v35, 8.507059e+37 }
 0x6b4   :  { %v2694_v25 = vpop.eup %2693 }
 0x6b5   :  { %v906_v30 = vmul.f32 %v2694_v25, %v904_v24  ;;  %vm911_vm2 = vweird.f32 %v2694_v25  ;;  %v2696_v51 = vpop.eup %2695 }
 0x6b6   :  { %vm912_vm4 = vmor %vm910_vm3, %vm911_vm2  ;;  %v543_v52 = vadd.f32 1.0, %v2696_v51 }
 0x6b7   :  { %v907_v31 = vsub.f32 1.0, %v906_v30 }
 0x6b8   :  { %2697 = vrcp.f32 %v543_v52  ;;  %v555_v61 = vand.u32 2147483648, %v543_v52  ;;  %vm549_vm7 = vweird.f32 %v543_v52  ;;  %v553_v62 = vand.u32 2147483647, %v543_v52 }
 0x6b9   :  { %v908_v32 = vmul.f32 %v2694_v25, %v907_v31 }
 0x6ba   :  { %v556_v1 = vor.u32 1.1754944e-38, %v555_v61  ;;  %vm554_vm9 = vcmp.eq.f32.partialorder %v553_v62, 8.507059e+37 }
 0x6bb   :  { %v909_v33 = vadd.f32 %v2694_v25, %v908_v32 }
 0x6bd   :  { %v913_v36 = vsel %vm912_vm4, %v2694_v25, %v909_v33 }
 0x6be   :  { %v918_v40 = vsel %vm915_vm5, %v917_v38, %v913_v36  ;;  %v2698_v53 = vpop.eup %2697 }
 0x6bf   :  { %v545_v54 = vmul.f32 %v2698_v53, %v543_v52  ;;  %vm550_vm6 = vweird.f32 %v2698_v53  ;;  %v930_v5 = vsub.f32 1.0, %v918_v40  ;;  %v938_v16 = vmul.f32 %v936_v9, %v918_v40 }
 0x6c0   :  { %vm551_vm8 = vmor %vm549_vm7, %vm550_vm6 }
 0x6c1   :  { %v546_v56 = vsub.f32 1.0, %v545_v54 }
 0x6c3   :  { %v547_v58 = vmul.f32 %v2698_v53, %v546_v56 }
 0x6c5   :  { %v548_v59 = vadd.f32 %v2698_v53, %v547_v58 }
 0x6c7   :  { %v552_v63 = vsel %vm551_vm8, %v2698_v53, %v548_v59 }
 0x6c8   :  { %v557_v2 = vsel %vm554_vm9, %v556_v1, %v552_v63 }
 0x6c9   :  { %v570_v24 = vsub.f32 1.0, %v557_v2  ;;  %v576_v30 = vmul.f32 0.0, %v557_v2 }
 0x6fb   :  { %v921_v39 = vpop.permute.xlu2 %920 }
 0x6fc   :  { %v923_v42 = vmul.f32 %v921_v39, %v918_v40 }
 0x6fe   :  { %925 = vrot.lane.b32.xlu1 %v923_v42, %s3263_s11 }
 0x706   :  { %560 = vrot.lane.b32.xlu1 %v537_v45, %s3263_s11 }
 0x770   :  { %v926_v55 = vpop.permute.xlu1 %925 }
 0x771   :  { %v928_v57 = vadd.f32 %v926_v55, %v3598_v6 }
 0x773   :  { %2699 = vtanh.f32 %v928_v57 }
 0x778   :  { %v561_v0 = vpop.permute.xlu1 %560 }
 0x779   :  { %v2700_v60 = vpop.eup %2699  ;;  %v563_v3 = vmul.f32 %v561_v0, %v557_v2 }
 0x77a   :  { %932 = vrot.lane.b32.xlu0 %v2700_v60, %s3264_s0 }
 0x782   :  { %565 = vrot.lane.b32.xlu0 %v563_v3, %s3263_s11 }
 0x7ec   :  { %v933_v12 = vpop.permute.xlu0 %932 }
 0x7ed   :  { %v935_v17 = vmul.f32 %v933_v12, %v930_v5 }
 0x7ef   :  { %v3647_v18 = vadd.f32 %v938_v16, %v935_v17 }
 0x7f1   :  { %v1018_v19 = vrot.slane %v3647_v18, 2 }
 0x7f3   :  { %1019 = vrot.lane.b32.xlu2 %v1018_v19, %s3264_s0 }
 0x7f4   :  { %v566_v20 = vpop.permute.xlu0 %565 }
 0x7f5   :  { %v568_v21 = vadd.f32 %v566_v20, %v3640_v48 }
 0x7f7   :  { %2701 = vtanh.f32 %v568_v21 }
 0x7fd   :  { %v2702_v22 = vpop.eup %2701 }
 0x7fe   :  { %572 = vrot.lane.b32.xlu2 %v2702_v22, %s3264_s0 }
 0x84d   :  { %v1020_v23 = vpop.permute.xlu2 %1019 }
 0x84e   :  { %2563 = vmatmul.msk.f32.vlgmr.msra.gmra.mxu3 %vm515_vm12, %v1020_v23 }
 0x84f   :  { %1607 = vmatpush.msra.mxu3 %v3510_v7 }
 0x851   :  { %1608 = vmatpush.msra.mxu3 %v3512_v8 }
 0x853   :  { %1609 = vmatpush.msra.mxu3 %v3515_v10 }
 0x855   :  { %1610 = vmatpush.msra.mxu3 %v3518_v11 }
 0x858   :  { %v573_v25 = vpop.permute.xlu2 %572 }
 0x859   :  { %v575_v31 = vmul.f32 %v573_v25, %v570_v24 }
 0x85b   :  { %v577_v32 = vadd.f32 %v576_v30, %v575_v31 }
 0x85d   :  { %579 = vrot.lane.b32.xlu1 %v577_v32, %s3264_s0  ;;  %v715_v5 = vrot.slane %v577_v32, 6 }
 0x8cf   :  { %v580_v33 = vpop.permute.xlu1 %579 }
 0x8d0   :  { %583 = vst.msk [vmem:[#allocation2] sm:$0x3] %vm582_vm10, %v580_v33  ;;  %2553 = vmatmul.msk.f32.vlgmr.msrb.gmra.mxu2 %vm515_vm12, %v580_v33 }
 0x8d1   :  { %v1040_v7 = vpop.f32.mrf.mxu3  ;;  %1242 = vmatpush.msrb.mxu2 %v3545_v26 }
 0x8d2   :  { %v1041_v8 = vadd.f32 %v3574_v37, %v1040_v7 }
 0x8d3   :  { %1243 = vmatpush.msrb.mxu2 %v3548_v27 }
 0x8d4   :  { %1064 = vrot.lane.b32.xlu0 %v1041_v8, %s3263_s11  ;;  %v1043_v10 = vadd.f32 %v1041_v8, %v3598_v6 }
 0x8d5   :  { %1244 = vmatpush.msrb.mxu2 %v3551_v28 }
 0x8d6   :  { %v2564_v11 = vmul.f32 -1.442695, %v1043_v10 }
 0x8d7   :  { %1245 = vmatpush.msrb.mxu2 %v3554_v29 }
 0x8d8   :  { %2703 = vpow2.f32 %v2564_v11 }
 0x8de   :  { %v2704_v34 = vpop.eup %2703 }
 0x8df   :  { %v1047_v35 = vadd.f32 1.0, %v2704_v34 }
 0x8e1   :  { %2705 = vrcp.f32 %v1047_v35  ;;  %v1059_v44 = vand.u32 2147483648, %v1047_v35  ;;  %vm1053_vm13 = vweird.f32 %v1047_v35  ;;  %v1057_v45 = vand.u32 2147483647, %v1047_v35 }
 0x8e3   :  { %v1060_v49 = vor.u32 1.1754944e-38, %v1059_v44  ;;  %vm1058_vm15 = vcmp.eq.f32.partialorder %v1057_v45, 8.507059e+37 }
 0x8e7   :  { %v2706_v36 = vpop.eup %2705 }
 0x8e8   :  { %v1049_v38 = vmul.f32 %v2706_v36, %v1047_v35  ;;  %vm1054_vm11 = vweird.f32 %v2706_v36 }
 0x8e9   :  { %vm1055_vm14 = vmor %vm1053_vm13, %vm1054_vm11 }
 0x8ea   :  { %v1050_v39 = vsub.f32 1.0, %v1049_v38 }
 0x8ec   :  { %v1051_v40 = vmul.f32 %v2706_v36, %v1050_v39 }
 0x8ee   :  { %v1052_v42 = vadd.f32 %v2706_v36, %v1051_v40 }
 0x8f0   :  { %v1056_v47 = vsel %vm1055_vm14, %v2706_v36, %v1052_v42 }
 0x8f1   :  { %v1061_v50 = vsel %vm1058_vm15, %v1060_v49, %v1056_v47 }
 0x8f2   :  { %v1074_v24 = vsub.f32 1.0, %v1061_v50  ;;  %v1081_v30 = vmul.f32 %v1061_v50, %v1018_v19 }
 0x946   :  { %v1065_v51 = vpop.permute.xlu0 %1064 }
 0x947   :  { %v1067_v52 = vmul.f32 %v1065_v51, %v1061_v50 }
 0x949   :  { %1069 = vrot.lane.b32.xlu2 %v1067_v52, %s3263_s11 }
 0x953   :  { %v673_v53 = vpop.f32.mrf.mxu2 }
 0x954   :  { %v674_v54 = vadd.f32 %v3633_v43, %v673_v53 }
 0x956   :  { %v677_v55 = vrot.slane %v674_v54, 6  ;;  %v3699_v54 = vpop.f32.mrf.mxu0 }
 0x958   :  { %v679_v56 = vadd.f32 %v677_v55, %v3640_v48  ;;  %699 = vrot.lane.b32.xlu2 %v677_v55, %s3263_s11 }
 0x95a   :  { %v2554_v57 = vmul.f32 -1.442695, %v679_v56 }
 0x95c   :  { %2707 = vpow2.f32 %v2554_v57 }
 0x962   :  { %v2708_v58 = vpop.eup %2707 }
 0x963   :  { %v683_v59 = vadd.f32 1.0, %v2708_v58 }
 0x965   :  { %2709 = vrcp.f32 %v683_v59  ;;  %v695_v63 = vand.u32 2147483648, %v683_v59  ;;  %v693_v1 = vand.u32 2147483647, %v683_v59  ;;  %vm689_vm2 = vweird.f32 %v683_v59 }
 0x967   :  { %v696_v3 = vor.u32 1.1754944e-38, %v695_v63  ;;  %vm694_vm4 = vcmp.eq.f32.partialorder %v693_v1, 8.507059e+37 }
 0x96b   :  { %v2710_v60 = vpop.eup %2709 }
 0x96c   :  { %v685_v61 = vmul.f32 %v2710_v60, %v683_v59  ;;  %vm690_vm1 = vweird.f32 %v2710_v60 }
 0x96d   :  { %vm691_vm3 = vmor %vm689_vm2, %vm690_vm1 }
 0x96e   :  { %v686_v62 = vsub.f32 1.0, %v685_v61 }
 0x970   :  { %v687_v0 = vmul.f32 %v2710_v60, %v686_v62 }
 0x972   :  { %v688_v2 = vadd.f32 %v2710_v60, %v687_v0 }
 0x974   :  { %v692_v9 = vsel %vm691_vm3, %v2710_v60, %v688_v2 }
 0x975   :  { %v697_v12 = vsel %vm694_vm4, %v696_v3, %v692_v9 }
 0x976   :  { %v717_v16 = vmul.f32 %v715_v5, %v697_v12  ;;  %v709_v10 = vsub.f32 1.0, %v697_v12 }
 0x9a3   :  { %v1070_v17 = vpop.permute.xlu2 %1069 }
 0x9a4   :  { %v1072_v20 = vadd.f32 %v1070_v17, %v3598_v6 }
 0x9a6   :  { %2711 = vtanh.f32 %v1072_v20 }
 0x9ac   :  { %v2712_v21 = vpop.eup %2711 }
 0x9ad   :  { %1076 = vrot.lane.b32.xlu1 %v2712_v21, %s3264_s0 }
 0x9b2   :  { %v700_v22 = vpop.permute.xlu2 %699 }
 0x9b3   :  { %v702_v23 = vmul.f32 %v700_v22, %v697_v12 }
 0x9b5   :  { %704 = vrot.lane.b32.xlu1 %v702_v23, %s3263_s11 }
 0xa1f   :  { %v1077_v25 = vpop.permute.xlu1 %1076 }
 0xa20   :  { %v1079_v31 = vmul.f32 %v1077_v25, %v1074_v24 }
 0xa22   :  { %v3679_v32 = vadd.f32 %v1081_v30, %v1079_v31 }
 0xa24   :  { %1084 = vrot.lane.b32.xlu0 %v3679_v32, %s3264_s0 }
 0xa27   :  { %v705_v6 = vpop.permute.xlu1 %704 }
 0xa28   :  { %v707_v33 = vadd.f32 %v705_v6, %v3640_v48 }
 0xa2a   :  { %2713 = vtanh.f32 %v707_v33 }
 0xa30   :  { %v2714_v7 = vpop.eup %2713 }
 0xa31   :  { %711 = vrot.lane.b32.xlu0 %v2714_v7, %s3264_s0 }
 0xa96   :  { %v1085_v8 = vpop.permute.xlu0 %1084 }
 0xa97   :  { %1087 = vst.msk [vmem:[#allocation3 + $0x8] sm:$0x3] %vm582_vm10, %v1085_v8  ;;  %2567 = vmatmul.msk.f32.vlgmr.msra.gmra.mxu1 %vm515_vm12, %v1085_v8  ;;  %v1219_v8 = vrot.slane %v3679_v32, 2 }
 0xaa3   :  { %v712_v19 = vpop.permute.xlu0 %711 }
 0xaa4   :  { %v714_v11 = vmul.f32 %v712_v19, %v709_v10 }
 0xaa6   :  { %v3687_v34 = vadd.f32 %v717_v16, %v714_v11 }
 0xaa8   :  { %v799_v35 = vrot.slane %v3687_v34, 2 }
 0xaaa   :  { %800 = vrot.lane.b32.xlu2 %v799_v35, %s3264_s0 }
 0xb04   :  { %v801_v36 = vpop.permute.xlu2 %800 }
 0xb05   :  { %2557 = vmatmul.msk.f32.vlgmr.msrb.gmra.mxu0 %vm515_vm12, %v801_v36 }
 0xb06   :  { %1388 = vmatpush.msrb.mxu0 %v3545_v26 }
 0xb08   :  { %1389 = vmatpush.msrb.mxu0 %v3548_v27 }
 0xb0a   :  { %1390 = vmatpush.msrb.mxu0 %v3551_v28 }
 0xb0c   :  { %1391 = vmatpush.msrb.mxu0 %v3554_v29 }
 0xb14   :  { %v1177_v38 = vpop.f32.mrf.mxu1 }
 0xb15   :  { %v1178_v39 = vadd.f32 %v3574_v37, %v1177_v38 }
 0xb17   :  { %v1181_v40 = vrot.slane %v1178_v39, 2 }
 0xb19   :  { %1203 = vrot.lane.b32.xlu1 %v1181_v40, %s3263_s11  ;;  %v1183_v42 = vadd.f32 %v1181_v40, %v3596_v4 }
 0xb1b   :  { %v2568_v44 = vmul.f32 -1.442695, %v1183_v42 }
 0xb1d   :  { %2715 = vpow2.f32 %v2568_v44 }
 0xb23   :  { %v2716_v45 = vpop.eup %2715 }
 0xb24   :  { %v1187_v47 = vadd.f32 1.0, %v2716_v45  ;;  %v863_v45 = vrot.slane %v3687_v34, 6 }
 0xb26   :  { %2717 = vrcp.f32 %v1187_v47  ;;  %v1199_v55 = vand.u32 2147483648, %v1187_v47  ;;  %vm1193_vm6 = vweird.f32 %v1187_v47  ;;  %v1197_v56 = vand.u32 2147483647, %v1187_v47 }
 0xb28   :  { %v1200_v58 = vor.u32 1.1754944e-38, %v1199_v55  ;;  %vm1198_vm8 = vcmp.eq.f32.partialorder %v1197_v56, 8.507059e+37 }
 0xb2c   :  { %v2718_v49 = vpop.eup %2717 }
 0xb2d   :  { %v1189_v50 = vmul.f32 %v2718_v49, %v1187_v47  ;;  %vm1194_vm5 = vweird.f32 %v2718_v49 }
 0xb2e   :  { %vm1195_vm7 = vmor %vm1193_vm6, %vm1194_vm5 }
 0xb2f   :  { %v1190_v51 = vsub.f32 1.0, %v1189_v50 }
 0xb31   :  { %v1191_v52 = vmul.f32 %v2718_v49, %v1190_v51 }
 0xb33   :  { %v1192_v53 = vadd.f32 %v2718_v49, %v1191_v52 }
 0xb35   :  { %v1196_v57 = vsel %vm1195_vm7, %v2718_v49, %v1192_v53 }
 0xb36   :  { %v1201_v59 = vsel %vm1198_vm8, %v1200_v58, %v1196_v57 }
 0xb37   :  { %v1213_v10 = vsub.f32 1.0, %v1201_v59  ;;  %v1221_v11 = vmul.f32 %v1219_v8, %v1201_v59 }
 0xb82   :  { %v821_v62 = vpop.f32.mrf.mxu0 }
 0xb83   :  { %v822_v63 = vadd.f32 %v3633_v43, %v821_v62 }
 0xb85   :  { %v825_v0 = vrot.slane %v822_v63, 4 }
 0xb87   :  { %v827_v1 = vadd.f32 %v825_v0, %v3640_v48 }
 0xb89   :  { %v2558_v2 = vmul.f32 -1.442695, %v827_v1 }
 0xb8b   :  { %v1204_v60 = vpop.permute.xlu1 %1203  ;;  %2719 = vpow2.f32 %v2558_v2 }
 0xb8c   :  { %v1206_v61 = vmul.f32 %v1204_v60, %v1201_v59 }
 0xb8e   :  { %1208 = vrot.lane.b32.xlu0 %v1206_v61, %s3263_s11 }
 0xb91   :  { %v2720_v3 = vpop.eup %2719 }
 0xb92   :  { %v831_v5 = vadd.f32 1.0, %v2720_v3 }
 0xb94   :  { %2721 = vrcp.f32 %v831_v5  ;;  %v843_v24 = vand.u32 2147483648, %v831_v5  ;;  %vm837_vm11 = vweird.f32 %v831_v5  ;;  %v841_v25 = vand.u32 2147483647, %v831_v5 }
 0xb96   :  { %847 = vrot.lane.b32.xlu0 %v825_v0, %s3263_s11  ;;  %v844_v31 = vor.u32 1.1754944e-38, %v843_v24  ;;  %vm842_vm14 = vcmp.eq.f32.partialorder %v841_v25, 8.507059e+37 }
 0xb9a   :  { %v2722_v9 = vpop.eup %2721 }
 0xb9b   :  { %v833_v12 = vmul.f32 %v2722_v9, %v831_v5  ;;  %vm838_vm9 = vweird.f32 %v2722_v9 }
 0xb9c   :  { %vm839_vm13 = vmor %vm837_vm11, %vm838_vm9 }
 0xb9d   :  { %v834_v17 = vsub.f32 1.0, %v833_v12 }
 0xb9f   :  { %v835_v21 = vmul.f32 %v2722_v9, %v834_v17 }
 0xba1   :  { %v836_v22 = vadd.f32 %v2722_v9, %v835_v21 }
 0xba3   :  { %v840_v30 = vsel %vm839_vm13, %v2722_v9, %v836_v22 }
 0xba4   :  { %v845_v33 = vsel %vm842_vm14, %v844_v31, %v840_v30 }
 0xba5   :  { %v857_v32 = vsub.f32 1.0, %v845_v33  ;;  %v865_v49 = vmul.f32 %v863_v45, %v845_v33 }
 0xc00   :  { %v1209_v16 = vpop.permute.xlu0 %1208 }
 0xc01   :  { %v1211_v20 = vadd.f32 %v1209_v16, %v3596_v4 }
 0xc03   :  { %2723 = vtanh.f32 %v1211_v20 }
 0xc08   :  { %v848_v6 = vpop.permute.xlu0 %847 }
 0xc09   :  { %v2724_v23 = vpop.eup %2723  ;;  %v850_v7 = vmul.f32 %v848_v6, %v845_v33 }
 0xc0a   :  { %1215 = vrot.lane.b32.xlu2 %v2724_v23, %s3264_s0 }
 0xc12   :  { %852 = vrot.lane.b32.xlu2 %v850_v7, %s3263_s11 }
 0xc64   :  { %v1216_v19 = vpop.permute.xlu2 %1215 }
 0xc65   :  { %v1218_v35 = vmul.f32 %v1216_v19, %v1213_v10 }
 0xc67   :  { %v3709_v36 = vadd.f32 %v1221_v11, %v1218_v35 }
 0xc69   :  { %v1298_v38 = vrot.slane %v3709_v36, 6 }
 0xc6b   :  { %1299 = vrot.lane.b32.xlu1 %v1298_v38, %s3264_s0 }
 0xc6c   :  { %v853_v39 = vpop.permute.xlu2 %852 }
 0xc6d   :  { %v855_v40 = vadd.f32 %v853_v39, %v3640_v48 }
 0xc6f   :  { %2725 = vtanh.f32 %v855_v40 }
 0xc75   :  { %v2726_v42 = vpop.eup %2725 }
 0xc76   :  { %859 = vrot.lane.b32.xlu1 %v2726_v42, %s3264_s0 }
 0xcdd   :  { %v1300_v44 = vpop.permute.xlu1 %1299 }
 0xcde   :  { %2571 = vmatmul.msk.f32.vlgmr.msrb.gmra.mxu3 %vm515_vm12, %v1300_v44  ;;  %v1362_v44 = vrot.slane %v3709_v36, 2 }
 0xce8   :  { %v860_v47 = vpop.permute.xlu1 %859 }
 0xce9   :  { %v862_v50 = vmul.f32 %v860_v47, %v857_v32 }
 0xceb   :  { %v3717_v51 = vadd.f32 %v865_v49, %v862_v50 }
 0xced   :  { %v945_v52 = vrot.slane %v3717_v51, 4 }
 0xcef   :  { %946 = vrot.lane.b32.xlu0 %v945_v52, %s3264_s0 }
 0xd61   :  { %v1320_v53 = vpop.f32.mrf.mxu3  ;;  %v947_v55 = vpop.permute.xlu0 %946 }
 0xd62   :  { %v1321_v56 = vadd.f32 %v3574_v37, %v1320_v53  ;;  %2561 = vmatmul.msk.f32.vlgmr.msra.gmra.mxu2 %vm515_vm12, %v947_v55 }
 0xd63   :  { %1534 = vmatpush.msra.mxu2 %v3545_v26 }
 0xd64   :  { %v1324_v57 = vrot.slane %v1321_v56, 4 }
 0xd65   :  { %1535 = vmatpush.msra.mxu2 %v3548_v27 }
 0xd66   :  { %1346 = vrot.lane.b32.xlu2 %v1324_v57, %s3263_s11  ;;  %v1326_v58 = vadd.f32 %v1324_v57, %v3596_v4 }
 0xd67   :  { %1536 = vmatpush.msra.mxu2 %v3551_v28 }
 0xd68   :  { %v2572_v59 = vmul.f32 -1.442695, %v1326_v58  ;;  %v1009_v58 = vrot.slane %v3717_v51, 6 }
 0xd69   :  { %1537 = vmatpush.msra.mxu2 %v3554_v29 }
 0xd6a   :  { %2727 = vpow2.f32 %v2572_v59 }
 0xd70   :  { %v2728_v60 = vpop.eup %2727 }
 0xd71   :  { %v1330_v61 = vadd.f32 1.0, %v2728_v60 }
 0xd73   :  { %2729 = vrcp.f32 %v1330_v61  ;;  %v1342_v27 = vand.u32 2147483648, %v1330_v61  ;;  %vm1336_vm1 = vweird.f32 %v1330_v61  ;;  %v1340_v2 = vand.u32 2147483647, %v1330_v61 }
 0xd75   :  { %v1343_v3 = vor.u32 1.1754944e-38, %v1342_v27  ;;  %vm1341_vm3 = vcmp.eq.f32.partialorder %v1340_v2, 8.507059e+37 }
 0xd79   :  { %v2730_v62 = vpop.eup %2729 }
 0xd7a   :  { %v1332_v63 = vmul.f32 %v2730_v62, %v1330_v61  ;;  %vm1337_vm15 = vweird.f32 %v2730_v62 }
 0xd7b   :  { %vm1338_vm2 = vmor %vm1336_vm1, %vm1337_vm15 }
 0xd7c   :  { %v1333_v0 = vsub.f32 1.0, %v1332_v63 }
 0xd7e   :  { %v1334_v26 = vmul.f32 %v2730_v62, %v1333_v0 }
 0xd80   :  { %v1335_v1 = vadd.f32 %v2730_v62, %v1334_v26 }
 0xd82   :  { %v1339_v28 = vsel %vm1338_vm2, %v2730_v62, %v1335_v1 }
 0xd83   :  { %v1344_v29 = vsel %vm1341_vm3, %v1343_v3, %v1339_v28 }
 0xd84   :  { %v1356_v42 = vsub.f32 1.0, %v1344_v29  ;;  %v1364_v45 = vmul.f32 %v1362_v44, %v1344_v29 }
 0xdc0   :  { %v1347_v5 = vpop.permute.xlu2 %1346 }
 0xdc1   :  { %v1349_v9 = vmul.f32 %v1347_v5, %v1344_v29 }
 0xdc3   :  { %1351 = vrot.lane.b32.xlu1 %v1349_v9, %s3263_s11 }
 0xde5   :  { %v967_v12 = vpop.f32.mrf.mxu2 }
 0xde6   :  { %v968_v16 = vadd.f32 %v3633_v43, %v967_v12 }
 0xde8   :  { %v971_v17 = vrot.slane %v968_v16, 2 }
 0xdea   :  { %993 = vrot.lane.b32.xlu1 %v971_v17, %s3263_s11  ;;  %v973_v20 = vadd.f32 %v971_v17, %v3640_v48 }
 0xdec   :  { %v2562_v21 = vmul.f32 -1.442695, %v973_v20 }
 0xdee   :  { %2731 = vpow2.f32 %v2562_v21 }
 0xdf4   :  { %v2732_v24 = vpop.eup %2731 }
 0xdf5   :  { %v977_v25 = vadd.f32 1.0, %v2732_v24 }
 0xdf7   :  { %v989_v10 = vand.u32 2147483648, %v977_v25  ;;  %vm983_vm5 = vweird.f32 %v977_v25  ;;  %v987_v19 = vand.u32 2147483647, %v977_v25 }
 0xdf9   :  { %v990_v35 = vor.u32 1.1754944e-38, %v989_v10  ;;  %vm988_vm7 = vcmp.eq.f32.partialorder %v987_v19, 8.507059e+37 }
 0xe35   :  { %v1352_v22 = vpop.permute.xlu1 %1351 }
 0xe36   :  { %v1354_v23 = vadd.f32 %v1352_v22, %v3596_v4 }
 0xe38   :  { %2733 = vtanh.f32 %v1354_v23 }
 0xe39   :  { %2735 = vrcp.f32 %v977_v25 }
 0xe3e   :  { %v2734_v30 = vpop.eup %2733 }
 0xe3f   :  { %1358 = vrot.lane.b32.xlu0 %v2734_v30, %s3264_s0  ;;  %v2736_v31 = vpop.eup %2735 }
 0xe40   :  { %v979_v6 = vmul.f32 %v2736_v31, %v977_v25  ;;  %vm984_vm4 = vweird.f32 %v2736_v31 }
 0xe41   :  { %vm985_vm6 = vmor %vm983_vm5, %vm984_vm4 }
 0xe42   :  { %v980_v33 = vsub.f32 1.0, %v979_v6 }
 0xe44   :  { %v981_v7 = vmul.f32 %v2736_v31, %v980_v33 }
 0xe46   :  { %v982_v8 = vadd.f32 %v2736_v31, %v981_v7 }
 0xe48   :  { %v986_v11 = vsel %vm985_vm6, %v2736_v31, %v982_v8  ;;  %v3760_v31 = vadd.f32 %v3637_v46, %v3699_v54 }
 0xe49   :  { %v991_v38 = vsel %vm988_vm7, %v990_v35, %v986_v11  ;;  %vm652_vm7 = vcmask 261126  }
 0xe4a   :  { %v1003_v57 = vsub.f32 1.0, %v991_v38  ;;  %v1011_v60 = vmul.f32 %v1009_v58, %v991_v38 }
 0xe5c   :  { %v994_v39 = vpop.permute.xlu1 %993 }
 0xe5d   :  { %v996_v40 = vmul.f32 %v994_v39, %v991_v38 }
 0xe5f   :  { %998 = vrot.lane.b32.xlu0 %v996_v40, %s3263_s11 }
 0xeb1   :  { %v1359_v32 = vpop.permute.xlu0 %1358 }
 0xeb2   :  { %v1361_v47 = vmul.f32 %v1359_v32, %v1356_v42 }
 0xeb4   :  { %v3737_v49 = vadd.f32 %v1364_v45, %v1361_v47 }
 0xeb6   :  { %v1444_v50 = vrot.slane %v3737_v49, 4 }
 0xeb8   :  { %1445 = vrot.lane.b32.xlu2 %v1444_v50, %s3264_s0 }
 0xed1   :  { %v999_v52 = vpop.permute.xlu0 %998 }
 0xed2   :  { %v1001_v53 = vadd.f32 %v999_v52, %v3640_v48 }
 0xed4   :  { %2737 = vtanh.f32 %v1001_v53  ;;  %v1508_v53 = vrot.slane %v3737_v49, 2 }
 0xeda   :  { %v2738_v55 = vpop.eup %2737 }
 0xedb   :  { %1005 = vrot.lane.b32.xlu2 %v2738_v55, %s3264_s0 }
 0xf12   :  { %v1446_v56 = vpop.permute.xlu2 %1445 }
 0xf13   :  { %2575 = vmatmul.msk.f32.vlgmr.msrb.gmra.mxu1 %vm515_vm12, %v1446_v56 }
 0xf35   :  { %v1006_v59 = vpop.permute.xlu2 %1005 }
 0xf36   :  { %v1008_v61 = vmul.f32 %v1006_v59, %v1003_v57 }
 0xf38   :  { %v3745_v62 = vadd.f32 %v1011_v60, %v1008_v61 }
 0xf3a   :  { %v1088_v63 = vrot.slane %v3745_v62, 6 }
 0xf3c   :  { %1089 = vrot.lane.b32.xlu1 %v1088_v63, %s3264_s0 }
 0xf90   :  { %v1466_v48 = vpop.f32.mrf.mxu1 }
 0xf91   :  { %v1467_v0 = vadd.f32 %v3574_v37, %v1466_v48 }
 0xf93   :  { %v1470_v26 = vrot.slane %v1467_v0, 6 }
 0xf95   :  { %1492 = vrot.lane.b32.xlu0 %v1470_v26, %s3263_s11  ;;  %v1472_v27 = vadd.f32 %v1470_v26, %v3596_v4 }
 0xf97   :  { %v2576_v2 = vmul.f32 -1.442695, %v1472_v27 }
 0xf99   :  { %2739 = vpow2.f32 %v2576_v2 }
 0xf9f   :  { %v2740_v28 = vpop.eup %2739 }
 0xfa0   :  { %v1476_v3 = vadd.f32 1.0, %v2740_v28 }
 0xfa2   :  { %2741 = vrcp.f32 %v1476_v3  ;;  %v1488_v37 = vand.u32 2147483648, %v1476_v3  ;;  %vm1482_vm9 = vweird.f32 %v1476_v3  ;;  %v1486_v17 = vand.u32 2147483647, %v1476_v3 }
 0xfa4   :  { %v1489_v21 = vor.u32 1.1754944e-38, %v1488_v37  ;;  %vm1487_vm13 = vcmp.eq.f32.partialorder %v1486_v17, 8.507059e+37 }
 0xfa8   :  { %v2742_v29 = vpop.eup %2741 }
 0xfa9   :  { %v1478_v5 = vmul.f32 %v2742_v29, %v1476_v3  ;;  %vm1483_vm8 = vweird.f32 %v2742_v29 }
 0xfaa   :  { %vm1484_vm11 = vmor %vm1482_vm9, %vm1483_vm8  ;;  %vm797_vm8 = vcmask 259076   ;;  %vm723_vm9 = vcmask 257026  }
 0xfab   :  { %v1479_v9 = vsub.f32 1.0, %v1478_v5  ;;  %v2837_v5 = vld [vmem:[#allocation15] ss:$0 sm:$0xff] }
 0xfad   :  { %v1480_v12 = vmul.f32 %v2742_v29, %v1479_v9 }
 0xfae   :  { %v1090_v1 = vpop.permute.xlu1 %1089 }
 0xfaf   :  { %2565 = vmatmul.msk.f32.vlgmr.msra.gmra.mxu0 %vm515_vm12, %v1090_v1  ;;  %v1481_v16 = vadd.f32 %v2742_v29, %v1480_v12 }
 0xfb1   :  { %v1485_v20 = vsel %vm1484_vm11, %v2742_v29, %v1481_v16 }
 0xfb2   :  { %v1490_v22 = vsel %vm1487_vm13, %v1489_v21, %v1485_v20 }
 0xfb3   :  { %v1502_v52 = vsub.f32 1.0, %v1490_v22  ;;  %v1510_v56 = vmul.f32 %v1508_v53, %v1490_v22 }
0x1007   :  { %v1493_v23 = vpop.permute.xlu0 %1492 }
0x1008   :  { %v1495_v24 = vmul.f32 %v1493_v23, %v1490_v22 }
0x100a   :  { %1497 = vrot.lane.b32.xlu2 %v1495_v24, %s3263_s11 }
0x102c   :  { %v1110_v25 = vpop.f32.mrf.mxu0 }
0x102d   :  { %v1111_v30 = vadd.f32 %v3633_v43, %v1110_v25 }
0x102f   :  { %1134 = vrot.lane.b32.xlu2 %v1111_v30, %s3263_s11  ;;  %v1113_v6 = vadd.f32 %v1111_v30, %v3760_v31 }
0x1031   :  { %v2566_v33 = vmul.f32 -1.442695, %v1113_v6 }
0x1033   :  { %2743 = vpow2.f32 %v2566_v33 }
0x1039   :  { %v2744_v10 = vpop.eup %2743 }
0x103a   :  { %v1117_v19 = vadd.f32 1.0, %v2744_v10 }
0x103c   :  { %v1129_v54 = vand.u32 2147483648, %v1117_v19  ;;  %vm1123_vm15 = vweird.f32 %v1117_v19  ;;  %v1127_v42 = vand.u32 2147483647, %v1117_v19 }
0x103e   :  { %v1130_v32 = vor.u32 1.1754944e-38, %v1129_v54  ;;  %vm1128_vm2 = vcmp.eq.f32.partialorder %v1127_v42, 8.507059e+37 }
0x1064   :  { %v1498_v7 = vpop.permute.xlu2 %1497 }
0x1065   :  { %v1500_v8 = vadd.f32 %v1498_v7, %v3596_v4 }
0x1067   :  { %2745 = vtanh.f32 %v1500_v8 }
0x1068   :  { %2747 = vrcp.f32 %v1117_v19 }
0x106d   :  { %v2746_v11 = vpop.eup %2745 }
0x106e   :  { %1504 = vrot.lane.b32.xlu1 %v2746_v11, %s3264_s0  ;;  %v2748_v35 = vpop.eup %2747 }
0x106f   :  { %v1119_v38 = vmul.f32 %v2748_v35, %v1117_v19  ;;  %vm1124_vm14 = vweird.f32 %v2748_v35 }
0x1070   :  { %vm1125_vm1 = vmor %vm1123_vm15, %vm1124_vm14 }
0x1071   :  { %v1120_v39 = vsub.f32 1.0, %v1119_v38 }
0x1073   :  { %v1121_v40 = vmul.f32 %v2748_v35, %v1120_v39 }
0x1075   :  { %v1122_v46 = vadd.f32 %v2748_v35, %v1121_v40 }
0x1077   :  { %v1126_v44 = vsel %vm1125_vm1, %v2748_v35, %v1122_v46  ;;  %vm1674_vm1 = vcmask 523264  }
0x1078   :  { %v1131_v45 = vsel %vm1128_vm2, %v1130_v32, %v1126_v44 }
0x1079   :  { %v1144_v26 = vsub.f32 1.0, %v1131_v45  ;;  %v1151_v27 = vmul.f32 %v1131_v45, %v1088_v63 }
0x1089   :  { %v1135_v47 = vpop.permute.xlu2 %1134 }
0x108a   :  { %v1137_v50 = vmul.f32 %v1135_v47, %v1131_v45 }
0x108c   :  { %1139 = vrot.lane.b32.xlu1 %v1137_v50, %s3263_s11 }
0x10e0   :  { %v1505_v55 = vpop.permute.xlu1 %1504 }
0x10e1   :  { %v1507_v57 = vmul.f32 %v1505_v55, %v1502_v52 }
0x10e3   :  { %v3767_v58 = vadd.f32 %v1510_v56, %v1507_v57 }
0x10e5   :  { %v1590_v59 = vrot.slane %v3767_v58, 2 }
0x10e7   :  { %1591 = vrot.lane.b32.xlu0 %v1590_v59, %s3264_s0 }
0x10fe   :  { %v1140_v60 = vpop.permute.xlu1 %1139 }
0x10ff   :  { %v1142_v61 = vadd.f32 %v1140_v60, %v3760_v31 }
0x1101   :  { %2749 = vtanh.f32 %v1142_v61 }
0x1107   :  { %v2750_v48 = vpop.eup %2749 }
0x1108   :  { %1146 = vrot.lane.b32.xlu0 %v2750_v48, %s3264_s0 }
0x1159   :  { %v1592_v0 = vpop.permute.xlu0 %1591 }
0x115a   :  { %2579 = vmatmul.msk.f32.vlgmr.msra.gmra.mxu3 %vm515_vm12, %v1592_v0 }
0x117a   :  { %v1147_v1 = vpop.permute.xlu0 %1146 }
0x117b   :  { %v1149_v2 = vmul.f32 %v1147_v1, %v1144_v26 }
0x117d   :  { %v3778_v28 = vadd.f32 %v1151_v27, %v1149_v2 }
0x117f   :  { %1154 = vrot.lane.b32.xlu2 %v3778_v28, %s3264_s0 }
0x11d9   :  { %v1155_v3 = vpop.permute.xlu2 %1154 }
0x11da   :  { %1157 = vst.msk [vmem:[#allocation2 + $0x8] sm:$0x3] %vm582_vm10, %v1155_v3  ;;  %2569 = vmatmul.msk.f32.vlgmr.msrb.gmra.mxu2 %vm515_vm12, %v1155_v3 }
0x11dd   :  { %v1612_v29 = vpop.f32.mrf.mxu3 }
0x11de   :  { %v1613_v9 = vadd.f32 %v2837_v5, %v1612_v29 }
0x11e0   :  { %1636 = vrot.lane.b32.xlu1 %v1613_v9, %s3263_s11  ;;  %v1615_v63 = vadd.f32 %v1613_v9, %v3596_v4 }
0x11e2   :  { %v2580_v12 = vmul.f32 -1.442695, %v1615_v63 }
0x11e4   :  { %2751 = vpow2.f32 %v2580_v12  ;;  %v1289_v12 = vrot.slane %v3778_v28, 6  ;;  %v3831_v28 = vld [vmem:[#allocation20 + $0x8] sm:$0xff] }
0x11e8   :  { %1224 = vrot.lane.b32.xlu1 %v3709_v36, %s3264_s0 }
0x11ea   :  { %v2752_v16 = vpop.eup %2751 }
0x11eb   :  { %v1619_v37 = vadd.f32 1.0, %v2752_v16 }
0x11ed   :  { %2753 = vrcp.f32 %v1619_v37  ;;  %v1631_v24 = vand.u32 2147483648, %v1619_v37  ;;  %vm1625_vm4 = vweird.f32 %v1619_v37  ;;  %v1629_v25 = vand.u32 2147483647, %v1619_v37 }
0x11ef   :  { %v1632_v6 = vor.u32 1.1754944e-38, %v1631_v24  ;;  %vm1630_vm6 = vcmp.eq.f32.partialorder %v1629_v25, 8.507059e+37  ;;  %v3825_v24 = vld [vmem:[#allocation20 + $0x18] sm:$0xff]  ;;  %v3827_v25 = vld [vmem:[#allocation20 + $0x10] sm:$0xff] }
0x11f0   :  { %1783 = vmatpush.msra.mxu1 %v3825_v24  ;;  %1847 = vmatpush.msrb.mxu2 %v3825_v24 }
0x11f1   :  { %1916 = vmatpush.msrb.mxu3 %v3825_v24 }
0x11f2   :  { %1784 = vmatpush.msra.mxu1 %v3827_v25  ;;  %1848 = vmatpush.msrb.mxu2 %v3827_v25 }
0x11f3   :  { %v2754_v17 = vpop.eup %2753  ;;  %1917 = vmatpush.msrb.mxu3 %v3827_v25 }
0x11f4   :  { %v1621_v20 = vmul.f32 %v2754_v17, %v1619_v37  ;;  %vm1626_vm3 = vweird.f32 %v2754_v17  ;;  %1785 = vmatpush.msra.mxu1 %v3831_v28  ;;  %1849 = vmatpush.msrb.mxu2 %v3831_v28 }
0x11f5   :  { %vm1627_vm5 = vmor %vm1625_vm4, %vm1626_vm3  ;;  %1918 = vmatpush.msrb.mxu3 %v3831_v28 }
0x11f6   :  { %v1622_v21 = vsub.f32 1.0, %v1621_v20 }
0x11f8   :  { %v1623_v22 = vmul.f32 %v2754_v17, %v1622_v21 }
0x11fa   :  { %v1624_v23 = vadd.f32 %v2754_v17, %v1623_v22 }
0x11fc   :  { %v1628_v30 = vsel %vm1627_vm5, %v2754_v17, %v1624_v23  ;;  %v3266_v23 = vmov 64.0  }
0x11fd   :  { %v1633_v36 = vsel %vm1630_vm6, %v1632_v6, %v1628_v30  ;;  %v3836_v6 = vld [vmem:[#allocation20] sm:$0xff] }
0x11fe   :  { %v1646_v32 = vsub.f32 1.0, %v1633_v36  ;;  %v1653_v47 = vmul.f32 %v1633_v36, %v1590_v59  ;;  %1786 = vmatpush.msra.mxu1 %v3836_v6  ;;  %1850 = vmatpush.msrb.mxu2 %v3836_v6 }
0x11ff   :  { %1787 = vmatmul.f32.vlgmr.msra.gmra.mxu1 %v3262_v13  ;;  %1919 = vmatpush.msrb.mxu3 %v3836_v6 }
0x1200   :  { %1985 = vmatpush.msrb.mxu1 %v3825_v24 }
0x1201   :  { %2119 = vmatpush.msra.mxu3 %v3825_v24 }
0x1202   :  { %1986 = vmatpush.msrb.mxu1 %v3827_v25 }
0x1203   :  { %2120 = vmatpush.msra.mxu3 %v3827_v25 }
0x1204   :  { %1987 = vmatpush.msrb.mxu1 %v3831_v28 }
0x1205   :  { %2121 = vmatpush.msra.mxu3 %v3831_v28 }
0x1206   :  { %1988 = vmatpush.msrb.mxu1 %v3836_v6 }
0x1207   :  { %2122 = vmatpush.msra.mxu3 %v3836_v6 }
0x1208   :  { %2188 = vmatpush.msra.mxu1 %v3825_v24 }
0x120a   :  { %2189 = vmatpush.msra.mxu1 %v3827_v25 }
0x120c   :  { %2190 = vmatpush.msra.mxu1 %v3831_v28 }
0x120e   :  { %2191 = vmatpush.msra.mxu1 %v3836_v6 }
0x1252   :  { %v1637_v33 = vpop.permute.xlu1 %1636 }
0x1253   :  { %v1639_v7 = vmul.f32 %v1637_v33, %v1633_v36 }
0x1255   :  { %1641 = vrot.lane.b32.xlu0 %v1639_v7, %s3263_s11 }
0x125a   :  { %v1225_v8 = vpop.permute.xlu1 %1224 }
0x125b   :  { %1227 = vst.msk [vmem:[#allocation3] sm:$0xc0] %vm652_vm7, %v1225_v8 }
0x125d   :  { %v1247_v10 = vpop.f32.mrf.mxu2  ;;  %1367 = vrot.lane.b32.xlu0 %v3737_v49, %s3264_s0 }
0x125e   :  { %v1248_v19 = vadd.f32 %v3633_v43, %v1247_v10 }
0x1260   :  { %v1251_v11 = vrot.slane %v1248_v19, 6 }
0x1265   :  { %1273 = vrot.lane.b32.xlu0 %v1251_v11, %s3263_s11 }
0x126d   :  { %1014 = vrot.lane.b32.xlu0 %v3745_v62, %s3264_s0 }
0x12c7   :  { %v1642_v35 = vpop.permute.xlu0 %1641 }
0x12c8   :  { %v1644_v38 = vadd.f32 %v1642_v35, %v3596_v4  ;;  %v1253_v4 = vadd.f32 %v1251_v11, %v3760_v31 }
0x12ca   :  { %2755 = vtanh.f32 %v1644_v38  ;;  %v2570_v62 = vmul.f32 -1.442695, %v1253_v4  ;;  %v361_v4 = vld [vmem:[%s4070_s13 + $0x20] sm:$0xff] }
0x12cc   :  { %2757 = vpow2.f32 %v2570_v62  ;;  %v360_v62 = vld [vmem:[%s4070_s13 + $0x18] sm:$0xff] }
0x12cf   :  { %v1368_v39 = vpop.permute.xlu0 %1367 }
0x12d0   :  { %v2756_v40 = vpop.eup %2755  ;;  %1370 = vst.msk [vmem:[#allocation3] sm:$0x30] %vm797_vm8, %v1368_v39 }
0x12d1   :  { %1648 = vrot.lane.b32.xlu2 %v2756_v40, %s3264_s0  ;;  %v364_v40 = vld [vmem:[%s4070_s13 + $0x38] sm:$0xff] }
0x12d2   :  { %v2758_v46 = vpop.eup %2757  ;;  %1753 = vmatpush.msra.mxu0 %v364_v40 }
0x12d3   :  { %v1257_v54 = vadd.f32 1.0, %v2758_v46  ;;  %v359_v46 = vld [vmem:[%s4070_s13 + $0x10] sm:$0xff] }
0x12d5   :  { %2759 = vrcp.f32 %v1257_v54  ;;  %v1269_v57 = vand.u32 2147483648, %v1257_v54  ;;  %vm1263_vm13 = vweird.f32 %v1257_v54  ;;  %v1267_v60 = vand.u32 2147483647, %v1257_v54 }
0x12d7   :  { %v1274_v49 = vpop.permute.xlu0 %1273  ;;  %v1270_v59 = vor.u32 1.1754944e-38, %v1269_v57  ;;  %vm1268_vm15 = vcmp.eq.f32.partialorder %v1267_v60, 8.507059e+37 }
0x12d9   :  { %1513 = vrot.lane.b32.xlu2 %v3767_v58, %s3264_s0 }
0x12db   :  { %v2760_v42 = vpop.eup %2759 }
0x12dc   :  { %v1259_v44 = vmul.f32 %v2760_v42, %v1257_v54  ;;  %vm1264_vm11 = vweird.f32 %v2760_v42  ;;  %v358_v54 = vld [vmem:[%s4070_s13 + $0x8] sm:$0xff] }
0x12dd   :  { %vm1265_vm14 = vmor %vm1263_vm13, %vm1264_vm11 }
0x12de   :  { %v1260_v52 = vsub.f32 1.0, %v1259_v44 }
0x12df   :  { %v1015_v43 = vpop.permute.xlu0 %1014 }
0x12e0   :  { %1017 = vst.msk [vmem:[#allocation2] sm:$0xc0] %vm652_vm7, %v1015_v43  ;;  %v362_v43 = vld [vmem:[%s4070_s13 + $0x28] sm:$0xff] }
0x12e1   :  { %720 = vrot.lane.b32.xlu2 %v3687_v34, %s3264_s0  ;;  %v1261_v34 = vmul.f32 %v2760_v42, %v1260_v52 }
0x12e3   :  { %v1262_v56 = vadd.f32 %v2760_v42, %v1261_v34  ;;  %v3876_v34 = vld [vmem:[#allocation23] ss:$0 sm:$0xff] }
0x12e5   :  { %v1266_v58 = vsel %vm1265_vm14, %v2760_v42, %v1262_v56  ;;  %v357_v42 = vld [vmem:[%s4070_s13] sm:$0xff] }
0x12e6   :  { %v1271_v48 = vsel %vm1268_vm15, %v1270_v59, %v1266_v58 }
0x12e7   :  { %v1276_v0 = vmul.f32 %v1274_v49, %v1271_v48  ;;  %v1283_v16 = vsub.f32 1.0, %v1271_v48  ;;  %v1291_v17 = vmul.f32 %v1289_v12, %v1271_v48  ;;  %v363_v49 = vld [vmem:[%s4070_s13 + $0x30] sm:$0xff] }
0x12e8   :  { %1754 = vmatpush.msra.mxu0 %v363_v49 }
0x12ea   :  { %1755 = vmatpush.msra.mxu0 %v362_v43 }
0x12ec   :  { %1756 = vmatpush.msra.mxu0 %v361_v4 }
0x12ee   :  { %1757 = vmatpush.msra.mxu0 %v360_v62 }
0x12f0   :  { %1758 = vmatpush.msra.mxu0 %v359_v46 }
0x12f2   :  { %1759 = vmatpush.msra.mxu0 %v358_v54 }
0x12f4   :  { %1760 = vmatpush.msra.mxu0 %v357_v42 }
0x132b   :  { %v1649_v45 = vpop.permute.xlu2 %1648 }
0x132c   :  { %v1651_v50 = vmul.f32 %v1649_v45, %v1646_v32  ;;  %v3871_v32 = vld [vmem:[#allocation9] ss:$0 sm:$0xff] }
0x132e   :  { %v1654_v53 = vadd.f32 %v1653_v47, %v1651_v50 }
0x1330   :  { %1656 = vrot.lane.b32.xlu1 %v1654_v53, %s3264_s0 }
0x1333   :  { %v1514_v55 = vpop.permute.xlu2 %1513 }
0x1334   :  { %1516 = vst.msk [vmem:[#allocation3] sm:$0xc] %vm723_vm9, %v1514_v55  ;;  %v1788_v55 = vpop.f32.mrf.mxu1 }
0x1335   :  { %v1789_v56 = vadd.f32 %v3876_v34, %v1788_v55 }
0x1338   :  { %868 = vrot.lane.b32.xlu1 %v3717_v51, %s3264_s0 }
0x133b   :  { %v721_v61 = vpop.permute.xlu2 %720 }
0x133c   :  { %724 = vst.msk [vmem:[#allocation2] sm:$0xc] %vm723_vm9, %v721_v61 }
0x1340   :  { %1278 = vrot.lane.b32.xlu1 %v1276_v0, %s3263_s11  ;;  %v3880_v0 = vld [vmem:[#allocation17] ss:$0 sm:$0xff] }
0x13a2   :  { %v1657_v26 = vpop.permute.xlu1 %1656 }
0x13a3   :  { %1659 = vst.msk [vmem:[#allocation3] sm:$0x3] %vm582_vm10, %v1657_v26 }
0x13aa   :  { %v869_v1 = vpop.permute.xlu1 %868  ;;  %v1662_v27 = vld [vmem:[#allocation3] sm:$0xff] }
0x13ab   :  { %871 = vst.msk [vmem:[#allocation2] sm:$0x30] %vm797_vm8, %v869_v1  ;;  %1666 = vrot.lane.b32.xlu2 %v1662_v27, %s3265_s16  ;;  %v3882_v27 = vld [vmem:[#allocation18] ss:$0 sm:$0xff] }
0x13b2   :  { %v1279_v51 = vpop.permute.xlu1 %1278  ;;  %v1660_v5 = vld [vmem:[#allocation2] sm:$0xff] }
0x13b3   :  { %v1281_v2 = vadd.f32 %v1279_v51, %v3760_v31 }
0x13b5   :  { %2761 = vtanh.f32 %v1281_v2 }
0x13b6   :  { %2763 = vrcp.f32 %v3266_v23 }
0x13bb   :  { %v2762_v3 = vpop.eup %2761 }
0x13bc   :  { %1285 = vrot.lane.b32.xlu2 %v2762_v3, %s3264_s0  ;;  %v2764_v30 = vpop.eup %2763 }
0x13bd   :  { %v1682_v36 = vmul.f32 64.0, %v2764_v30  ;;  %vm1686_vm2 = vweird.f32 %v2764_v30 }
0x13bf   :  { %v1683_v33 = vsub.f32 1.0, %v1682_v36 }
0x13c1   :  { %v1684_v7 = vmul.f32 %v2764_v30, %v1683_v33 }
0x13c3   :  { %v1685_v13 = vadd.f32 %v2764_v30, %v1684_v7 }
0x13c5   :  { %v3858_v10 = vsel %vm1686_vm2, %v2764_v30, %v1685_v13  ;;  %v3889_v13 = vld [vmem:[#allocation21] ss:$0 sm:$0xff] }
0x1405   :  { %v1667_v29 = vpop.permute.xlu2 %1666 }
0x1406   :  { %v1672_v9 = vsel %vm515_vm12, %v1660_v5, %v1667_v29 }
0x1407   :  { %v1675_v63 = vsel %vm1674_vm1, %v1672_v9, 0.0 }
0x1408   :  { %1676 = vadd.xlane.f32.xlu0 %v1675_v63 }
0x1416   :  { %v1286_v37 = vpop.permute.xlu2 %1285 }
0x1417   :  { %v1288_v20 = vmul.f32 %v1286_v37, %v1283_v16 }
0x1419   :  { %v3821_v21 = vadd.f32 %v1291_v17, %v1288_v20 }
0x141b   :  { %v1371_v22 = vrot.slane %v3821_v21, 2 }
0x141d   :  { %1372 = vrot.lane.b32.xlu2 %v1371_v22, %s3264_s0 }
0x1477   :  { %v1373_v8 = vpop.permute.xlu2 %1372 }
0x1478   :  { %2573 = vmatmul.msk.f32.vlgmr.msrb.gmra.mxu0 %vm515_vm12, %v1373_v8 }
0x147b   :  { %v1677_v19 = vpop.xlane.xlu0 %1676 }
0x147c   :  { %v1688_v11 = vmul.f32 %v3858_v10, %v1677_v19 }
0x147e   :  { %v1690_v35 = vsub.f32 %v1672_v9, %v1688_v11 }
0x1480   :  { %v1692_v38 = vmul.f32 %v1690_v35, %v1690_v35 }
0x1482   :  { %v1694_v39 = vsel %vm1674_vm1, %v1692_v38, 0.0 }
0x1483   :  { %1695 = vadd.xlane.f32.xlu1 %v1694_v39 }
0x14f5   :  { %v1393_v44 = vpop.f32.mrf.mxu0 }
0x14f6   :  { %v1394_v45 = vadd.f32 %v3871_v32, %v1393_v44  ;;  %v1696_v47 = vpop.xlane.xlu1 %1695 }
0x14f7   :  { %v1700_v50 = vmul.f32 %v1696_v47, %v3858_v10 }
0x14f8   :  { %v1397_v52 = vrot.slane %v1394_v45, 4 }
0x14f9   :  { %v1702_v53 = vadd.f32 1e-05, %v1700_v50 }
0x14fa   :  { %1419 = vrot.lane.b32.xlu2 %v1397_v52, %s3263_s11  ;;  %v1399_v3 = vadd.f32 %v1397_v52, %v3760_v31 }
0x14fb   :  { %2765 = vrsqrt.f32 %v1702_v53  ;;  %vm1710_vm4 = vweird.f32 %v1702_v53 }
0x14fc   :  { %v2574_v29 = vmul.f32 -1.442695, %v1399_v3 }
0x14fe   :  { %2767 = vpow2.f32 %v2574_v29 }
0x1501   :  { %v2766_v57 = vpop.eup %2765 }
0x1502   :  { %v1705_v60 = vmul.f32 %v2766_v57, %v1702_v53  ;;  %1812 = vrot.lane.b32.xlu2 %v1789_v56, %s3263_s11  ;;  %vm1711_vm3 = vweird.f32 %v2766_v57 }
0x1503   :  { %vm1712_vm5 = vmor %vm1710_vm4, %vm1711_vm3 }
0x1504   :  { %v1706_v58 = vmul.f32 %v2766_v57, %v1705_v60  ;;  %v2768_v5 = vpop.eup %2767 }
0x1505   :  { %v1403_v9 = vadd.f32 1.0, %v2768_v5 }
0x1506   :  { %v1707_v59 = vmul.f32 0.5, %v1706_v58 }
0x1507   :  { %2769 = vrcp.f32 %v1403_v9  ;;  %v1415_v20 = vand.u32 2147483648, %v1403_v9  ;;  %vm1409_vm11 = vweird.f32 %v1403_v9  ;;  %v1413_v22 = vand.u32 2147483647, %v1403_v9 }
0x1508   :  { %v1708_v61 = vsub.f32 1.5, %v1707_v59 }
0x1509   :  { %v1416_v30 = vor.u32 1.1754944e-38, %v1415_v20  ;;  %vm1414_vm14 = vcmp.eq.f32.partialorder %v1413_v22, 8.507059e+37 }
0x150a   :  { %v1709_v48 = vmul.f32 %v2766_v57, %v1708_v61 }
0x150c   :  { %v1713_v26 = vsel %vm1712_vm5, %v2766_v57, %v1709_v48  ;;  %v1435_v57 = vrot.slane %v3821_v21, 6 }
0x150d   :  { %v1724_v1 = vmul.f32 %v1713_v26, %v1690_v35  ;;  %v2770_v63 = vpop.eup %2769 }
0x150e   :  { %v1405_v12 = vmul.f32 %v2770_v63, %v1403_v9  ;;  %vm1410_vm6 = vweird.f32 %v2770_v63 }
0x150f   :  { %v1729_v51 = vmul.f32 %v3880_v0, %v1724_v1  ;;  %vm1411_vm13 = vmor %vm1409_vm11, %vm1410_vm6 }
0x1510   :  { %v1406_v16 = vsub.f32 1.0, %v1405_v12 }
0x1511   :  { %v1734_v2 = vadd.f32 %v3882_v27, %v1729_v51 }
0x1512   :  { %v1407_v37 = vmul.f32 %v2770_v63, %v1406_v16 }
0x1513   :  { %2581 = vmatmul.msk.f32.vlgmr.msra.gmra.mxu0 %vm1674_vm1, %v1734_v2 }
0x1514   :  { %v1408_v17 = vadd.f32 %v2770_v63, %v1407_v37 }
0x1516   :  { %v1412_v23 = vsel %vm1411_vm13, %v2770_v63, %v1408_v17 }
0x1517   :  { %v1417_v33 = vsel %vm1414_vm14, %v1416_v30, %v1412_v23 }
0x1518   :  { %v1437_v58 = vmul.f32 %v1435_v57, %v1417_v33 }
0x1554   :  { %v1420_v36 = vpop.permute.xlu2 %1419 }
0x1555   :  { %v1422_v7 = vmul.f32 %v1420_v36, %v1417_v33 }
0x1557   :  { %1424 = vrot.lane.b32.xlu2 %v1422_v7, %s3263_s11 }
0x155c   :  { %v1813_v49 = vpop.permute.xlu2 %1812 }
0x1590   :  { %v1762_v8 = vpop.f32.mrf.mxu0 }
0x1591   :  { %v3892_v19 = vadd.f32 %v3889_v13, %v1762_v8 }
0x1593   :  { %v1791_v11 = vadd.f32 %v1789_v56, %v3892_v19  ;;  %v1429_v56 = vsub.f32 1.0, %v1417_v33 }
0x1595   :  { %v2583_v35 = vmul.f32 -1.442695, %v1791_v11 }
0x1597   :  { %2771 = vpow2.f32 %v2583_v35 }
0x159d   :  { %v2772_v38 = vpop.eup %2771 }
0x159e   :  { %v1795_v39 = vadd.f32 1.0, %v2772_v38 }
0x15a0   :  { %2773 = vrcp.f32 %v1795_v39  ;;  %v1807_v62 = vand.u32 2147483648, %v1795_v39  ;;  %v1805_v54 = vand.u32 2147483647, %v1795_v39  ;;  %vm1801_vm2 = vweird.f32 %v1795_v39 }
0x15a2   :  { %v1808_v44 = vor.u32 1.1754944e-38, %v1807_v62  ;;  %vm1806_vm4 = vcmp.eq.f32.partialorder %v1805_v54, 8.507059e+37 }
0x15a6   :  { %v2774_v40 = vpop.eup %2773 }
0x15a7   :  { %v1797_v43 = vmul.f32 %v2774_v40, %v1795_v39  ;;  %vm1802_vm15 = vweird.f32 %v2774_v40 }
0x15a8   :  { %vm1803_vm3 = vmor %vm1801_vm2, %vm1802_vm15 }
0x15a9   :  { %v1798_v4 = vsub.f32 1.0, %v1797_v43 }
0x15ab   :  { %v1799_v46 = vmul.f32 %v2774_v40, %v1798_v4 }
0x15ad   :  { %v1800_v42 = vadd.f32 %v2774_v40, %v1799_v46 }
0x15af   :  { %v1804_v45 = vsel %vm1803_vm3, %v2774_v40, %v1800_v42 }
0x15b0   :  { %v1809_v47 = vsel %vm1806_vm4, %v1808_v44, %v1804_v45 }
0x15b1   :  { %v1815_v50 = vmul.f32 %v1813_v49, %v1809_v47  ;;  %v1425_v52 = vpop.permute.xlu2 %1424  ;;  %v1822_v3 = vsub.f32 1.0, %v1809_v47  ;;  %v1828_v5 = vmul.f32 0.0, %v1809_v47 }
0x15b2   :  { %v1427_v53 = vadd.f32 %v1425_v52, %v3760_v31 }
0x15b3   :  { %1817 = vrot.lane.b32.xlu0 %v1815_v50, %s3263_s11 }
0x15b4   :  { %2775 = vtanh.f32 %v1427_v53 }
0x15ba   :  { %v2776_v55 = vpop.eup %2775 }
0x15bb   :  { %1431 = vrot.lane.b32.xlu2 %v2776_v55, %s3264_s0 }
0x1615   :  { %v1432_v60 = vpop.permute.xlu2 %1431 }
0x1616   :  { %v1434_v59 = vmul.f32 %v1432_v60, %v1429_v56 }
0x1618   :  { %v3899_v61 = vadd.f32 %v1437_v58, %v1434_v59 }
0x161a   :  { %v1517_v48 = vrot.slane %v3899_v61, 4 }
0x161c   :  { %1518 = vrot.lane.b32.xlu2 %v1517_v48, %s3264_s0 }
0x1625   :  { %v1818_v26 = vpop.permute.xlu0 %1817 }
0x1626   :  { %v1820_v1 = vadd.f32 %v1818_v26, %v3892_v19 }
0x1628   :  { %2777 = vtanh.f32 %v1820_v1 }
0x162e   :  { %v2778_v51 = vpop.eup %2777 }
0x162f   :  { %1824 = vrot.lane.b32.xlu1 %v2778_v51, %s3264_s0 }
0x1676   :  { %v1519_v2 = vpop.permute.xlu2 %1518 }
0x1677   :  { %2577 = vmatmul.msk.f32.vlgmr.msra.gmra.mxu2 %vm515_vm12, %v1519_v2 }
0x1678   :  { %2054 = vmatpush.msra.mxu2 %v3825_v24 }
0x167a   :  { %2055 = vmatpush.msra.mxu2 %v3827_v25 }
0x167c   :  { %2056 = vmatpush.msra.mxu2 %v3831_v28 }
0x167e   :  { %2057 = vmatpush.msra.mxu2 %v3836_v6 }
0x16a1   :  { %v1825_v29 = vpop.permute.xlu1 %1824 }
0x16a2   :  { %v1827_v9 = vmul.f32 %v1825_v29, %v1822_v3 }
0x16a4   :  { %v1829_v63 = vadd.f32 %v1828_v5, %v1827_v9 }
0x16a6   :  { %1831 = vrot.lane.b32.xlu2 %v1829_v63, %s3264_s0  ;;  %v1894_v62 = vrot.slane %v1829_v63, 6 }
0x16fa   :  { %v3916_v16 = vpop.f32.mrf.mxu2 }
0x1700   :  { %v1832_v12 = vpop.permute.xlu2 %1831 }
0x1701   :  { %2584 = vmatmul.msk.f32.vlgmr.msrb.gmra.mxu2 %vm515_vm12, %v1832_v12 }
0x1702   :  { %2257 = vmatpush.msrb.mxu2 %v3825_v24 }
0x1704   :  { %2258 = vmatpush.msrb.mxu2 %v3827_v25 }
0x1706   :  { %2259 = vmatpush.msrb.mxu2 %v3831_v28 }
0x1708   :  { %2260 = vmatpush.msrb.mxu2 %v3836_v6 }
0x1784   :  { %v1852_v37 = vpop.f32.mrf.mxu2 }
0x1785   :  { %v1853_v17 = vadd.f32 %v3876_v34, %v1852_v37 }
0x1787   :  { %v1856_v20 = vrot.slane %v1853_v17, 6 }
0x1789   :  { %1878 = vrot.lane.b32.xlu0 %v1856_v20, %s3263_s11  ;;  %v1858_v22 = vadd.f32 %v1856_v20, %v3892_v19  ;;  %v1540_v20 = vadd.f32 %v3871_v32, %v3916_v16 }
0x178b   :  { %v2585_v23 = vmul.f32 -1.442695, %v1858_v22  ;;  %v1543_v22 = vrot.slane %v1540_v20, 2 }
0x178d   :  { %2779 = vpow2.f32 %v2585_v23  ;;  %v1545_v23 = vadd.f32 %v1543_v22, %v3760_v31 }
0x1793   :  { %v2780_v30 = vpop.eup %2779 }
0x1794   :  { %v1862_v24 = vadd.f32 1.0, %v2780_v30  ;;  %v2578_v30 = vmul.f32 -1.442695, %v1545_v23 }
0x1796   :  { %2781 = vrcp.f32 %v1862_v24  ;;  %v1874_v7 = vand.u32 2147483648, %v1862_v24  ;;  %vm1868_vm6 = vweird.f32 %v1862_v24  ;;  %v1872_v8 = vand.u32 2147483647, %v1862_v24 }
0x1798   :  { %v1875_v35 = vor.u32 1.1754944e-38, %v1874_v7  ;;  %vm1873_vm13 = vcmp.eq.f32.partialorder %v1872_v8, 8.507059e+37 }
0x179c   :  { %v2782_v25 = vpop.eup %2781 }
0x179d   :  { %v1864_v36 = vmul.f32 %v2782_v25, %v1862_v24  ;;  %vm1869_vm5 = vweird.f32 %v2782_v25 }
0x179e   :  { %vm1870_vm11 = vmor %vm1868_vm6, %vm1869_vm5 }
0x179f   :  { %v1865_v28 = vsub.f32 1.0, %v1864_v36 }
0x17a1   :  { %v1866_v33 = vmul.f32 %v2782_v25, %v1865_v28 }
0x17a3   :  { %v1867_v6 = vadd.f32 %v2782_v25, %v1866_v33 }
0x17a5   :  { %v1871_v11 = vsel %vm1870_vm11, %v2782_v25, %v1867_v6 }
0x17a6   :  { %v1876_v39 = vsel %vm1873_vm13, %v1875_v35, %v1871_v11 }
0x17a7   :  { %v1888_v46 = vsub.f32 1.0, %v1876_v39  ;;  %v1896_v44 = vmul.f32 %v1894_v62, %v1876_v39 }
0x17fb   :  { %v1879_v38 = vpop.permute.xlu0 %1878 }
0x17fc   :  { %v1881_v40 = vmul.f32 %v1879_v38, %v1876_v39 }
0x17fe   :  { %1883 = vrot.lane.b32.xlu2 %v1881_v40, %s3263_s11 }
0x1858   :  { %v1884_v49 = vpop.permute.xlu2 %1883 }
0x1859   :  { %v1886_v43 = vadd.f32 %v1884_v49, %v3892_v19 }
0x185b   :  { %2783 = vtanh.f32 %v1886_v43 }
0x1861   :  { %v2784_v4 = vpop.eup %2783 }
0x1862   :  { %1890 = vrot.lane.b32.xlu0 %v2784_v4, %s3264_s0 }
0x18d4   :  { %v1891_v54 = vpop.permute.xlu0 %1890 }
0x18d5   :  { %v1893_v42 = vmul.f32 %v1891_v54, %v1888_v46 }
0x18d7   :  { %v1897_v45 = vadd.f32 %v1896_v44, %v1893_v42 }
0x18d9   :  { %v1899_v47 = vrot.slane %v1897_v45, 2  ;;  %v1963_v5 = vrot.slane %v1897_v45, 6 }
0x18db   :  { %1900 = vrot.lane.b32.xlu1 %v1899_v47, %s3264_s0 }
0x194d   :  { %v1901_v50 = vpop.permute.xlu1 %1900 }
0x194e   :  { %2586 = vmatmul.msk.f32.vlgmr.msrb.gmra.mxu3 %vm515_vm12, %v1901_v50 }
0x19d1   :  { %v1921_v52 = vpop.f32.mrf.mxu3 }
0x19d2   :  { %v1922_v53 = vadd.f32 %v3876_v34, %v1921_v52 }
0x19d4   :  { %v1925_v55 = vrot.slane %v1922_v53, 4 }
0x19d6   :  { %v1927_v56 = vadd.f32 %v1925_v55, %v3892_v19  ;;  %1947 = vrot.lane.b32.xlu2 %v1925_v55, %s3263_s11 }
0x19d8   :  { %v2587_v57 = vmul.f32 -1.442695, %v1927_v56 }
0x19da   :  { %2785 = vpow2.f32 %v2587_v57 }
0x19e0   :  { %v2786_v60 = vpop.eup %2785 }
0x19e1   :  { %v1931_v58 = vadd.f32 1.0, %v2786_v60 }
0x19e3   :  { %2787 = vrcp.f32 %v1931_v58  ;;  %v1943_v1 = vand.u32 2147483648, %v1931_v58  ;;  %v1941_v2 = vand.u32 2147483647, %v1931_v58  ;;  %vm1937_vm15 = vweird.f32 %v1931_v58 }
0x19e4   :  { %2789 = vpow2.f32 %v2578_v30 }
0x19e5   :  { %v1944_v29 = vor.u32 1.1754944e-38, %v1943_v1  ;;  %vm1942_vm3 = vcmp.eq.f32.partialorder %v1941_v2, 8.507059e+37 }
0x19e9   :  { %v2788_v59 = vpop.eup %2787 }
0x19ea   :  { %v1933_v48 = vmul.f32 %v2788_v59, %v1931_v58  ;;  %vm1938_vm14 = vweird.f32 %v2788_v59  ;;  %v2790_v24 = vpop.eup %2789  ;;  %v1581_v58 = vrot.slane %v3899_v61, 6 }
0x19eb   :  { %vm1939_vm2 = vmor %vm1937_vm15, %vm1938_vm14  ;;  %v1549_v25 = vadd.f32 1.0, %v2790_v24 }
0x19ec   :  { %v1934_v26 = vsub.f32 1.0, %v1933_v48 }
0x19ed   :  { %2791 = vrcp.f32 %v1549_v25  ;;  %vm1555_vm5 = vweird.f32 %v1549_v25  ;;  %v1559_v35 = vand.u32 2147483647, %v1549_v25 }
0x19ee   :  { %v1935_v51 = vmul.f32 %v2788_v59, %v1934_v26 }
0x19ef   :  { %vm1560_vm11 = vcmp.eq.f32.partialorder %v1559_v35, 8.507059e+37 }
0x19f0   :  { %v1936_v3 = vadd.f32 %v2788_v59, %v1935_v51 }
0x19f2   :  { %v1940_v9 = vsel %vm1939_vm2, %v2788_v59, %v1936_v3 }
0x19f3   :  { %v1945_v63 = vsel %vm1942_vm3, %v1944_v29, %v1940_v9  ;;  %v2792_v36 = vpop.eup %2791 }
0x19f4   :  { %v1965_v12 = vmul.f32 %v1963_v5, %v1945_v63  ;;  %v1551_v28 = vmul.f32 %v2792_v36, %v1549_v25  ;;  %vm1556_vm4 = vweird.f32 %v2792_v36  ;;  %v1957_v4 = vsub.f32 1.0, %v1945_v63 }
0x19f5   :  { %vm1557_vm6 = vmor %vm1555_vm5, %vm1556_vm4 }
0x19f6   :  { %v1552_v6 = vsub.f32 1.0, %v1551_v28 }
0x19f8   :  { %v1553_v32 = vmul.f32 %v2792_v36, %v1552_v6 }
0x19fa   :  { %v1554_v16 = vadd.f32 %v2792_v36, %v1553_v32 }
0x19fc   :  { %v1558_v38 = vsel %vm1557_vm6, %v2792_v36, %v1554_v16 }
0x1a30   :  { %v1948_v37 = vpop.permute.xlu2 %1947 }
0x1a31   :  { %v1950_v17 = vmul.f32 %v1948_v37, %v1945_v63 }
0x1a33   :  { %1952 = vrot.lane.b32.xlu0 %v1950_v17, %s3263_s11 }
0x1a3b   :  { %1565 = vrot.lane.b32.xlu0 %v1543_v22, %s3263_s11 }
0x1a43   :  { %649 = vrot.lane.b32.xlu0 %v3604_v41, %s3264_s0  ;;  %v1561_v41 = vand.u32 2147483648, %v1549_v25 }
0x1a45   :  { %v1562_v39 = vor.u32 1.1754944e-38, %v1561_v41 }
0x1a47   :  { %v1563_v40 = vsel %vm1560_vm11, %v1562_v39, %v1558_v38 }
0x1a48   :  { %v1575_v60 = vsub.f32 1.0, %v1563_v40  ;;  %v1583_v48 = vmul.f32 %v1581_v58, %v1563_v40 }
0x1aa5   :  { %v1953_v33 = vpop.permute.xlu0 %1952 }
0x1aa6   :  { %v1955_v7 = vadd.f32 %v1953_v33, %v3892_v19 }
0x1aa8   :  { %2793 = vtanh.f32 %v1955_v7 }
0x1aad   :  { %v1566_v8 = vpop.permute.xlu0 %1565 }
0x1aae   :  { %v2794_v11 = vpop.eup %2793  ;;  %v1568_v49 = vmul.f32 %v1566_v8, %v1563_v40 }
0x1aaf   :  { %1959 = vrot.lane.b32.xlu1 %v2794_v11, %s3264_s0 }
0x1ab5   :  { %v650_v43 = vpop.permute.xlu0 %649 }
0x1ab6   :  { %653 = vst.msk [vmem:[#allocation3 + $0x8] sm:$0xc0] %vm652_vm7, %v650_v43 }
0x1ab7   :  { %1570 = vrot.lane.b32.xlu1 %v1568_v49, %s3263_s11 }
0x1abf   :  { %794 = vrot.lane.b32.xlu1 %v3620_v14, %s3264_s0 }
0x1ac7   :  { %1294 = vrot.lane.b32.xlu1 %v3821_v21, %s3264_s0 }
0x1b21   :  { %v1960_v62 = vpop.permute.xlu1 %1959 }
0x1b22   :  { %v1962_v46 = vmul.f32 %v1960_v62, %v1957_v4 }
0x1b24   :  { %v3944_v54 = vadd.f32 %v1965_v12, %v1962_v46 }
0x1b26   :  { %v1968_v42 = vrot.slane %v3944_v54, 4  ;;  %v2032_v38 = vrot.slane %v3944_v54, 6 }
0x1b28   :  { %1969 = vrot.lane.b32.xlu2 %v1968_v42, %s3264_s0 }
0x1b29   :  { %v1571_v44 = vpop.permute.xlu1 %1570 }
0x1b2a   :  { %v1573_v45 = vadd.f32 %v1571_v44, %v3760_v31 }
0x1b2c   :  { %2795 = vtanh.f32 %v1573_v45 }
0x1b31   :  { %v795_v47 = vpop.permute.xlu1 %794 }
0x1b32   :  { %v2796_v50 = vpop.eup %2795  ;;  %798 = vst.msk [vmem:[#allocation3 + $0x8] sm:$0x30] %vm797_vm8, %v795_v47 }
0x1b33   :  { %1577 = vrot.lane.b32.xlu2 %v2796_v50, %s3264_s0 }
0x1b39   :  { %v1295_v14 = vpop.permute.xlu1 %1294 }
0x1b3a   :  { %1297 = vst.msk [vmem:[#allocation2 + $0x8] sm:$0xc] %vm723_vm9, %v1295_v14 }
0x1b3b   :  { %941 = vrot.lane.b32.xlu2 %v3647_v18, %s3264_s0 }
0x1b43   :  { %1440 = vrot.lane.b32.xlu2 %v3899_v61, %s3264_s0 }
0x1b82   :  { %v1970_v21 = vpop.permute.xlu2 %1969 }
0x1b83   :  { %2588 = vmatmul.msk.f32.vlgmr.msrb.gmra.mxu1 %vm515_vm12, %v1970_v21 }
0x1b8d   :  { %v1578_v31 = vpop.permute.xlu2 %1577 }
0x1b8e   :  { %v1580_v59 = vmul.f32 %v1578_v31, %v1575_v60 }
0x1b90   :  { %v1584_v26 = vadd.f32 %v1583_v48, %v1580_v59 }
0x1b95   :  { %v942_v52 = vpop.permute.xlu2 %941 }
0x1b96   :  { %944 = vst.msk [vmem:[#allocation3 + $0x8] sm:$0xc] %vm723_vm9, %v942_v52 }
0x1b9d   :  { %v1441_v53 = vpop.permute.xlu2 %1440  ;;  %v1663_v55 = vld [vmem:[#allocation3 + $0x8] sm:$0xff] }
0x1b9e   :  { %1443 = vst.msk [vmem:[#allocation2 + $0x8] sm:$0x30] %vm797_vm8, %v1441_v53  ;;  %1668 = vrot.lane.b32.xlu1 %v1663_v55, %s3265_s16 }
0x1c00   :  { %v1990_v56 = vpop.f32.mrf.mxu1 }
0x1c01   :  { %v1991_v57 = vadd.f32 %v3876_v34, %v1990_v56 }
0x1c03   :  { %v1994_v18 = vrot.slane %v1991_v57, 2 }
0x1c05   :  { %2016 = vrot.lane.b32.xlu0 %v1994_v18, %s3263_s11  ;;  %v1996_v1 = vadd.f32 %v1994_v18, %v3892_v19 }
0x1c07   :  { %v2589_v51 = vmul.f32 -1.442695, %v1996_v1 }
0x1c09   :  { %2797 = vpow2.f32 %v2589_v51 }
0x1c0d   :  { %1586 = vrot.lane.b32.xlu0 %v1584_v26, %s3264_s0 }
0x1c0f   :  { %v2798_v2 = vpop.eup %2797 }
0x1c10   :  { %v2000_v3 = vadd.f32 1.0, %v2798_v2  ;;  %v1669_v25 = vpop.permute.xlu1 %1668 }
0x1c12   :  { %2799 = vrcp.f32 %v2000_v3  ;;  %v2012_v37 = vand.u32 2147483648, %v2000_v3  ;;  %vm2006_vm9 = vweird.f32 %v2000_v3  ;;  %v2010_v61 = vand.u32 2147483647, %v2000_v3 }
0x1c14   :  { %v2013_v20 = vor.u32 1.1754944e-38, %v2012_v37  ;;  %vm2011_vm14 = vcmp.eq.f32.partialorder %v2010_v61, 8.507059e+37 }
0x1c18   :  { %v2800_v29 = vpop.eup %2799 }
0x1c19   :  { %v2002_v5 = vmul.f32 %v2800_v29, %v2000_v3  ;;  %vm2007_vm8 = vweird.f32 %v2800_v29 }
0x1c1a   :  { %vm2008_vm13 = vmor %vm2006_vm9, %vm2007_vm8 }
0x1c1b   :  { %v2003_v9 = vsub.f32 1.0, %v2002_v5 }
0x1c1d   :  { %v2004_v63 = vmul.f32 %v2800_v29, %v2003_v9 }
0x1c1f   :  { %v2005_v12 = vadd.f32 %v2800_v29, %v2004_v63 }
0x1c21   :  { %v2009_v17 = vsel %vm2008_vm13, %v2800_v29, %v2005_v12 }
0x1c22   :  { %v2014_v22 = vsel %vm2011_vm14, %v2013_v20, %v2009_v17 }
0x1c23   :  { %v2026_v39 = vsub.f32 1.0, %v2014_v22  ;;  %v2034_v49 = vmul.f32 %v2032_v38, %v2014_v22 }
0x1c77   :  { %v2017_v23 = vpop.permute.xlu0 %2016 }
0x1c78   :  { %v2019_v30 = vmul.f32 %v2017_v23, %v2014_v22 }
0x1c7a   :  { %2021 = vrot.lane.b32.xlu2 %v2019_v30, %s3263_s11 }
0x1c7f   :  { %v1587_v24 = vpop.permute.xlu0 %1586 }
0x1c80   :  { %1589 = vst.msk [vmem:[#allocation2 + $0x8] sm:$0xc0] %vm652_vm7, %v1587_v24 }
0x1c87   :  { %v1661_v36 = vld [vmem:[#allocation2 + $0x8] sm:$0xff] }
0x1c88   :  { %v1673_v28 = vsel %vm515_vm12, %v1661_v36, %v1669_v25 }
0x1c89   :  { %v1678_v33 = vsel %vm1674_vm1, %v1673_v28, 0.0 }
0x1c8a   :  { %1679 = vadd.xlane.f32.xlu0 %v1678_v33 }
0x1cd4   :  { %v2022_v6 = vpop.permute.xlu2 %2021 }
0x1cd5   :  { %v2024_v7 = vadd.f32 %v2022_v6, %v3892_v19 }
0x1cd7   :  { %2801 = vtanh.f32 %v2024_v7 }
0x1cdd   :  { %v2802_v32 = vpop.eup %2801 }
0x1cde   :  { %2028 = vrot.lane.b32.xlu1 %v2802_v32, %s3264_s0 }
0x1cfd   :  { %v1680_v16 = vpop.xlane.xlu0 %1679 }
0x1cfe   :  { %v1689_v8 = vmul.f32 %v3858_v10, %v1680_v16 }
0x1d00   :  { %v1691_v11 = vsub.f32 %v1673_v28, %v1689_v8 }
0x1d02   :  { %v1693_v41 = vmul.f32 %v1691_v11, %v1691_v11 }
0x1d04   :  { %v1697_v35 = vsel %vm1674_vm1, %v1693_v41, 0.0 }
0x1d05   :  { %1698 = vadd.xlane.f32.xlu2 %v1697_v35 }
0x1d50   :  { %v2029_v40 = vpop.permute.xlu1 %2028 }
0x1d51   :  { %v2031_v43 = vmul.f32 %v2029_v40, %v2026_v39 }
0x1d53   :  { %v2035_v4 = vadd.f32 %v2034_v49, %v2031_v43 }
0x1d55   :  { %v2037_v19 = vrot.slane %v2035_v4, 6 }
0x1d57   :  { %2038 = vrot.lane.b32.xlu1 %v2037_v19, %s3264_s0 }
0x1d78   :  { %v1699_v62 = vpop.xlane.xlu2 %1698 }
0x1d79   :  { %v1701_v46 = vmul.f32 %v1699_v62, %v3858_v10 }
0x1d7b   :  { %v1703_v42 = vadd.f32 1e-05, %v1701_v46 }
0x1d7d   :  { %2803 = vrsqrt.f32 %v1703_v42  ;;  %vm1720_vm2 = vweird.f32 %v1703_v42 }
0x1d83   :  { %v2804_v44 = vpop.eup %2803 }
0x1d84   :  { %v1715_v45 = vmul.f32 %v2804_v44, %v1703_v42  ;;  %vm1721_vm15 = vweird.f32 %v2804_v44 }
0x1d85   :  { %vm1722_vm3 = vmor %vm1720_vm2, %vm1721_vm15 }
0x1d86   :  { %v1716_v47 = vmul.f32 %v2804_v44, %v1715_v45 }
0x1d88   :  { %v1717_v50 = vmul.f32 0.5, %v1716_v47 }
0x1d8a   :  { %v1718_v14 = vsub.f32 1.5, %v1717_v50 }
0x1d8c   :  { %v1719_v54 = vmul.f32 %v2804_v44, %v1718_v14 }
0x1d8e   :  { %v1723_v21 = vsel %vm1722_vm3, %v2804_v44, %v1719_v54 }
0x1d8f   :  { %v1725_v31 = vmul.f32 %v1723_v21, %v1691_v11 }
0x1d91   :  { %v1730_v52 = vmul.f32 %v3880_v0, %v1725_v31 }
0x1d93   :  { %v1735_v53 = vadd.f32 %v3882_v27, %v1730_v52 }
0x1d95   :  { %2582 = vmatmul.msk.f32.gmra.mxu0 %vm1674_vm1, %v1735_v53 }
0x1dc9   :  { %v2039_v10 = vpop.permute.xlu1 %2038 }
0x1dca   :  { %2590 = vmatmul.msk.f32.vlgmr.msra.gmra.mxu2 %vm515_vm12, %v2039_v10 }
0x1e12   :  { %v1765_v57 = vpop.f32.mrf.mxu0 }
0x1e13   :  { %v3983_v18 = vadd.f32 %v3889_v13, %v1765_v57 }
0x1e4d   :  { %v2059_v55 = vpop.f32.mrf.mxu2 }
0x1e4e   :  { %v2060_v56 = vadd.f32 %v3876_v34, %v2059_v55 }
0x1e50   :  { %2083 = vrot.lane.b32.xlu1 %v2060_v56, %s3263_s11  ;;  %v2062_v60 = vadd.f32 %v2060_v56, %v3983_v18 }
0x1e52   :  { %v2591_v58 = vmul.f32 -1.442695, %v2062_v60 }
0x1e54   :  { %2805 = vpow2.f32 %v2591_v58 }
0x1e5a   :  { %v2806_v0 = vpop.eup %2805 }
0x1e5b   :  { %v2066_v27 = vadd.f32 1.0, %v2806_v0 }
0x1e5d   :  { %2807 = vrcp.f32 %v2066_v27  ;;  %v2078_v2 = vand.u32 2147483648, %v2066_v27  ;;  %vm2072_vm4 = vweird.f32 %v2066_v27  ;;  %v2076_v3 = vand.u32 2147483647, %v2066_v27 }
0x1e5f   :  { %v2079_v13 = vor.u32 1.1754944e-38, %v2078_v2  ;;  %vm2077_vm6 = vcmp.eq.f32.partialorder %v2076_v3, 8.507059e+37 }
0x1e63   :  { %v2808_v59 = vpop.eup %2807 }
0x1e64   :  { %v2068_v48 = vmul.f32 %v2808_v59, %v2066_v27  ;;  %vm2073_vm1 = vweird.f32 %v2808_v59 }
0x1e65   :  { %vm2074_vm5 = vmor %vm2072_vm4, %vm2073_vm1 }
0x1e66   :  { %v2069_v26 = vsub.f32 1.0, %v2068_v48 }
0x1e68   :  { %v2070_v1 = vmul.f32 %v2808_v59, %v2069_v26 }
0x1e6a   :  { %v2071_v51 = vadd.f32 %v2808_v59, %v2070_v1 }
0x1e6c   :  { %v2075_v29 = vsel %vm2074_vm5, %v2808_v59, %v2071_v51 }
0x1e6d   :  { %v2080_v9 = vsel %vm2077_vm6, %v2079_v13, %v2075_v29 }
0x1e6e   :  { %v2093_v17 = vsub.f32 1.0, %v2080_v9  ;;  %v2100_v22 = vmul.f32 %v2080_v9, %v2037_v19 }
0x1ec2   :  { %v2084_v5 = vpop.permute.xlu1 %2083 }
0x1ec3   :  { %v2086_v63 = vmul.f32 %v2084_v5, %v2080_v9 }
0x1ec5   :  { %2088 = vrot.lane.b32.xlu1 %v2086_v63, %s3263_s11 }
0x1f37   :  { %v2089_v12 = vpop.permute.xlu1 %2088 }
0x1f38   :  { %v2091_v37 = vadd.f32 %v2089_v12, %v3983_v18 }
0x1f3a   :  { %2809 = vtanh.f32 %v2091_v37 }
0x1f40   :  { %v2810_v61 = vpop.eup %2809 }
0x1f41   :  { %2095 = vrot.lane.b32.xlu1 %v2810_v61, %s3264_s0 }
0x1fb3   :  { %v2096_v20 = vpop.permute.xlu1 %2095 }
0x1fb4   :  { %v2098_v23 = vmul.f32 %v2096_v20, %v2093_v17 }
0x1fb6   :  { %v2101_v30 = vadd.f32 %v2100_v22, %v2098_v23 }
0x1fb8   :  { %2103 = vrot.lane.b32.xlu0 %v2101_v30, %s3264_s0  ;;  %v2166_v44 = vrot.slane %v2101_v30, 6 }
0x202a   :  { %v2104_v24 = vpop.permute.xlu0 %2103 }
0x202b   :  { %2592 = vmatmul.msk.f32.vlgmr.msra.gmra.mxu3 %vm515_vm12, %v2104_v24 }
0x20ae   :  { %v2124_v25 = vpop.f32.mrf.mxu3 }
0x20af   :  { %v2125_v36 = vadd.f32 %v3876_v34, %v2124_v25 }
0x20b1   :  { %v2128_v28 = vrot.slane %v2125_v36, 6 }
0x20b3   :  { %2150 = vrot.lane.b32.xlu1 %v2128_v28, %s3263_s11  ;;  %v2130_v33 = vadd.f32 %v2128_v28, %v3983_v18 }
0x20b5   :  { %v2593_v6 = vmul.f32 -1.442695, %v2130_v33 }
0x20b7   :  { %2811 = vpow2.f32 %v2593_v6 }
0x20bd   :  { %v2812_v7 = vpop.eup %2811 }
0x20be   :  { %v2134_v32 = vadd.f32 1.0, %v2812_v7 }
0x20c0   :  { %2813 = vrcp.f32 %v2134_v32  ;;  %v2146_v38 = vand.u32 2147483648, %v2134_v32  ;;  %vm2140_vm8 = vweird.f32 %v2134_v32  ;;  %v2144_v39 = vand.u32 2147483647, %v2134_v32 }
0x20c2   :  { %v2147_v49 = vor.u32 1.1754944e-38, %v2146_v38  ;;  %vm2145_vm13 = vcmp.eq.f32.partialorder %v2144_v39, 8.507059e+37 }
0x20c6   :  { %v2814_v16 = vpop.eup %2813 }
0x20c7   :  { %v2136_v8 = vmul.f32 %v2814_v16, %v2134_v32  ;;  %vm2141_vm11 = vweird.f32 %v2814_v16 }
0x20c8   :  { %vm2142_vm9 = vmor %vm2140_vm8, %vm2141_vm11 }
0x20c9   :  { %v2137_v11 = vsub.f32 1.0, %v2136_v8 }
0x20cb   :  { %v2138_v41 = vmul.f32 %v2814_v16, %v2137_v11 }
0x20cd   :  { %v2139_v35 = vadd.f32 %v2814_v16, %v2138_v41 }
0x20cf   :  { %v2143_v40 = vsel %vm2142_vm9, %v2814_v16, %v2139_v35 }
0x20d0   :  { %v2148_v4 = vsel %vm2145_vm13, %v2147_v49, %v2143_v40 }
0x20d1   :  { %v2160_v45 = vsub.f32 1.0, %v2148_v4  ;;  %v2168_v14 = vmul.f32 %v2166_v44, %v2148_v4 }
0x2125   :  { %v2151_v43 = vpop.permute.xlu1 %2150 }
0x2126   :  { %v2153_v19 = vmul.f32 %v2151_v43, %v2148_v4 }
0x2128   :  { %2155 = vrot.lane.b32.xlu2 %v2153_v19, %s3263_s11 }
0x2182   :  { %v2156_v62 = vpop.permute.xlu2 %2155 }
0x2183   :  { %v2158_v46 = vadd.f32 %v2156_v62, %v3983_v18 }
0x2185   :  { %2815 = vtanh.f32 %v2158_v46 }
0x218b   :  { %v2816_v42 = vpop.eup %2815 }
0x218c   :  { %2162 = vrot.lane.b32.xlu1 %v2816_v42, %s3264_s0 }
0x21fe   :  { %v2163_v47 = vpop.permute.xlu1 %2162 }
0x21ff   :  { %v2165_v50 = vmul.f32 %v2163_v47, %v2160_v45 }
0x2201   :  { %v2169_v54 = vadd.f32 %v2168_v14, %v2165_v50 }
0x2203   :  { %v2171_v21 = vrot.slane %v2169_v54, 2  ;;  %v2235_v12 = vrot.slane %v2169_v54, 6 }
0x2205   :  { %2172 = vrot.lane.b32.xlu1 %v2171_v21, %s3264_s0  ;;  %v3267_v21 = vmov 32.0  }
0x2277   :  { %v2173_v31 = vpop.permute.xlu1 %2172 }
0x2278   :  { %2594 = vmatmul.msk.f32.vlgmr.msra.gmra.mxu1 %vm515_vm12, %v2173_v31 }
0x22f5   :  { %v2193_v52 = vpop.f32.mrf.mxu1 }
0x22f6   :  { %v2194_v53 = vadd.f32 %v3876_v34, %v2193_v52 }
0x22f8   :  { %v2197_v10 = vrot.slane %v2194_v53, 4 }
0x22fa   :  { %2219 = vrot.lane.b32.xlu0 %v2197_v10, %s3263_s11  ;;  %v2199_v55 = vadd.f32 %v2197_v10, %v3983_v18 }
0x22fc   :  { %v2595_v56 = vmul.f32 -1.442695, %v2199_v55 }
0x22fe   :  { %2817 = vpow2.f32 %v2595_v56 }
0x2304   :  { %v2818_v57 = vpop.eup %2817 }
0x2305   :  { %v2203_v60 = vadd.f32 1.0, %v2818_v57 }
0x2307   :  { %2819 = vrcp.f32 %v2203_v60  ;;  %v2215_v26 = vand.u32 2147483648, %v2203_v60  ;;  %vm2209_vm15 = vweird.f32 %v2203_v60  ;;  %v2213_v1 = vand.u32 2147483647, %v2203_v60 }
0x2309   :  { %v2216_v2 = vor.u32 1.1754944e-38, %v2215_v26  ;;  %vm2214_vm3 = vcmp.eq.f32.partialorder %v2213_v1, 8.507059e+37  ;;  %v376_v26 = vld [vmem:[#allocation24 + $0x18] sm:$0xff]  ;;  %v375_v1 = vld [vmem:[#allocation24 + $0x10] sm:$0xff] }
0x230a   :  { %2378 = vmatpush.msrb.mxu3 %v376_v26 }
0x230c   :  { %2379 = vmatpush.msrb.mxu3 %v375_v1 }
0x230d   :  { %v2820_v58 = vpop.eup %2819 }
0x230e   :  { %v2205_v0 = vmul.f32 %v2820_v58, %v2203_v60  ;;  %vm2210_vm14 = vweird.f32 %v2820_v58 }
0x230f   :  { %vm2211_vm2 = vmor %vm2209_vm15, %vm2210_vm14 }
0x2310   :  { %v2206_v27 = vsub.f32 1.0, %v2205_v0  ;;  %v2664_v0 = vld [vmem:[%s4071_s18] ss:$0 sm:$0xff] }
0x2312   :  { %v2207_v59 = vmul.f32 %v2820_v58, %v2206_v27  ;;  %v2665_v27 = vld [vmem:[%s4072_s19] ss:$0 sm:$0xff] }
0x2314   :  { %v2208_v48 = vadd.f32 %v2820_v58, %v2207_v59 }
0x2316   :  { %v2212_v51 = vsel %vm2211_vm2, %v2820_v58, %v2208_v48  ;;  %vm2445_vm2 = vcmask 123904  }
0x2317   :  { %v2217_v29 = vsel %vm2214_vm3, %v2216_v2, %v2212_v51 }
0x2318   :  { %v2229_v37 = vsub.f32 1.0, %v2217_v29  ;;  %v2237_v17 = vmul.f32 %v2235_v12, %v2217_v29 }
0x236c   :  { %v2220_v3 = vpop.permute.xlu0 %2219 }
0x236d   :  { %v2222_v13 = vmul.f32 %v2220_v3, %v2217_v29  ;;  %v374_v3 = vld [vmem:[#allocation24 + $0x8] sm:$0xff] }
0x236e   :  { %2380 = vmatpush.msrb.mxu3 %v374_v3 }
0x236f   :  { %2224 = vrot.lane.b32.xlu1 %v2222_v13, %s3263_s11  ;;  %v373_v13 = vld [vmem:[#allocation24] sm:$0xff] }
0x2370   :  { %2381 = vmatpush.msrb.mxu3 %v373_v13 }
0x23e1   :  { %v2225_v5 = vpop.permute.xlu1 %2224 }
0x23e2   :  { %v2227_v9 = vadd.f32 %v2225_v5, %v3983_v18 }
0x23e4   :  { %2821 = vtanh.f32 %v2227_v9 }
0x23ea   :  { %v2822_v63 = vpop.eup %2821 }
0x23eb   :  { %2231 = vrot.lane.b32.xlu0 %v2822_v63, %s3264_s0 }
0x245d   :  { %v2232_v61 = vpop.permute.xlu0 %2231 }
0x245e   :  { %v2234_v20 = vmul.f32 %v2232_v61, %v2229_v37 }
0x2460   :  { %v2238_v22 = vadd.f32 %v2237_v17, %v2234_v20 }
0x2462   :  { %v2240_v23 = vrot.slane %v2238_v22, 4  ;;  %v2304_v46 = vrot.slane %v2238_v22, 6 }
0x2464   :  { %2241 = vrot.lane.b32.xlu2 %v2240_v23, %s3264_s0 }
0x24be   :  { %v2242_v30 = vpop.permute.xlu2 %2241 }
0x24bf   :  { %2596 = vmatmul.msk.f32.vlgmr.msrb.gmra.mxu2 %vm515_vm12, %v2242_v30 }
0x2542   :  { %v2262_v24 = vpop.f32.mrf.mxu2 }
0x2543   :  { %v2263_v25 = vadd.f32 %v3876_v34, %v2262_v24 }
0x2545   :  { %v2266_v36 = vrot.slane %v2263_v25, 2 }
0x2547   :  { %2288 = vrot.lane.b32.xlu1 %v2266_v36, %s3263_s11  ;;  %v2268_v28 = vadd.f32 %v2266_v36, %v3983_v18 }
0x2549   :  { %v2597_v33 = vmul.f32 -1.442695, %v2268_v28  ;;  %v2666_v28 = vld [vmem:[%s4073_s7] ss:$0 sm:$0xff] }
0x254b   :  { %2823 = vpow2.f32 %v2597_v33 }
0x2551   :  { %v2824_v6 = vpop.eup %2823 }
0x2552   :  { %v2272_v7 = vadd.f32 1.0, %v2824_v6 }
0x2554   :  { %2825 = vrcp.f32 %v2272_v7  ;;  %v2284_v35 = vand.u32 2147483648, %v2272_v7  ;;  %vm2278_vm4 = vweird.f32 %v2272_v7  ;;  %v2282_v38 = vand.u32 2147483647, %v2272_v7 }
0x2556   :  { %v2285_v39 = vor.u32 1.1754944e-38, %v2284_v35  ;;  %vm2283_vm6 = vcmp.eq.f32.partialorder %v2282_v38, 8.507059e+37  ;;  %v383_v35 = vld [vmem:[%s4074_s26 + $0x18] sm:$0xff]  ;;  %v382_v38 = vld [vmem:[%s4074_s26 + $0x10] sm:$0xff] }
0x2557   :  { %2437 = vmatpush.msrb.mxu0 %v383_v35 }
0x2559   :  { %2438 = vmatpush.msrb.mxu0 %v382_v38 }
0x255a   :  { %v2826_v32 = vpop.eup %2825 }
0x255b   :  { %v2274_v16 = vmul.f32 %v2826_v32, %v2272_v7  ;;  %vm2279_vm1 = vweird.f32 %v2826_v32 }
0x255c   :  { %vm2280_vm5 = vmor %vm2278_vm4, %vm2279_vm1 }
0x255d   :  { %v2275_v8 = vsub.f32 1.0, %v2274_v16 }
0x255f   :  { %v2276_v11 = vmul.f32 %v2826_v32, %v2275_v8 }
0x2561   :  { %v2277_v41 = vadd.f32 %v2826_v32, %v2276_v11 }
0x2563   :  { %v2281_v34 = vsel %vm2280_vm5, %v2826_v32, %v2277_v41 }
0x2564   :  { %v2286_v49 = vsel %vm2283_vm6, %v2285_v39, %v2281_v34  ;;  %v381_v34 = vld [vmem:[%s4074_s26 + $0x8] sm:$0xff]  ;;  %v380_v39 = vld [vmem:[%s4074_s26] sm:$0xff] }
0x2565   :  { %v2298_v42 = vsub.f32 1.0, %v2286_v49  ;;  %v2306_v45 = vmul.f32 %v2304_v46, %v2286_v49  ;;  %2439 = vmatpush.msrb.mxu0 %v381_v34 }
0x2567   :  { %2440 = vmatpush.msrb.mxu0 %v380_v39 }
0x25b9   :  { %v2289_v40 = vpop.permute.xlu1 %2288 }
0x25ba   :  { %v2291_v43 = vmul.f32 %v2289_v40, %v2286_v49 }
0x25bc   :  { %2293 = vrot.lane.b32.xlu0 %v2291_v43, %s3263_s11 }
0x262e   :  { %v2294_v4 = vpop.permute.xlu0 %2293 }
0x262f   :  { %v2296_v19 = vadd.f32 %v2294_v4, %v3983_v18 }
0x2631   :  { %2827 = vtanh.f32 %v2296_v19 }
0x2632   :  { %2829 = vrcp.f32 %v3267_v21 }
0x2637   :  { %v2828_v62 = vpop.eup %2827 }
0x2638   :  { %2300 = vrot.lane.b32.xlu2 %v2828_v62, %s3264_s0  ;;  %v2830_v18 = vpop.eup %2829 }
0x2639   :  { %v2316_v31 = vmul.f32 32.0, %v2830_v18  ;;  %vm2320_vm11 = vweird.f32 %v2830_v18 }
0x263b   :  { %v2317_v52 = vsub.f32 1.0, %v2316_v31 }
0x263d   :  { %v2318_v53 = vmul.f32 %v2830_v18, %v2317_v52  ;;  %v2669_v52 = vld [vmem:[%s4077_s17] ss:$0 sm:$0xff] }
0x263f   :  { %v2319_v10 = vadd.f32 %v2830_v18, %v2318_v53 }
0x2641   :  { %v4015_v55 = vsel %vm2320_vm11, %v2830_v18, %v2319_v10 }
0x2692   :  { %v2301_v44 = vpop.permute.xlu2 %2300 }
0x2693   :  { %v2303_v47 = vmul.f32 %v2301_v44, %v2298_v42 }
0x2695   :  { %v2307_v50 = vadd.f32 %v2306_v45, %v2303_v47  ;;  %v2667_v45 = vld [vmem:[%s4075_s14] ss:$0 sm:$0xff] }
0x2697   :  { %2309 = vrot.lane.b32.xlu1 %v2307_v50, %s3264_s0 }
0x2709   :  { %v2310_v14 = vpop.permute.xlu1 %2309 }
0x270a   :  { %v2312_v54 = vsel %vm652_vm7, %v2310_v14, 0.0  ;;  %v2668_v14 = vld [vmem:[%s4076_s29] ss:$0 sm:$0xff] }
0x270b   :  { %2313 = vadd.xlane.f32.xlu0 %v2312_v54 }
0x277e   :  { %v2314_v56 = vpop.xlane.xlu0 %2313 }
0x277f   :  { %v2322_v57 = vmul.f32 %v4015_v55, %v2314_v56 }
0x2781   :  { %v2323_v60 = vsub.f32 %v2307_v50, %v2322_v57 }
0x2783   :  { %v2324_v58 = vmul.f32 %v2323_v60, %v2323_v60 }
0x2785   :  { %2326 = vrot.lane.b32.xlu2 %v2324_v58, %s3264_s0 }
0x278d   :  { %2347 = vrot.lane.b32.xlu2 %v2664_v0, %s3265_s16 }
0x2795   :  { %2353 = vrot.lane.b32.xlu2 %v2665_v27, %s3265_s16  ;;  %v388_v27 = vld [vmem:[%s3411_s5 + $0x8] sm:$0xff] }
0x2796   :  { %2499 = vmatpush.msrb.mxu1 %v388_v27 }
0x27df   :  { %v2327_v59 = vpop.permute.xlu2 %2326 }
0x27e0   :  { %v2329_v48 = vsel %vm652_vm7, %v2327_v59, 0.0  ;;  %v387_v59 = vld [vmem:[%s3411_s5] sm:$0xff] }
0x27e1   :  { %2330 = vadd.xlane.f32.xlu1 %v2329_v48  ;;  %2500 = vmatpush.msrb.mxu1 %v387_v59 }
0x27e7   :  { %v2348_v12 = vpop.permute.xlu2 %2347 }
0x27ef   :  { %v2354_v23 = vpop.permute.xlu2 %2353 }
0x2854   :  { %v2331_v51 = vpop.xlane.xlu1 %2330 }
0x2855   :  { %v2332_v2 = vmul.f32 %v2331_v51, %v4015_v55 }
0x2857   :  { %v2333_v29 = vadd.f32 1e-05, %v2332_v2 }
0x2859   :  { %2831 = vrsqrt.f32 %v2333_v29  ;;  %vm2340_vm8 = vweird.f32 %v2333_v29 }
0x285f   :  { %v2832_v5 = vpop.eup %2831 }
0x2860   :  { %v2335_v9 = vmul.f32 %v2832_v5, %v2333_v29  ;;  %vm2341_vm7 = vweird.f32 %v2832_v5 }
0x2861   :  { %vm2342_vm9 = vmor %vm2340_vm8, %vm2341_vm7 }
0x2862   :  { %v2336_v63 = vmul.f32 %v2832_v5, %v2335_v9  ;;  %v2670_v9 = vld [vmem:[%s4078_s15] ss:$0 sm:$0xff] }
0x2864   :  { %v2337_v37 = vmul.f32 0.5, %v2336_v63 }
0x2866   :  { %v2338_v61 = vsub.f32 1.5, %v2337_v37  ;;  %v2671_v37 = vld [vmem:[%s3406_s6] ss:$0 sm:$0xff] }
0x2868   :  { %v2339_v17 = vmul.f32 %v2832_v5, %v2338_v61 }
0x286a   :  { %v2343_v20 = vsel %vm2342_vm9, %v2832_v5, %v2339_v17 }
0x286b   :  { %v2344_v22 = vmul.f32 %v2343_v20, %v2323_v60 }
0x286d   :  { %v2350_v30 = vmul.f32 %v2348_v12, %v2344_v22  ;;  %v2672_v22 = vld [vmem:[#allocation26] ss:$0 sm:$0xff] }
0x286f   :  { %v2356_v24 = vadd.f32 %v2354_v23, %v2350_v30 }
0x2871   :  { %v2361_v25 = vrot.slane %v2356_v24, 6 }
0x2873   :  { %2362 = vrot.lane.b32.xlu2 %v2361_v25, %s3264_s0 }
0x28cd   :  { %v2363_v36 = vpop.permute.xlu2 %2362 }
0x28ce   :  { %2598 = vmatmul.msk.f32.vlgmr.msrb.gmra.mxu3 %vm515_vm12, %v2363_v36 }
0x2951   :  { %v2383_v33 = vpop.f32.mrf.mxu3 }
0x2952   :  { %v2384_v6 = vadd.f32 %v2666_v28, %v2383_v33 }
0x2954   :  { %v2386_v7 = vsel %vm582_vm10, %v2384_v6, 0.0 }
0x2955   :  { %2387 = vadd.xlane.f32.xlu2 %v2386_v7 }
0x29c8   :  { %v2388_v32 = vpop.xlane.xlu2 %2387 }
0x29c9   :  { %v2389_v16 = vmul.f32 %v2388_v32, %v4015_v55 }
0x29cb   :  { %v2390_v8 = vsub.f32 %v2384_v6, %v2389_v16 }
0x29cd   :  { %v2391_v11 = vmul.f32 %v2390_v8, %v2390_v8 }
0x29cf   :  { %v2392_v41 = vsel %vm582_vm10, %v2391_v11, 0.0 }
0x29d0   :  { %2393 = vadd.xlane.f32.xlu0 %v2392_v41 }
0x2a43   :  { %v2394_v40 = vpop.xlane.xlu0 %2393 }
0x2a44   :  { %v2395_v49 = vmul.f32 %v2394_v40, %v4015_v55 }
0x2a46   :  { %v2396_v43 = vadd.f32 1e-05, %v2395_v49 }
0x2a48   :  { %2833 = vrsqrt.f32 %v2396_v43  ;;  %vm2403_vm13 = vweird.f32 %v2396_v43 }
0x2a4e   :  { %v2834_v4 = vpop.eup %2833 }
0x2a4f   :  { %v2398_v19 = vmul.f32 %v2834_v4, %v2396_v43  ;;  %vm2404_vm10 = vweird.f32 %v2834_v4 }
0x2a50   :  { %vm2405_vm14 = vmor %vm2403_vm13, %vm2404_vm10 }
0x2a51   :  { %v2399_v62 = vmul.f32 %v2834_v4, %v2398_v19 }
0x2a53   :  { %v2400_v46 = vmul.f32 0.5, %v2399_v62 }
0x2a55   :  { %v2401_v42 = vsub.f32 1.5, %v2400_v46 }
0x2a57   :  { %v2402_v44 = vmul.f32 %v2834_v4, %v2401_v42 }
0x2a59   :  { %v2406_v47 = vsel %vm2405_vm14, %v2834_v4, %v2402_v44 }
0x2a5a   :  { %v2407_v50 = vmul.f32 %v2406_v47, %v2390_v8 }
0x2a5c   :  { %v2411_v54 = vmul.f32 %v2667_v45, %v2407_v50 }
0x2a5e   :  { %v2415_v21 = vadd.f32 %v2668_v14, %v2411_v54 }
0x2a60   :  { %vm2416_vm15 = vcmp.gt.f32.partialorder %v2415_v21, 0.0  ;;  %v2417_v18 = vmul.f32 0.01, %v2415_v21 }
0x2a62   :  { %v2418_v31 = vsel %vm2416_vm15, %v2415_v21, %v2417_v18 }
0x2a63   :  { %2599 = vmatmul.msk.f32.vlgmr.msrb.gmra.mxu0 %vm515_vm12, %v2418_v31 }
0x2ae0   :  { %v2442_v53 = vpop.f32.mrf.mxu0 }
0x2ae1   :  { %v2443_v10 = vadd.f32 %v2669_v52, %v2442_v53 }
0x2ae3   :  { %v2446_v55 = vsel %vm2445_vm2, %v2443_v10, 0.0 }
0x2ae4   :  { %2447 = vadd.xlane.f32.xlu1 %v2446_v55 }
0x2b57   :  { %v2448_v56 = vpop.xlane.xlu1 %2447 }
0x2b58   :  { %v2449_v57 = vmul.f32 %v2448_v56, %v3526_v15 }
0x2b5a   :  { %v2450_v60 = vsub.f32 %v2443_v10, %v2449_v57 }
0x2b5c   :  { %v2451_v58 = vmul.f32 %v2450_v60, %v2450_v60 }
0x2b5e   :  { %v2452_v0 = vsel %vm2445_vm2, %v2451_v58, 0.0 }
0x2b5f   :  { %2453 = vadd.xlane.f32.xlu0 %v2452_v0 }
0x2bd2   :  { %v2454_v48 = vpop.xlane.xlu0 %2453 }
0x2bd3   :  { %v2455_v26 = vmul.f32 %v2454_v48, %v3526_v15 }
0x2bd5   :  { %v2456_v1 = vadd.f32 1e-05, %v2455_v26 }
0x2bd7   :  { %2835 = vrsqrt.f32 %v2456_v1  ;;  %vm2463_vm3 = vweird.f32 %v2456_v1 }
0x2bdd   :  { %v2836_v51 = vpop.eup %2835 }
0x2bde   :  { %v2458_v2 = vmul.f32 %v2836_v51, %v2456_v1  ;;  %vm2464_vm12 = vweird.f32 %v2836_v51 }
0x2bdf   :  { %vm2465_vm1 = vmor %vm2463_vm3, %vm2464_vm12 }
0x2be0   :  { %v2459_v3 = vmul.f32 %v2836_v51, %v2458_v2 }
0x2be2   :  { %v2460_v29 = vmul.f32 0.5, %v2459_v3 }
0x2be4   :  { %v2461_v13 = vsub.f32 1.5, %v2460_v29 }
0x2be6   :  { %v2462_v5 = vmul.f32 %v2836_v51, %v2461_v13 }
0x2be8   :  { %v2466_v63 = vsel %vm2465_vm1, %v2836_v51, %v2462_v5 }
0x2be9   :  { %v2467_v12 = vmul.f32 %v2466_v63, %v2450_v60 }
0x2beb   :  { %v2471_v61 = vmul.f32 %v2670_v9, %v2467_v12 }
0x2bed   :  { %v2475_v17 = vadd.f32 %v2671_v37, %v2471_v61 }
0x2bef   :  { %vm2476_vm4 = vcmp.gt.f32.partialorder %v2475_v17, 0.0  ;;  %v2477_v15 = vmul.f32 0.01, %v2475_v17 }
0x2bf1   :  { %v2478_v20 = vsel %vm2476_vm4, %v2475_v17, %v2477_v15 }
0x2bf2   :  { %2600 = vmatmul.msk.f32.vlgmr.msrb.gmra.mxu1 %vm392_vm0, %v2478_v20 }
0x2c6f   :  { %v2502_v23 = vpop.f32.mrf.mxu1 }
0x2c70   :  { %v2503_v30 = vadd.f32 %v2672_v22, %v2502_v23 }
0x2c72   :  { %2505 = vst.msk [vmem:[%s3421_s4] sm:$0x3] %vm2445_vm2, %v2503_v30 }
0x2c73   :  { %2510 = vsyncpa [#allocation5], 1 }
0x2c74   :  { %2511 = vsyncpa [#allocation7], 1 }
0x2c75   :  { %2512 = vsyncpa [#allocation10], 1 }
0x2c76   :  { %2513 = vsyncpa [#allocation13], 1 }
0x2c77   :  { %2514 = vsyncpa [#allocation16], 1 }
0x2c78   :  { %2515 = vsyncpa [#allocation19], 1 }
0x2c79   :  { %2516 = vsyncpa [#allocation22], 1 }
0x2c7a   :  { %2517 = vsyncpa [#allocation25], 1 }

</bundles_post_ra>
